<compile_context>
chip_gen: v5e
topology: v5e:2x2
jax: 0.10.0
libtpu: 0.0.40
codegen_flags: <defaults>
</compile_context>

<pallas_src>
import functools

import jax
import jax.numpy as jnp
from jax.experimental import pallas as pl
from jax.experimental.pallas import tpu as pltpu


# --------------------------------- kernel ------------------------------------

def _make_sft_kernel(Cx, Cz, W, N, mxu_dtype):
    """N = images_per_step * H * W (lane extent of one grid step)."""
    C2 = 2 * Cx

    taps = [(t, t // 3 - 1, t % 3 - 1) for t in range(9)]   # (tap, dy, dx)

    def kernel(in_ref, mask_ref, w0_ref, b0_ref, w1_ref, b1_ref, o_ref,
               taps0_ref, t0_ref, taps1_ref):
        # in_ref / o_ref : (Cx+Cz, N)      lane-dense slab (channels x pixels)
        # mask_ref       : (9, 1, N)       per-tap zero-padding masks (f32)
        # w0_ref         : (2Cx, 9*Cz)     fused conv0 weights (scale ++ shift)
        # w1_ref         : (2Cx, 9*2Cx)    block-diagonal conv1 weights
        # b0_ref / b1_ref: (2Cx, 1)        biases (scale_bias folded into b1)
        # taps0_ref      : (9*Cz, N)       bf16 tap slab for conv0
        # t0_ref         : (2Cx, N)        f32 post-leaky activations
        # taps1_ref      : (9*2Cx, N)      bf16 tap slab for conv1

        # torch.cat passthrough of z (exact copy in the input dtype).
        o_ref[Cx:, :] = in_ref[Cx:, :]

        z = in_ref[Cx:, :].astype(jnp.float32)               # (Cz, N)

        def rolled_tap(src, t, dy, dx):
            if dy == 0 and dx == 0:                           # center tap: free
                return src
            sh = (-(dy * W + dx)) % N                         # non-negative
            # roll along lanes (XLU); mask zeroes out-of-image / cross-seam lanes
            return pltpu.roll(src, shift=sh, axis=1) * mask_ref[t]

        # ---- conv0 tap slab: (9*Cz, N), bf16, 8-aligned sublane stores ------
        for t, dy, dx in taps:
            tap = rolled_tap(z, t, dy, dx)
            taps0_ref[t * Cz:(t + 1) * Cz, :] = tap.astype(mxu_dtype)

        # ---- conv0, scale++shift fused: one (2Cx,9Cz) @ (9Cz,N) MXU dot -----
        acc0 = jnp.dot(w0_ref[...], taps0_ref[...],
                       preferred_element_type=jnp.float32) + b0_ref[...]
        t0_ref[...] = jnp.where(acc0 >= 0, acc0, 0.1 * acc0)  # leaky_relu(0.1)

        # ---- conv1 tap slab: (9*2Cx, N), bf16 -------------------------------
        for t, dy, dx in taps:
            tap = rolled_tap(t0_ref[...], t, dy, dx)
            taps1_ref[t * C2:(t + 1) * C2, :] = tap.astype(mxu_dtype)

        # ---- conv1, scale/shift fused via block-diagonal weight -------------
        out1 = jnp.dot(w1_ref[...], taps1_ref[...],
                       preferred_element_type=jnp.float32) + b1_ref[...]
        scale = out1[:Cx, :]                 # scale_bias already folded into b1
        shift = out1[Cx:, :]

        x = in_ref[:Cx, :].astype(jnp.float32)       # loaded late (vreg relief)
        o_ref[:Cx, :] = (x * scale + shift).astype(o_ref.dtype)

    return kernel


# -------------------------------- wrapper -------------------------------------

def _pick_images_per_step(B, HW, min_lanes=512):
    """Fold images onto the lane axis while keeping >=2 grid steps when B
    allows (v7x has two TensorCores)."""
    nb = 1
    while True:
        nxt = nb * 2
        if nxt > B or B % nxt != 0:
            break
        if B >= 2 and B // nxt < 2:
            break
        if nb * HW >= min_lanes:
            break
        nb = nxt
    return nb


def sft_layer(inp, params, *, n_feat_x, n_feat_z, scale_bias=1.0,
              images_per_step=None, mxu_dtype=jnp.bfloat16):
    """inp: (B, n_feat_x + n_feat_z, H, W). Returns same shape."""
    B, C, H, W = inp.shape
    Cx, Cz = n_feat_x, n_feat_z
    assert C == Cx + Cz
    HW = H * W

    nb = images_per_step if images_per_step is not None else _pick_images_per_step(B, HW)
    assert B % nb == 0, "images_per_step must divide the batch"
    steps = B // nb
    N = nb * HW
    if steps > 1:
        assert N % 128 == 0, "per-step lane extent must be a multiple of 128"

    # lane-dense layout: channels on sublanes, (batch, spatial) on lanes.
    x_lane = jnp.transpose(inp.reshape(B, C, HW), (1, 0, 2)).reshape(C, B * HW)

    def tapize(w):  # (Cout, Cin, 3, 3) -> (9, Cout, Cin), tap index = ky*3+kx
        co, ci = w.shape[0], w.shape[1]
        return jnp.transpose(w, (2, 3, 0, 1)).reshape(9, co, ci).astype(jnp.float32)

    # conv0: both branches see the same z -> fuse to one (2Cx, 9*Cz) weight.
    w0_t = tapize(jnp.concatenate([params["w_s0"], params["w_h0"]], axis=0))  # (9,2Cx,Cz)
    w0 = jnp.transpose(w0_t, (1, 0, 2)).reshape(2 * Cx, 9 * Cz).astype(mxu_dtype)
    b0 = jnp.concatenate([params["b_s0"], params["b_h0"]]
                         ).reshape(2 * Cx, 1).astype(jnp.float32)

    # conv1: block-diagonal fusion of the scale / shift branches.
    w1s_t = jnp.transpose(tapize(params["w_s1"]), (1, 0, 2))   # (Cx, 9, Cx)
    w1h_t = jnp.transpose(tapize(params["w_h1"]), (1, 0, 2))   # (Cx, 9, Cx)
    w1 = jnp.zeros((2 * Cx, 9, 2 * Cx), jnp.float32)
    w1 = w1.at[:Cx, :, :Cx].set(w1s_t)
    w1 = w1.at[Cx:, :, Cx:].set(w1h_t)
    w1 = w1.reshape(2 * Cx, 9 * 2 * Cx).astype(mxu_dtype)
    # fold scale_bias into the scale-branch bias (removes one VPU add / step).
    b1 = jnp.concatenate([params["b_s1"] + scale_bias, params["b_h1"]]
                         ).reshape(2 * Cx, 1).astype(jnp.float32)

    # per-tap zero-padding masks in the flattened layout, tiled per image.
    ys = jnp.arange(H)[:, None]
    xs = jnp.arange(W)[None, :]
    masks = []
    for ky in range(3):
        for kx in range(3):
            dy, dx = ky - 1, kx - 1
            m = (ys + dy >= 0) & (ys + dy < H) & (xs + dx >= 0) & (xs + dx < W)
            masks.append(m.reshape(HW))
    mask = jnp.tile(jnp.stack(masks, 0).astype(jnp.float32), (1, nb))  # (9, N)
    mask = mask[:, None, :]                                            # (9, 1, N)

    kernel = _make_sft_kernel(Cx, Cz, W, N, mxu_dtype)

    out_lane = pl.pallas_call(
        kernel,
        out_shape=jax.ShapeDtypeStruct((C, B * HW), inp.dtype),
        grid=(steps,),
        in_specs=[
            pl.BlockSpec((C, N), lambda b: (0, b)),               # input slab
            pl.BlockSpec((9, 1, N), lambda b: (0, 0, 0)),         # tap masks
            pl.BlockSpec((2 * Cx, 9 * Cz), lambda b: (0, 0)),     # conv0 weight
            pl.BlockSpec((2 * Cx, 1), lambda b: (0, 0)),          # conv0 bias
            pl.BlockSpec((2 * Cx, 18 * Cx), lambda b: (0, 0)),    # conv1 weight
            pl.BlockSpec((2 * Cx, 1), lambda b: (0, 0)),          # conv1 bias
        ],
        out_specs=pl.BlockSpec((C, N), lambda b: (0, b)),
        scratch_shapes=[
            pltpu.VMEM((9 * Cz, N), mxu_dtype),        # conv0 tap slab
            pltpu.VMEM((2 * Cx, N), jnp.float32),      # t0 (post leaky_relu)
            pltpu.VMEM((18 * Cx, N), mxu_dtype),       # conv1 tap slab
        ],
        compiler_params=pltpu.CompilerParams(
            dimension_semantics=("parallel",),
            vmem_limit_bytes=32 * 1024 * 1024),
    )(x_lane, mask, w0, b0, w1, b1)

    return out_lane.reshape(C, B, H, W).transpose(1, 0, 2, 3)


# ----------------------------- pure-JAX reference ----------------------------

def _conv3x3_ref(x, w, b):
    y = jax.lax.conv_general_dilated(
        x, w, window_strides=(1, 1), padding=((1, 1), (1, 1)),
        dimension_numbers=("NCHW", "OIHW", "NCHW"),
        precision=jax.lax.Precision.HIGHEST)
    return y + b[None, :, None, None]


def reference_forward(inp, params, n_feat_x, scale_bias):
    x, z = inp[:, :n_feat_x], inp[:, n_feat_x:]
    s = _conv3x3_ref(z, params["w_s0"], params["b_s0"])
    s = jnp.where(s >= 0, s, 0.1 * s)
    scale = _conv3x3_ref(s, params["w_s1"], params["b_s1"])
    h = _conv3x3_ref(z, params["w_h0"], params["b_h0"])
    h = jnp.where(h >= 0, h, 0.1 * h)
    shift = _conv3x3_ref(h, params["w_h1"], params["b_h1"])
    out = x * (scale + scale_bias) + shift
    return jnp.concatenate([out, z], axis=1)


# ----------------------------------- main ------------------------------------

if __name__ == "__main__":
    B, Cx, Cz, H, W = 2, 32, 32, 16, 16
    scale_bias = 1.0

    key = jax.random.PRNGKey(0)
    ks = jax.random.split(key, 9)
    inp = jax.random.normal(ks[0], (B, Cx + Cz, H, W), dtype=jnp.float32)

    def mk_w(k, co, ci):
        return 0.1 * jax.random.normal(k, (co, ci, 3, 3), dtype=jnp.float32)

    def mk_b(k, co):
        return 0.1 * jax.random.normal(k, (co,), dtype=jnp.float32)

    params = dict(
        w_s0=mk_w(ks[1], Cx, Cz), b_s0=mk_b(ks[2], Cx),
        w_s1=mk_w(ks[3], Cx, Cx), b_s1=mk_b(ks[4], Cx),
        w_h0=mk_w(ks[5], Cx, Cz), b_h0=mk_b(ks[6], Cx),
        w_h1=mk_w(ks[7], Cx, Cx), b_h1=mk_b(ks[8], Cx),
    )

    fwd = functools.partial(sft_layer, n_feat_x=Cx, n_feat_z=Cz,
                            scale_bias=scale_bias)
    out = jax.block_until_ready(fwd(inp, params))
    ref = reference_forward(inp, params, Cx, scale_bias)

    assert out.shape == (B, Cx + Cz, H, W), out.shape
    # the concatenated z half is a pure passthrough -> must be bit-exact
    assert bool(jnp.array_equal(out[:, Cx:], inp[:, Cx:]))
    # matmul operands are bf16 (MXU-native, per perf review) with f32
    # accumulation; tolerance vs. the f32 reference is widened accordingly.
    err = float(jnp.max(jnp.abs(out - ref)))
    assert jnp.allclose(out, ref, atol=5e-2, rtol=5e-2), f"max abs err {err}"

    print("KERNEL_OK")
</pallas_src>

<mosaic_0001>
module attributes {stable_mosaic.version = 11 : i64} {
  func.func @kernel(%arg0: i32, %arg1: memref<64x256xf32, #tpu.memory_space<vmem>>, %arg2: memref<9x1x256xf32, #tpu.memory_space<vmem>>, %arg3: memref<64x288xbf16, #tpu.memory_space<vmem>>, %arg4: memref<64x1xf32, #tpu.memory_space<vmem>>, %arg5: memref<64x576xbf16, #tpu.memory_space<vmem>>, %arg6: memref<64x1xf32, #tpu.memory_space<vmem>>, %arg7: memref<64x256xf32, #tpu.memory_space<vmem>>, %arg8: memref<288x256xbf16, #tpu.memory_space<vmem>>, %arg9: memref<64x256xf32, #tpu.memory_space<vmem>>, %arg10: memref<576x256xbf16, #tpu.memory_space<vmem>>) attributes {dimension_semantics = [#tpu.dimension_semantics<parallel>], iteration_bounds = array<i64: 2>, scalar_prefetch = 0 : i64, scratch_operands = 3 : i64, tpu.core_type = #tpu.core_type<tc>, window_params = [{transform_indices = @transform_0, window_bounds = array<i64: 64, 256>}, {pipeline_mode = #tpu.pipeline_mode<synchronous>, transform_indices = @transform_1, window_bounds = array<i64: 9, 1, 256>}, {pipeline_mode = #tpu.pipeline_mode<synchronous>, transform_indices = @transform_2, window_bounds = array<i64: 64, 288>}, {pipeline_mode = #tpu.pipeline_mode<synchronous>, transform_indices = @transform_3, window_bounds = array<i64: 64, 1>}, {pipeline_mode = #tpu.pipeline_mode<synchronous>, transform_indices = @transform_4, window_bounds = array<i64: 64, 576>}, {pipeline_mode = #tpu.pipeline_mode<synchronous>, transform_indices = @transform_5, window_bounds = array<i64: 64, 1>}, {transform_indices = @transform_6, window_bounds = array<i64: 64, 256>}]} {
    %c32 = arith.constant 32 : index
    %c0 = arith.constant 0 : index
    %0 = vector.load %arg1[%c32, %c0] : memref<64x256xf32, #tpu.memory_space<vmem>>, vector<32x256xf32>
    %c32_0 = arith.constant 32 : index
    %c0_1 = arith.constant 0 : index
    %1 = vector.load %arg7[%c32_0, %c0_1] : memref<64x256xf32, #tpu.memory_space<vmem>>, vector<32x256xf32>
    tpu.vector_store %arg7[%c32_0, %c0_1], %0 {strides = array<i32>} : memref<64x256xf32, #tpu.memory_space<vmem>>, vector<32x256xf32>,
    %c32_2 = arith.constant 32 : index
    %c0_3 = arith.constant 0 : index
    %2 = vector.load %arg1[%c32_2, %c0_3] : memref<64x256xf32, #tpu.memory_space<vmem>>, vector<32x256xf32>
    %c17_i32 = arith.constant 17 : i32
    %3 = tpu.dynamic_rotate %2 by %c17_i32 dim 1 : vector<32x256xf32>, i32 -> vector<32x256xf32>
    %c0_4 = arith.constant 0 : index
    %c0_5 = arith.constant 0 : index
    %c0_6 = arith.constant 0 : index
    %4 = vector.load %arg2[%c0_4, %c0_5, %c0_6] : memref<9x1x256xf32, #tpu.memory_space<vmem>>, vector<1x1x256xf32>
    %5 = vector.shape_cast %4 : vector<1x1x256xf32> to vector<1x256xf32>
    %6 = vector.broadcast %5 : vector<1x256xf32> to vector<32x256xf32>
    %7 = arith.mulf %3, %6 : vector<32x256xf32>
    %8 = arith.truncf %7 : vector<32x256xf32> to vector<32x256xbf16>
    %c0_7 = arith.constant 0 : index
    %c0_8 = arith.constant 0 : index
    %9 = vector.load %arg8[%c0_7, %c0_8] : memref<288x256xbf16, #tpu.memory_space<vmem>>, vector<32x256xbf16>
    tpu.vector_store %arg8[%c0_7, %c0_8], %8 {strides = array<i32>} : memref<288x256xbf16, #tpu.memory_space<vmem>>, vector<32x256xbf16>,
    %c16_i32 = arith.constant 16 : i32
    %10 = tpu.dynamic_rotate %2 by %c16_i32 dim 1 : vector<32x256xf32>, i32 -> vector<32x256xf32>
    %c1 = arith.constant 1 : index
    %c0_9 = arith.constant 0 : index
    %c0_10 = arith.constant 0 : index
    %11 = vector.load %arg2[%c1, %c0_9, %c0_10] : memref<9x1x256xf32, #tpu.memory_space<vmem>>, vector<1x1x256xf32>
    %12 = vector.shape_cast %11 : vector<1x1x256xf32> to vector<1x256xf32>
    %13 = vector.broadcast %12 : vector<1x256xf32> to vector<32x256xf32>
    %14 = arith.mulf %10, %13 : vector<32x256xf32>
    %15 = arith.truncf %14 : vector<32x256xf32> to vector<32x256xbf16>
    %c32_11 = arith.constant 32 : index
    %c0_12 = arith.constant 0 : index
    %16 = vector.load %arg8[%c32_11, %c0_12] : memref<288x256xbf16, #tpu.memory_space<vmem>>, vector<32x256xbf16>
    tpu.vector_store %arg8[%c32_11, %c0_12], %15 {strides = array<i32>} : memref<288x256xbf16, #tpu.memory_space<vmem>>, vector<32x256xbf16>,
    %c15_i32 = arith.constant 15 : i32
    %17 = tpu.dynamic_rotate %2 by %c15_i32 dim 1 : vector<32x256xf32>, i32 -> vector<32x256xf32>
    %c2 = arith.constant 2 : index
    %c0_13 = arith.constant 0 : index
    %c0_14 = arith.constant 0 : index
    %18 = vector.load %arg2[%c2, %c0_13, %c0_14] : memref<9x1x256xf32, #tpu.memory_space<vmem>>, vector<1x1x256xf32>
    %19 = vector.shape_cast %18 : vector<1x1x256xf32> to vector<1x256xf32>
    %20 = vector.broadcast %19 : vector<1x256xf32> to vector<32x256xf32>
    %21 = arith.mulf %17, %20 : vector<32x256xf32>
    %22 = arith.truncf %21 : vector<32x256xf32> to vector<32x256xbf16>
    %c64 = arith.constant 64 : index
    %c0_15 = arith.constant 0 : index
    %23 = vector.load %arg8[%c64, %c0_15] : memref<288x256xbf16, #tpu.memory_space<vmem>>, vector<32x256xbf16>
    tpu.vector_store %arg8[%c64, %c0_15], %22 {strides = array<i32>} : memref<288x256xbf16, #tpu.memory_space<vmem>>, vector<32x256xbf16>,
    %c1_i32 = arith.constant 1 : i32
    %24 = tpu.dynamic_rotate %2 by %c1_i32 dim 1 : vector<32x256xf32>, i32 -> vector<32x256xf32>
    %c3 = arith.constant 3 : index
    %c0_16 = arith.constant 0 : index
    %c0_17 = arith.constant 0 : index
    %25 = vector.load %arg2[%c3, %c0_16, %c0_17] : memref<9x1x256xf32, #tpu.memory_space<vmem>>, vector<1x1x256xf32>
    %26 = vector.shape_cast %25 : vector<1x1x256xf32> to vector<1x256xf32>
    %27 = vector.broadcast %26 : vector<1x256xf32> to vector<32x256xf32>
    %28 = arith.mulf %24, %27 : vector<32x256xf32>
    %29 = arith.truncf %28 : vector<32x256xf32> to vector<32x256xbf16>
    %c96 = arith.constant 96 : index
    %c0_18 = arith.constant 0 : index
    %30 = vector.load %arg8[%c96, %c0_18] : memref<288x256xbf16, #tpu.memory_space<vmem>>, vector<32x256xbf16>
    tpu.vector_store %arg8[%c96, %c0_18], %29 {strides = array<i32>} : memref<288x256xbf16, #tpu.memory_space<vmem>>, vector<32x256xbf16>,
    %31 = arith.truncf %2 : vector<32x256xf32> to vector<32x256xbf16>
    %c128 = arith.constant 128 : index
    %c0_19 = arith.constant 0 : index
    %32 = vector.load %arg8[%c128, %c0_19] : memref<288x256xbf16, #tpu.memory_space<vmem>>, vector<32x256xbf16>
    tpu.vector_store %arg8[%c128, %c0_19], %31 {strides = array<i32>} : memref<288x256xbf16, #tpu.memory_space<vmem>>, vector<32x256xbf16>,
    %c255_i32 = arith.constant 255 : i32
    %33 = tpu.dynamic_rotate %2 by %c255_i32 dim 1 : vector<32x256xf32>, i32 -> vector<32x256xf32>
    %c5 = arith.constant 5 : index
    %c0_20 = arith.constant 0 : index
    %c0_21 = arith.constant 0 : index
    %34 = vector.load %arg2[%c5, %c0_20, %c0_21] : memref<9x1x256xf32, #tpu.memory_space<vmem>>, vector<1x1x256xf32>
    %35 = vector.shape_cast %34 : vector<1x1x256xf32> to vector<1x256xf32>
    %36 = vector.broadcast %35 : vector<1x256xf32> to vector<32x256xf32>
    %37 = arith.mulf %33, %36 : vector<32x256xf32>
    %38 = arith.truncf %37 : vector<32x256xf32> to vector<32x256xbf16>
    %c160 = arith.constant 160 : index
    %c0_22 = arith.constant 0 : index
    %39 = vector.load %arg8[%c160, %c0_22] : memref<288x256xbf16, #tpu.memory_space<vmem>>, vector<32x256xbf16>
    tpu.vector_store %arg8[%c160, %c0_22], %38 {strides = array<i32>} : memref<288x256xbf16, #tpu.memory_space<vmem>>, vector<32x256xbf16>,
    %c241_i32 = arith.constant 241 : i32
    %40 = tpu.dynamic_rotate %2 by %c241_i32 dim 1 : vector<32x256xf32>, i32 -> vector<32x256xf32>
    %c6 = arith.constant 6 : index
    %c0_23 = arith.constant 0 : index
    %c0_24 = arith.constant 0 : index
    %41 = vector.load %arg2[%c6, %c0_23, %c0_24] : memref<9x1x256xf32, #tpu.memory_space<vmem>>, vector<1x1x256xf32>
    %42 = vector.shape_cast %41 : vector<1x1x256xf32> to vector<1x256xf32>
    %43 = vector.broadcast %42 : vector<1x256xf32> to vector<32x256xf32>
    %44 = arith.mulf %40, %43 : vector<32x256xf32>
    %45 = arith.truncf %44 : vector<32x256xf32> to vector<32x256xbf16>
    %c192 = arith.constant 192 : index
    %c0_25 = arith.constant 0 : index
    %46 = vector.load %arg8[%c192, %c0_25] : memref<288x256xbf16, #tpu.memory_space<vmem>>, vector<32x256xbf16>
    tpu.vector_store %arg8[%c192, %c0_25], %45 {strides = array<i32>} : memref<288x256xbf16, #tpu.memory_space<vmem>>, vector<32x256xbf16>,
    %c240_i32 = arith.constant 240 : i32
    %47 = tpu.dynamic_rotate %2 by %c240_i32 dim 1 : vector<32x256xf32>, i32 -> vector<32x256xf32>
    %c7 = arith.constant 7 : index
    %c0_26 = arith.constant 0 : index
    %c0_27 = arith.constant 0 : index
    %48 = vector.load %arg2[%c7, %c0_26, %c0_27] : memref<9x1x256xf32, #tpu.memory_space<vmem>>, vector<1x1x256xf32>
    %49 = vector.shape_cast %48 : vector<1x1x256xf32> to vector<1x256xf32>
    %50 = vector.broadcast %49 : vector<1x256xf32> to vector<32x256xf32>
    %51 = arith.mulf %47, %50 : vector<32x256xf32>
    %52 = arith.truncf %51 : vector<32x256xf32> to vector<32x256xbf16>
    %c224 = arith.constant 224 : index
    %c0_28 = arith.constant 0 : index
    %53 = vector.load %arg8[%c224, %c0_28] : memref<288x256xbf16, #tpu.memory_space<vmem>>, vector<32x256xbf16>
    tpu.vector_store %arg8[%c224, %c0_28], %52 {strides = array<i32>} : memref<288x256xbf16, #tpu.memory_space<vmem>>, vector<32x256xbf16>,
    %c239_i32 = arith.constant 239 : i32
    %54 = tpu.dynamic_rotate %2 by %c239_i32 dim 1 : vector<32x256xf32>, i32 -> vector<32x256xf32>
    %c8 = arith.constant 8 : index
    %c0_29 = arith.constant 0 : index
    %c0_30 = arith.constant 0 : index
    %55 = vector.load %arg2[%c8, %c0_29, %c0_30] : memref<9x1x256xf32, #tpu.memory_space<vmem>>, vector<1x1x256xf32>
    %56 = vector.shape_cast %55 : vector<1x1x256xf32> to vector<1x256xf32>
    %57 = vector.broadcast %56 : vector<1x256xf32> to vector<32x256xf32>
    %58 = arith.mulf %54, %57 : vector<32x256xf32>
    %59 = arith.truncf %58 : vector<32x256xf32> to vector<32x256xbf16>
    %c256 = arith.constant 256 : index
    %c0_31 = arith.constant 0 : index
    %60 = vector.load %arg8[%c256, %c0_31] : memref<288x256xbf16, #tpu.memory_space<vmem>>, vector<32x256xbf16>
    tpu.vector_store %arg8[%c256, %c0_31], %59 {strides = array<i32>} : memref<288x256xbf16, #tpu.memory_space<vmem>>, vector<32x256xbf16>,
    %c0_32 = arith.constant 0 : index
    %c0_33 = arith.constant 0 : index
    %61 = vector.load %arg3[%c0_32, %c0_33] : memref<64x288xbf16, #tpu.memory_space<vmem>>, vector<64x288xbf16>
    %c0_34 = arith.constant 0 : index
    %c0_35 = arith.constant 0 : index
    %62 = vector.load %arg8[%c0_34, %c0_35] : memref<288x256xbf16, #tpu.memory_space<vmem>>, vector<288x256xbf16>
    %cst = arith.constant dense<0.000000e+00> : vector<64x256xf32>
    %63 = tpu.matmul %61, %62, %cst {dimension_numbers = #tpu.dot_dimension_numbers<[1], [0], [0], [1], [0, 0, 1, 1], [], []>} : vector<64x288xbf16>, vector<288x256xbf16>, vector<64x256xf32> -> vector<64x256xf32>
    %c0_36 = arith.constant 0 : index
    %c0_37 = arith.constant 0 : index
    %64 = vector.load %arg4[%c0_36, %c0_37] : memref<64x1xf32, #tpu.memory_space<vmem>>, vector<64x1xf32>
    %65 = vector.broadcast %64 : vector<64x1xf32> to vector<64x256xf32>
    %66 = arith.addf %63, %65 : vector<64x256xf32>
    %cst_38 = arith.constant 0.000000e+00 : f32
    %67 = vector.broadcast %cst_38 : f32 to vector<64x256xf32>
    %68 = arith.cmpf oge, %66, %67 : vector<64x256xf32>
    %cst_39 = arith.constant 1.000000e-01 : f32
    %69 = vector.broadcast %cst_39 : f32 to vector<64x256xf32>
    %70 = arith.mulf %69, %66 : vector<64x256xf32>
    %71 = arith.select %68, %66, %70 : vector<64x256xi1>, vector<64x256xf32>
    %c0_40 = arith.constant 0 : index
    %c0_41 = arith.constant 0 : index
    %72 = vector.load %arg9[%c0_40, %c0_41] : memref<64x256xf32, #tpu.memory_space<vmem>>, vector<64x256xf32>
    tpu.vector_store %arg9[%c0_40, %c0_41], %71 {strides = array<i32>} : memref<64x256xf32, #tpu.memory_space<vmem>>, vector<64x256xf32>,
    %c0_42 = arith.constant 0 : index
    %c0_43 = arith.constant 0 : index
    %73 = vector.load %arg9[%c0_42, %c0_43] : memref<64x256xf32, #tpu.memory_space<vmem>>, vector<64x256xf32>
    %c17_i32_44 = arith.constant 17 : i32
    %74 = tpu.dynamic_rotate %73 by %c17_i32_44 dim 1 : vector<64x256xf32>, i32 -> vector<64x256xf32>
    %c0_45 = arith.constant 0 : index
    %c0_46 = arith.constant 0 : index
    %c0_47 = arith.constant 0 : index
    %75 = vector.load %arg2[%c0_45, %c0_46, %c0_47] : memref<9x1x256xf32, #tpu.memory_space<vmem>>, vector<1x1x256xf32>
    %76 = vector.shape_cast %75 : vector<1x1x256xf32> to vector<1x256xf32>
    %77 = vector.broadcast %76 : vector<1x256xf32> to vector<64x256xf32>
    %78 = arith.mulf %74, %77 : vector<64x256xf32>
    %79 = arith.truncf %78 : vector<64x256xf32> to vector<64x256xbf16>
    %c0_48 = arith.constant 0 : index
    %c0_49 = arith.constant 0 : index
    %80 = vector.load %arg10[%c0_48, %c0_49] : memref<576x256xbf16, #tpu.memory_space<vmem>>, vector<64x256xbf16>
    tpu.vector_store %arg10[%c0_48, %c0_49], %79 {strides = array<i32>} : memref<576x256xbf16, #tpu.memory_space<vmem>>, vector<64x256xbf16>,
    %c0_50 = arith.constant 0 : index
    %c0_51 = arith.constant 0 : index
    %81 = vector.load %arg9[%c0_50, %c0_51] : memref<64x256xf32, #tpu.memory_space<vmem>>, vector<64x256xf32>
    %c16_i32_52 = arith.constant 16 : i32
    %82 = tpu.dynamic_rotate %81 by %c16_i32_52 dim 1 : vector<64x256xf32>, i32 -> vector<64x256xf32>
    %c1_53 = arith.constant 1 : index
    %c0_54 = arith.constant 0 : index
    %c0_55 = arith.constant 0 : index
    %83 = vector.load %arg2[%c1_53, %c0_54, %c0_55] : memref<9x1x256xf32, #tpu.memory_space<vmem>>, vector<1x1x256xf32>
    %84 = vector.shape_cast %83 : vector<1x1x256xf32> to vector<1x256xf32>
    %85 = vector.broadcast %84 : vector<1x256xf32> to vector<64x256xf32>
    %86 = arith.mulf %82, %85 : vector<64x256xf32>
    %87 = arith.truncf %86 : vector<64x256xf32> to vector<64x256xbf16>
    %c64_56 = arith.constant 64 : index
    %c0_57 = arith.constant 0 : index
    %88 = vector.load %arg10[%c64_56, %c0_57] : memref<576x256xbf16, #tpu.memory_space<vmem>>, vector<64x256xbf16>
    tpu.vector_store %arg10[%c64_56, %c0_57], %87 {strides = array<i32>} : memref<576x256xbf16, #tpu.memory_space<vmem>>, vector<64x256xbf16>,
    %c0_58 = arith.constant 0 : index
    %c0_59 = arith.constant 0 : index
    %89 = vector.load %arg9[%c0_58, %c0_59] : memref<64x256xf32, #tpu.memory_space<vmem>>, vector<64x256xf32>
    %c15_i32_60 = arith.constant 15 : i32
    %90 = tpu.dynamic_rotate %89 by %c15_i32_60 dim 1 : vector<64x256xf32>, i32 -> vector<64x256xf32>
    %c2_61 = arith.constant 2 : index
    %c0_62 = arith.constant 0 : index
    %c0_63 = arith.constant 0 : index
    %91 = vector.load %arg2[%c2_61, %c0_62, %c0_63] : memref<9x1x256xf32, #tpu.memory_space<vmem>>, vector<1x1x256xf32>
    %92 = vector.shape_cast %91 : vector<1x1x256xf32> to vector<1x256xf32>
    %93 = vector.broadcast %92 : vector<1x256xf32> to vector<64x256xf32>
    %94 = arith.mulf %90, %93 : vector<64x256xf32>
    %95 = arith.truncf %94 : vector<64x256xf32> to vector<64x256xbf16>
    %c128_64 = arith.constant 128 : index
    %c0_65 = arith.constant 0 : index
    %96 = vector.load %arg10[%c128_64, %c0_65] : memref<576x256xbf16, #tpu.memory_space<vmem>>, vector<64x256xbf16>
    tpu.vector_store %arg10[%c128_64, %c0_65], %95 {strides = array<i32>} : memref<576x256xbf16, #tpu.memory_space<vmem>>, vector<64x256xbf16>,
    %c0_66 = arith.constant 0 : index
    %c0_67 = arith.constant 0 : index
    %97 = vector.load %arg9[%c0_66, %c0_67] : memref<64x256xf32, #tpu.memory_space<vmem>>, vector<64x256xf32>
    %c1_i32_68 = arith.constant 1 : i32
    %98 = tpu.dynamic_rotate %97 by %c1_i32_68 dim 1 : vector<64x256xf32>, i32 -> vector<64x256xf32>
    %c3_69 = arith.constant 3 : index
    %c0_70 = arith.constant 0 : index
    %c0_71 = arith.constant 0 : index
    %99 = vector.load %arg2[%c3_69, %c0_70, %c0_71] : memref<9x1x256xf32, #tpu.memory_space<vmem>>, vector<1x1x256xf32>
    %100 = vector.shape_cast %99 : vector<1x1x256xf32> to vector<1x256xf32>
    %101 = vector.broadcast %100 : vector<1x256xf32> to vector<64x256xf32>
    %102 = arith.mulf %98, %101 : vector<64x256xf32>
    %103 = arith.truncf %102 : vector<64x256xf32> to vector<64x256xbf16>
    %c192_72 = arith.constant 192 : index
    %c0_73 = arith.constant 0 : index
    %104 = vector.load %arg10[%c192_72, %c0_73] : memref<576x256xbf16, #tpu.memory_space<vmem>>, vector<64x256xbf16>
    tpu.vector_store %arg10[%c192_72, %c0_73], %103 {strides = array<i32>} : memref<576x256xbf16, #tpu.memory_space<vmem>>, vector<64x256xbf16>,
    %c0_74 = arith.constant 0 : index
    %c0_75 = arith.constant 0 : index
    %105 = vector.load %arg9[%c0_74, %c0_75] : memref<64x256xf32, #tpu.memory_space<vmem>>, vector<64x256xf32>
    %106 = arith.truncf %105 : vector<64x256xf32> to vector<64x256xbf16>
    %c256_76 = arith.constant 256 : index
    %c0_77 = arith.constant 0 : index
    %107 = vector.load %arg10[%c256_76, %c0_77] : memref<576x256xbf16, #tpu.memory_space<vmem>>, vector<64x256xbf16>
    tpu.vector_store %arg10[%c256_76, %c0_77], %106 {strides = array<i32>} : memref<576x256xbf16, #tpu.memory_space<vmem>>, vector<64x256xbf16>,
    %c0_78 = arith.constant 0 : index
    %c0_79 = arith.constant 0 : index
    %108 = vector.load %arg9[%c0_78, %c0_79] : memref<64x256xf32, #tpu.memory_space<vmem>>, vector<64x256xf32>
    %c255_i32_80 = arith.constant 255 : i32
    %109 = tpu.dynamic_rotate %108 by %c255_i32_80 dim 1 : vector<64x256xf32>, i32 -> vector<64x256xf32>
    %c5_81 = arith.constant 5 : index
    %c0_82 = arith.constant 0 : index
    %c0_83 = arith.constant 0 : index
    %110 = vector.load %arg2[%c5_81, %c0_82, %c0_83] : memref<9x1x256xf32, #tpu.memory_space<vmem>>, vector<1x1x256xf32>
    %111 = vector.shape_cast %110 : vector<1x1x256xf32> to vector<1x256xf32>
    %112 = vector.broadcast %111 : vector<1x256xf32> to vector<64x256xf32>
    %113 = arith.mulf %109, %112 : vector<64x256xf32>
    %114 = arith.truncf %113 : vector<64x256xf32> to vector<64x256xbf16>
    %c320 = arith.constant 320 : index
    %c0_84 = arith.constant 0 : index
    %115 = vector.load %arg10[%c320, %c0_84] : memref<576x256xbf16, #tpu.memory_space<vmem>>, vector<64x256xbf16>
    tpu.vector_store %arg10[%c320, %c0_84], %114 {strides = array<i32>} : memref<576x256xbf16, #tpu.memory_space<vmem>>, vector<64x256xbf16>,
    %c0_85 = arith.constant 0 : index
    %c0_86 = arith.constant 0 : index
    %116 = vector.load %arg9[%c0_85, %c0_86] : memref<64x256xf32, #tpu.memory_space<vmem>>, vector<64x256xf32>
    %c241_i32_87 = arith.constant 241 : i32
    %117 = tpu.dynamic_rotate %116 by %c241_i32_87 dim 1 : vector<64x256xf32>, i32 -> vector<64x256xf32>
    %c6_88 = arith.constant 6 : index
    %c0_89 = arith.constant 0 : index
    %c0_90 = arith.constant 0 : index
    %118 = vector.load %arg2[%c6_88, %c0_89, %c0_90] : memref<9x1x256xf32, #tpu.memory_space<vmem>>, vector<1x1x256xf32>
    %119 = vector.shape_cast %118 : vector<1x1x256xf32> to vector<1x256xf32>
    %120 = vector.broadcast %119 : vector<1x256xf32> to vector<64x256xf32>
    %121 = arith.mulf %117, %120 : vector<64x256xf32>
    %122 = arith.truncf %121 : vector<64x256xf32> to vector<64x256xbf16>
    %c384 = arith.constant 384 : index
    %c0_91 = arith.constant 0 : index
    %123 = vector.load %arg10[%c384, %c0_91] : memref<576x256xbf16, #tpu.memory_space<vmem>>, vector<64x256xbf16>
    tpu.vector_store %arg10[%c384, %c0_91], %122 {strides = array<i32>} : memref<576x256xbf16, #tpu.memory_space<vmem>>, vector<64x256xbf16>,
    %c0_92 = arith.constant 0 : index
    %c0_93 = arith.constant 0 : index
    %124 = vector.load %arg9[%c0_92, %c0_93] : memref<64x256xf32, #tpu.memory_space<vmem>>, vector<64x256xf32>
    %c240_i32_94 = arith.constant 240 : i32
    %125 = tpu.dynamic_rotate %124 by %c240_i32_94 dim 1 : vector<64x256xf32>, i32 -> vector<64x256xf32>
    %c7_95 = arith.constant 7 : index
    %c0_96 = arith.constant 0 : index
    %c0_97 = arith.constant 0 : index
    %126 = vector.load %arg2[%c7_95, %c0_96, %c0_97] : memref<9x1x256xf32, #tpu.memory_space<vmem>>, vector<1x1x256xf32>
    %127 = vector.shape_cast %126 : vector<1x1x256xf32> to vector<1x256xf32>
    %128 = vector.broadcast %127 : vector<1x256xf32> to vector<64x256xf32>
    %129 = arith.mulf %125, %128 : vector<64x256xf32>
    %130 = arith.truncf %129 : vector<64x256xf32> to vector<64x256xbf16>
    %c448 = arith.constant 448 : index
    %c0_98 = arith.constant 0 : index
    %131 = vector.load %arg10[%c448, %c0_98] : memref<576x256xbf16, #tpu.memory_space<vmem>>, vector<64x256xbf16>
    tpu.vector_store %arg10[%c448, %c0_98], %130 {strides = array<i32>} : memref<576x256xbf16, #tpu.memory_space<vmem>>, vector<64x256xbf16>,
    %c0_99 = arith.constant 0 : index
    %c0_100 = arith.constant 0 : index
    %132 = vector.load %arg9[%c0_99, %c0_100] : memref<64x256xf32, #tpu.memory_space<vmem>>, vector<64x256xf32>
    %c239_i32_101 = arith.constant 239 : i32
    %133 = tpu.dynamic_rotate %132 by %c239_i32_101 dim 1 : vector<64x256xf32>, i32 -> vector<64x256xf32>
    %c8_102 = arith.constant 8 : index
    %c0_103 = arith.constant 0 : index
    %c0_104 = arith.constant 0 : index
    %134 = vector.load %arg2[%c8_102, %c0_103, %c0_104] : memref<9x1x256xf32, #tpu.memory_space<vmem>>, vector<1x1x256xf32>
    %135 = vector.shape_cast %134 : vector<1x1x256xf32> to vector<1x256xf32>
    %136 = vector.broadcast %135 : vector<1x256xf32> to vector<64x256xf32>
    %137 = arith.mulf %133, %136 : vector<64x256xf32>
    %138 = arith.truncf %137 : vector<64x256xf32> to vector<64x256xbf16>
    %c512 = arith.constant 512 : index
    %c0_105 = arith.constant 0 : index
    %139 = vector.load %arg10[%c512, %c0_105] : memref<576x256xbf16, #tpu.memory_space<vmem>>, vector<64x256xbf16>
    tpu.vector_store %arg10[%c512, %c0_105], %138 {strides = array<i32>} : memref<576x256xbf16, #tpu.memory_space<vmem>>, vector<64x256xbf16>,
    %c0_106 = arith.constant 0 : index
    %c0_107 = arith.constant 0 : index
    %140 = vector.load %arg5[%c0_106, %c0_107] : memref<64x576xbf16, #tpu.memory_space<vmem>>, vector<64x576xbf16>
    %c0_108 = arith.constant 0 : index
    %c0_109 = arith.constant 0 : index
    %141 = vector.load %arg10[%c0_108, %c0_109] : memref<576x256xbf16, #tpu.memory_space<vmem>>, vector<576x256xbf16>
    %cst_110 = arith.constant dense<0.000000e+00> : vector<64x256xf32>
    %142 = tpu.matmul %140, %141, %cst_110 {dimension_numbers = #tpu.dot_dimension_numbers<[1], [0], [0], [1], [0, 0, 1, 1], [], []>} : vector<64x576xbf16>, vector<576x256xbf16>, vector<64x256xf32> -> vector<64x256xf32>
    %c0_111 = arith.constant 0 : index
    %c0_112 = arith.constant 0 : index
    %143 = vector.load %arg6[%c0_111, %c0_112] : memref<64x1xf32, #tpu.memory_space<vmem>>, vector<64x1xf32>
    %144 = vector.broadcast %143 : vector<64x1xf32> to vector<64x256xf32>
    %145 = arith.addf %142, %144 : vector<64x256xf32>
    %146 = vector.extract_strided_slice %145 {offsets = [0, 0], sizes = [32, 256], strides = [1, 1]} : vector<64x256xf32> to vector<32x256xf32>
    %147 = vector.extract_strided_slice %145 {offsets = [32, 0], sizes = [32, 256], strides = [1, 1]} : vector<64x256xf32> to vector<32x256xf32>
    %c0_113 = arith.constant 0 : index
    %c0_114 = arith.constant 0 : index
    %148 = vector.load %arg1[%c0_113, %c0_114] : memref<64x256xf32, #tpu.memory_space<vmem>>, vector<32x256xf32>
    %149 = arith.mulf %148, %146 : vector<32x256xf32>
    %150 = arith.addf %149, %147 : vector<32x256xf32>
    %c0_115 = arith.constant 0 : index
    %c0_116 = arith.constant 0 : index
    %151 = vector.load %arg7[%c0_115, %c0_116] : memref<64x256xf32, #tpu.memory_space<vmem>>, vector<32x256xf32>
    tpu.vector_store %arg7[%c0_115, %c0_116], %150 {strides = array<i32>} : memref<64x256xf32, #tpu.memory_space<vmem>>, vector<32x256xf32>,
    return
  }
  func.func @transform_0(%arg0: i32) -> (i32, i32) {
    %c0_i32 = arith.constant 0 : i32
    %c0_i32_0 = arith.constant 0 : i32
    return %c0_i32, %arg0 : i32, i32
  }
  func.func @transform_1(%arg0: i32) -> (i32, i32, i32) {
    %c0_i32 = arith.constant 0 : i32
    %c0_i32_0 = arith.constant 0 : i32
    %c0_i32_1 = arith.constant 0 : i32
    %c0_i32_2 = arith.constant 0 : i32
    return %c0_i32, %c0_i32_0, %c0_i32_1 : i32, i32, i32
  }
  func.func @transform_2(%arg0: i32) -> (i32, i32) {
    %c0_i32 = arith.constant 0 : i32
    %c0_i32_0 = arith.constant 0 : i32
    %c0_i32_1 = arith.constant 0 : i32
    return %c0_i32, %c0_i32_0 : i32, i32
  }
  func.func @transform_3(%arg0: i32) -> (i32, i32) {
    %c0_i32 = arith.constant 0 : i32
    %c0_i32_0 = arith.constant 0 : i32
    %c0_i32_1 = arith.constant 0 : i32
    return %c0_i32, %c0_i32_0 : i32, i32
  }
  func.func @transform_4(%arg0: i32) -> (i32, i32) {
    %c0_i32 = arith.constant 0 : i32
    %c0_i32_0 = arith.constant 0 : i32
    %c0_i32_1 = arith.constant 0 : i32
    return %c0_i32, %c0_i32_0 : i32, i32
  }
  func.func @transform_5(%arg0: i32) -> (i32, i32) {
    %c0_i32 = arith.constant 0 : i32
    %c0_i32_0 = arith.constant 0 : i32
    %c0_i32_1 = arith.constant 0 : i32
    return %c0_i32, %c0_i32_0 : i32, i32
  }
  func.func @transform_6(%arg0: i32) -> (i32, i32) {
    %c0_i32 = arith.constant 0 : i32
    %c0_i32_0 = arith.constant 0 : i32
    return %c0_i32, %arg0 : i32, i32
  }
}

</mosaic_0001>

<bundles_post_ra>
// kernel: tpu_custom_call.1
= control target key start
LH: loop header
LB: loop body
LE: loop exit
PB: predicated region body
PF: predicated region fallthrough
CT: control target
= control target key end

     0   :  { %s6048_s0 = inlined_call_operand.hbm [shape: f32[64,512], index: 0, kind: input, shape index: {}]   ;;  %s6049_s1 = inlined_call_operand.vmem [shape: f32[9,1,256], index: 1, kind: input, shape index: {}]   ;;  %s6050_s2 = inlined_call_operand.vmem [shape: bf16[64,288], index: 2, kind: input, shape index: {}]   ;;  %s6051_s3 = inlined_call_operand.vmem [shape: f32[64,1], index: 3, kind: input, shape index: {}]   ;;  %s6052_s4 = inlined_call_operand.hbm [shape: bf16[64,576], index: 4, kind: input, shape index: {}]   ;;  %s6053_s5 = inlined_call_operand.vmem [shape: f32[64,1], index: 5, kind: input, shape index: {}]   ;;  %s6054_s6 = inlined_call_operand.hbm [shape: f32[64,512], index: 6, kind: output, shape index: {}]  }
   0x1   :  { %6076 = sst [smem:[#allocation28_spill]] %s6052_s4 }
   0x2   :  { %11 = vsyncpa [#allocation6], 0 }
   0x3   :  { %13 = vsyncpa [#allocation6 + $0x1], 0 }
   0x4   :  { %14 = vsyncpa [#allocation9], 0 }
   0x5   :  { %15 = vsyncpa [#allocation7], 0 }
   0x6   :  { %17 = vsyncpa [#allocation7 + $0x1], 0  ;;  %s4194_s21 = smov 0   ;;  %s4196_s22 = smov 0  }
   0x7   :  { %s4198_s23 = smov 0   ;;  %s4200_s24 = smov 0  }
   0x8 LB: > { %s4215_s25 = sadd.s32 4294967295, %s4140_s24   ;;  %s3186_s26 = sadd.s32 4294967294, %s4140_s24   ;;  %s4140_s24 = sphi %s4200_s24, %s6119_s24   ;;  %s4136_s23 = sphi %s4198_s23, %s6118_s23   ;;  %s4132_s22 = sphi %s4196_s22, %s6117_s22   ;;  %s4128_s21 = sphi %s4194_s21, %s6116_s21  }
   0x9   : > { %p43_p0 = scmp.ne.s32.totalorder %s4132_s22, %s4128_s21  ;;  %p44_p1 = scmp.eq.s32.totalorder %s4215_s25, 0 }
   0xa   : > { %p172_p2 = scmp.eq.s32.totalorder %s4215_s25, 1  ;;  %p178_p3 = scmp.eq.s32.totalorder %s3186_s26, 1 }
   0xb   : > { %p4224_p4 = por %p44_p1, %p43_p0  ;;  %p3187_p5 = scmp.ge.s32.totalorder %s4140_s24, 1 }
   0xc   : > { %p4229_p6 = por %p178_p3, %p43_p0  ;;  %p185_p7 = scmp.lt.s32.totalorder %s4140_s24, 3 }
   0xd   : > { %s6079_s4 = sld [smem:[#allocation28_spill]]  ;;  %s4142_s9 = smov [#allocation8]  }
   0xe   : > { %p4237_p8 = pnand %p3187_p5, %p185_p7  ;;  %s207_s10 = sshll.u32 %s4142_s9, 4  ;;  %s208_s10 = int_to_ptr.vmem [resolvable:$true] %s207_s10 }
   0xf   : > { %s4247_s11 = sadd.s32 1, %s4140_s24   ;;  %s4143_s12 = smov 320  }
  0x10   : > { %p3942_p9 = pneg %p4237_p8  ;;  %s4144_s13 = smov 20  }
  0x11   : > { %s27_s14 = ssub.s32 %s4140_s24, %s4247_s11  ;;  %s30_s15 = sadd.s32 1, %s4136_s23 }
  0x12   : > { %p3943_p10 = pnand %p3942_p9, %p44_p1  ;;  %p28_p12 = scmp.eq.s32.totalorder %s27_s14, 0 }
  0x13   : > { %s205_s7 = sshll.u32 %s6079_s4, 4  ;;  %p37_p13 = scmp.ne.s32.totalorder %s4136_s23, %s4132_s22  ;;  %s206_s7 = int_to_ptr.hbm [resolvable:$true] %s205_s7 }
  0x14   : > { %3945 = dma.hbm_to_vmem [thread:$0]  (!%p3943_p10), %s206_s7, 2560, %s208_s10, [#allocation9], %s4143_s12, %s4143_s12, %s4144_s13  }
  0x15   : > { %p38_p0 = scmp.eq.s32.totalorder %s4140_s24, 0  ;;  %p3955_p3 = scmp.lt.s32.totalorder %s4140_s24, 2 }
  0x16   : > { %s4257_s16 = scalar_select %p28_p12, %s4136_s23, %s30_s15  }
  0x17   : > { %p39_p5 = por %p38_p0, %p37_p13  ;;  %p4261_p7 = por %p172_p2, %p37_p13 }
  0x18   : > { %s224_s18 = sand.u32 1, %s4136_s23   ;;  %s3792_s19 = sshll.u32 %s4140_s24, 4 }
  0x19   : > { %s3190_s20 = sshll.u32 %s224_s18, 7  ;;  %s233_s30 = scalar_lea.hbm %s6048_s0, %s3792_s19 }
  0x1a   : > { %s234_s7 = sshll.u32 %s233_s30, 4  ;;  %s228_s9 = scalar_lea.vmem [#allocation5], %s3190_s20  ;;  %s235_s7 = int_to_ptr.hbm [resolvable:$true] %s234_s7 }
  0x1b   : > { %s236_s10 = sshll.u32 %s228_s9, 4  ;;  %p4272_p9 = pnand %p3955_p3, %p39_p5  ;;  %s237_s10 = int_to_ptr.vmem [resolvable:$true] %s236_s10 }
  0x1c   : > { %s225_s13 = scalar_lea.sflag [#allocation6], %s224_s18  ;;  %s4040_s14 = sshra.s32 %s235_s7, 4  ;;  %s4041_s14 = int_to_ptr.hbm [resolvable:$true] %s4040_s14 }
  0x1d   : > { %s4042_s15 = scalar_lea.hbm %s4041_s14, 128  ;;  %p4044_p10 = pneg %p4272_p9 }
  0x1e   : > { %p4043_p2 = scmp.ne.s32.totalorder %s4041_s14, %s4042_s15  ;;  %s4047_s26 = scalar_lea.hbm %s6048_s0, 256 }
  0x1f   : > { %p4048_p0 = scmp.lt.s32.totalorder %s4041_s14, %s6048_s0  ;;  %p4049_p3 = scmp.lt.s32.totalorder %s4047_s26, %s4042_s15 }
  0x20   : > { %p4045_p12 = pnand %p4044_p10, %p4043_p2 }
  0x21   : > { %p4050_p5 = por %p4049_p3, %p4048_p0 }
  0x22   : > { %p4046_p13 = pneg %p4045_p12 }
  0x24   : > { %p4051_p11 = pnand %p4050_p5, %p4046_p13 }
  0x26   : > { %4054 = shalt.err (!%p4051_p11)
}
  0x27   : > { %s4145_s18 = smov 512   ;;  %s4146_s9 = smov 256  }
  0x28   : > { %s4147_s4 = smov 16   ;;  %248 = sbr.rel (%p4237_p8) target bundleno = 1220 (0x4c4), region = 44 }
  0x29   : > { %3949 = dma.hbm_to_vmem [thread:$0]  (!%p4272_p9), %s235_s7, 2048, %s237_s10, %s225_s13, %s4145_s18, %s4146_s9, %s4147_s4  }
  0x2d   : > { %s4289_s19 = sand.u32 1, %s4132_s22  }
  0x2e   : > { %s6055_s14 = sshll.u32 %s4289_s19, 7  ;;  %s251_s15 = scalar_lea.sflag [#allocation6], %s4289_s19 }
  0x2f   : > { %s4295_s20 = scalar_lea.vmem [#allocation5], %s6055_s14 }
  0x30   : > { %4115 = dma.done.wait (%p4224_p4), %s251_s15, 2048  }
  0x31   : > { %4117 = vsyncadd (%p4224_p4), %s251_s15, 4294965248 }
  0x32   : > { %4119 = dma.done.wait (%p44_p1), [#allocation9], 2560  }
  0x33   : > { %4121 = vsyncadd (%p44_p1), [#allocation9], 4294964736  ;;  %v4306_v0 = vld [vmem:[%s4295_s20 + $0x68] sm:$0xff]  ;;  %v4309_v1 = vld [vmem:[%s4295_s20 + $0x60] sm:$0xff]  ;;  %s4148_s4 = smov 1   ;;  %s4149_s27 = smov 15   ;;  %v332_v10 = vlaneseq }
  0x34   : > { %473 = vrot.lane.b32.xlu1 %v4306_v0, %s4148_s4  ;;  %465 = vrot.lane.b32.xlu0 %v4309_v1, %s4148_s4  ;;  %v4316_v2 = vld [vmem:[%s4295_s20 + $0x40] sm:$0xff]  ;;  %v4321_v3 = vld [vmem:[%s4295_s20 + $0x78] sm:$0xff]  ;;  %s4150_s8 = smov 16   ;;  %s6056_s7 = smov 111   ;;  %vm1049_vm5 = vcmask 261120  }
  0x35   : > { %461 = vrot.lane.b32.xlu2 %v4316_v2, %s4148_s4  ;;  %v4324_v4 = vld [vmem:[%s4295_s20 + $0x70] sm:$0xff]  ;;  %v4336_v6 = vld [vmem:[%s4295_s20 + $0x58] sm:$0xff]  ;;  %v4339_v7 = vld [vmem:[%s4295_s20 + $0x48] sm:$0xff]  ;;  %s4152_s10 = smov 17   ;;  %s6060_s12 = smov 112   ;;  %v4413_v11 = vand.u32 127, %v332_v10 }
  0x36   : > { %v4327_v5 = vld [vmem:[%s4295_s20 + $0x50] sm:$0xff]  ;;  %v3199_v13 = vld [vmem:[%s6049_s1 + $0x6] sm:$0x3]  ;;  %s6058_s29 = smov 113   ;;  %v3198_v43 = vld [vmem:[%s6049_s1 + $0x4] sm:$0x3] }
  0x37   : > { %vm477_vm0 = vcmp.lt.s32.totalorder %v4413_v11, 1  ;;  %v489_v14 = vperm.slane %v3199_v13, 0  ;;  %v490_v15 = vperm.slane %v3199_v13, 1  ;;  %vm429_vm1 = vcmp.lt.s32.totalorder %v4413_v11, 15  ;;  %s4155_s9 = smov 127   ;;  %s6083_s26 = smov 112  }
  0x38   : > { %v441_v52 = vperm.slane %v3198_v43, 0  ;;  %v442_v53 = vperm.slane %v3198_v43, 1  ;;  %vm381_vm2 = vcmp.lt.s32.totalorder %v4413_v11, 16  ;;  %vm677_vm3 = vcmp.lt.s32.totalorder %v4413_v11, 111  ;;  %s6098_s15 = smov 113   ;;  %s6099_s13 = smov 111  }
  0x39   : > { %vm334_vm4 = vcmp.lt.s32.totalorder %v4413_v11, 17  ;;  %vm629_vm6 = vcmp.lt.s32.totalorder %v4413_v11, 112  ;;  %vm581_vm7 = vcmp.lt.s32.totalorder %v4413_v11, 113  ;;  %vm533_vm8 = vcmp.lt.s32.totalorder %v4413_v11, 127 }
  0x3c   : > { %475 = vrot.lane.b32.xlu1 %v4321_v3, %s4148_s4  ;;  %467 = vrot.lane.b32.xlu0 %v4324_v4, %s4148_s4 }
  0x3d   : > { %463 = vrot.lane.b32.xlu2 %v4327_v5, %s4148_s4 }
  0x44   : > { %471 = vrot.lane.b32.xlu1 %v4336_v6, %s4148_s4  ;;  %469 = vrot.lane.b32.xlu0 %v4339_v7, %s4148_s4 }
  0x45   : > { %417 = vrot.lane.b32.xlu2 %v4309_v1, %s4149_s27 }
  0x4c   : > { %425 = vrot.lane.b32.xlu1 %v4306_v0, %s4149_s27  ;;  %419 = vrot.lane.b32.xlu0 %v4324_v4, %s4149_s27 }
  0x4d   : > { %427 = vrot.lane.b32.xlu2 %v4321_v3, %s4149_s27 }
  0x54   : > { %415 = vrot.lane.b32.xlu1 %v4327_v5, %s4149_s27  ;;  %413 = vrot.lane.b32.xlu0 %v4316_v2, %s4149_s27 }
  0x55   : > { %421 = vrot.lane.b32.xlu2 %v4339_v7, %s4149_s27 }
  0x5c   : > { %369 = vrot.lane.b32.xlu1 %v4309_v1, %s4150_s8  ;;  %423 = vrot.lane.b32.xlu0 %v4336_v6, %s4149_s27 }
  0x5d   : > { %371 = vrot.lane.b32.xlu2 %v4324_v4, %s4150_s8 }
  0x64   : > { %379 = vrot.lane.b32.xlu1 %v4321_v3, %s4150_s8  ;;  %377 = vrot.lane.b32.xlu0 %v4306_v0, %s4150_s8 }
  0x65   : > { %665 = vrot.lane.b32.xlu2 %v4309_v1, %s6056_s7 }
  0x6c   : > { %673 = vrot.lane.b32.xlu1 %v4306_v0, %s6056_s7  ;;  %667 = vrot.lane.b32.xlu0 %v4324_v4, %s6056_s7 }
  0x6d   : > { %675 = vrot.lane.b32.xlu2 %v4321_v3, %s6056_s7 }
  0x74   : > { %367 = vrot.lane.b32.xlu1 %v4327_v5, %s4150_s8  ;;  %365 = vrot.lane.b32.xlu0 %v4316_v2, %s4150_s8 }
  0x75   : > { %373 = vrot.lane.b32.xlu2 %v4339_v7, %s4150_s8 }
  0x7c   : > { %661 = vrot.lane.b32.xlu1 %v4316_v2, %s6056_s7  ;;  %375 = vrot.lane.b32.xlu0 %v4336_v6, %s4150_s8 }
  0x7d   : > { %663 = vrot.lane.b32.xlu2 %v4327_v5, %s6056_s7 }
  0x84   : > { %671 = vrot.lane.b32.xlu1 %v4336_v6, %s6056_s7  ;;  %669 = vrot.lane.b32.xlu0 %v4339_v7, %s6056_s7 }
  0x85   : > { %320 = vrot.lane.b32.xlu2 %v4309_v1, %s4152_s10 }
  0x8c   : > { %328 = vrot.lane.b32.xlu1 %v4306_v0, %s4152_s10  ;;  %322 = vrot.lane.b32.xlu0 %v4324_v4, %s4152_s10 }
  0x8d   : > { %330 = vrot.lane.b32.xlu2 %v4321_v3, %s4152_s10 }
  0x8f   : > { %v462_v8 = vpop.permute.xlu2 %461 }
  0x94   : > { %318 = vrot.lane.b32.xlu1 %v4327_v5, %s4152_s10  ;;  %316 = vrot.lane.b32.xlu0 %v4316_v2, %s4152_s10 }
  0x95   : > { %324 = vrot.lane.b32.xlu2 %v4339_v7, %s4152_s10 }
  0x97   : > { %v464_v9 = vpop.permute.xlu2 %463 }
  0x9c   : > { %617 = vrot.lane.b32.xlu1 %v4309_v1, %s6060_s12  ;;  %326 = vrot.lane.b32.xlu0 %v4336_v6, %s4152_s10 }
  0x9d   : > { %619 = vrot.lane.b32.xlu2 %v4324_v4, %s6060_s12 }
  0x9f   : > { %v4415_v12 = vpop.permute.xlu2 %417 }
  0xa4   : > { %627 = vrot.lane.b32.xlu1 %v4321_v3, %s6060_s12  ;;  %625 = vrot.lane.b32.xlu0 %v4306_v0, %s6060_s12 }
  0xa5   : > { %613 = vrot.lane.b32.xlu2 %v4316_v2, %s6060_s12 }
  0xa6   : > { %v474_v16 = vpop.permute.xlu1 %473  ;;  %v466_v17 = vpop.permute.xlu0 %465 }
  0xa7   : > { %v480_v18 = vsel %vm477_vm0, %v466_v17, %v474_v16  ;;  %v484_v19 = vsel %vm477_vm0, %v474_v16, %v466_v17  ;;  %v428_v22 = vpop.permute.xlu2 %427 }
  0xa8   : > { %v497_v20 = vmul.f32 %v489_v14, %v484_v19  ;;  %v498_v21 = vmul.f32 %v490_v15, %v480_v18 }
  0xaa   : > { %v503_v23 = vpack.c.bf16 %v498_v21, %v497_v20 }
  0xac   : > { %507 = vst [vmem:[#allocation2 + $0x70] sm:$0xff] %v503_v23  ;;  %621 = vrot.lane.b32.xlu1 %v4339_v7, %s6060_s12  ;;  %615 = vrot.lane.b32.xlu0 %v4327_v5, %s6060_s12 }
  0xad   : > { %623 = vrot.lane.b32.xlu2 %v4336_v6, %s6060_s12 }
  0xae   : > { %v476_v24 = vpop.permute.xlu1 %475  ;;  %v468_v25 = vpop.permute.xlu0 %467 }
  0xaf   : > { %v481_v26 = vsel %vm477_vm0, %v468_v25, %v476_v24  ;;  %v485_v27 = vsel %vm477_vm0, %v476_v24, %v468_v25  ;;  %v4441_v30 = vpop.permute.xlu2 %421 }
  0xb0   : > { %v499_v28 = vmul.f32 %v489_v14, %v485_v27  ;;  %v500_v29 = vmul.f32 %v490_v15, %v481_v26 }
  0xb2   : > { %v504_v31 = vpack.c.bf16 %v500_v29, %v499_v28 }
  0xb3   : > { %v3310_v46 = vld [vmem:[#allocation2 + $0x70] sm:$0xf]  ;;  %v3819_v48 = vld [vmem:[#allocation2 + $0x74] sm:$0xf] }
  0xb4   : > { %508 = vst [vmem:[#allocation2 + $0x78] sm:$0xff] %v504_v31  ;;  %571 = vrot.lane.b32.xlu1 %v4324_v4, %s6058_s29  ;;  %569 = vrot.lane.b32.xlu0 %v4309_v1, %s6058_s29 }
  0xb5   : > { %577 = vrot.lane.b32.xlu2 %v4306_v0, %s6058_s29 }
  0xb6   : > { %v472_v32 = vpop.permute.xlu1 %471  ;;  %v470_v33 = vpop.permute.xlu0 %469 }
  0xb7   : > { %v479_v34 = vsel %vm477_vm0, %v464_v9, %v472_v32  ;;  %v483_v35 = vsel %vm477_vm0, %v472_v32, %v464_v9  ;;  %v478_v36 = vsel %vm477_vm0, %v462_v8, %v470_v33  ;;  %v482_v37 = vsel %vm477_vm0, %v470_v33, %v462_v8  ;;  %v4457_v42 = vpop.permute.xlu2 %371 }
  0xb8   : > { %v495_v38 = vmul.f32 %v489_v14, %v483_v35  ;;  %v496_v39 = vmul.f32 %v490_v15, %v479_v34  ;;  %v493_v40 = vmul.f32 %v489_v14, %v482_v37  ;;  %v494_v41 = vmul.f32 %v490_v15, %v478_v36 }
  0xba   : > { %v502_v44 = vpack.c.bf16 %v496_v39, %v495_v38  ;;  %v501_v45 = vpack.c.bf16 %v494_v41, %v493_v40  ;;  %v3197_v39 = vld [vmem:[%s6049_s1 + $0x2] sm:$0x3] }
  0xbb   : > { %v3820_v47 = vld [vmem:[#allocation2 + $0x74] sm:$0xf0]  ;;  %v3312_v49 = vld [vmem:[#allocation2 + $0x78] sm:$0xf0]  ;;  %v4513_v41 = vperm.slane %v3197_v39, 0  ;;  %v4515_v43 = vperm.slane %v3197_v39, 1 }
  0xbc   : > { %506 = vst [vmem:[#allocation2 + $0x68] sm:$0xff] %v502_v44  ;;  %565 = vrot.lane.b32.xlu1 %v4316_v2, %s6058_s29  ;;  %579 = vrot.lane.b32.xlu0 %v4321_v3, %s6058_s29  ;;  %v3311_v50 = vor.u32 %v3820_v47, %v3310_v46  ;;  %v3315_v51 = vor.u32 %v3819_v48, %v3312_v49 }
  0xbd   : > { %505 = vst [vmem:[#allocation2 + $0x60] sm:$0xff] %v501_v45  ;;  %567 = vrot.lane.b32.xlu2 %v4327_v5, %s6058_s29 }
  0xbe   : > { %1062 = vmatpush.bf16.msra.mxu0 %v3311_v50  ;;  %1149 = vmatpush.bf16.msra.mxu3 %v3315_v51  ;;  %v426_v54 = vpop.permute.xlu1 %425  ;;  %v420_v55 = vpop.permute.xlu0 %419 }
  0xbf   : > { %v432_v56 = vsel %vm429_vm1, %v4415_v12, %v426_v54  ;;  %v436_v57 = vsel %vm429_vm1, %v426_v54, %v4415_v12  ;;  %v433_v58 = vsel %vm429_vm1, %v420_v55, %v428_v22  ;;  %v437_v59 = vsel %vm429_vm1, %v428_v22, %v420_v55  ;;  %v4479_v8 = vpop.permute.xlu2 %665 }
  0xc0   : > { %v449_v60 = vmul.f32 %v441_v52, %v436_v57  ;;  %v450_v61 = vmul.f32 %v442_v53, %v432_v56  ;;  %v451_v62 = vmul.f32 %v441_v52, %v437_v59  ;;  %v452_v63 = vmul.f32 %v442_v53, %v433_v58 }
  0xc2   : > { %v455_v9 = vpack.c.bf16 %v450_v61, %v449_v60  ;;  %v456_v10 = vpack.c.bf16 %v452_v63, %v451_v62 }
  0xc3   : > { %v3818_v13 = vld [vmem:[#allocation2 + $0x64] sm:$0xf0]  ;;  %v3304_v14 = vld [vmem:[#allocation2 + $0x68] sm:$0xf0] }
  0xc4   : > { %459 = vst [vmem:[#allocation2 + $0x50] sm:$0xff] %v455_v9  ;;  %575 = vrot.lane.b32.xlu1 %v4336_v6, %s6058_s29  ;;  %573 = vrot.lane.b32.xlu0 %v4339_v7, %s6058_s29  ;;  %v3302_v12 = vld [vmem:[#allocation2 + $0x60] sm:$0xf]  ;;  %v3817_v15 = vld [vmem:[#allocation2 + $0x64] sm:$0xf] }
  0xc5   : > { %460 = vst [vmem:[#allocation2 + $0x58] sm:$0xff] %v456_v10  ;;  %v3303_v16 = vor.u32 %v3818_v13, %v3302_v12  ;;  %v3307_v17 = vor.u32 %v3817_v15, %v3304_v14  ;;  %521 = vrot.lane.b32.xlu2 %v4309_v1, %s4155_s9 }
  0xc6   : > { %v416_v18 = vpop.permute.xlu1 %415  ;;  %v414_v19 = vpop.permute.xlu0 %413 }
  0xc7   : > { %1063 = vmatpush.bf16.msra.mxu0 %v3303_v16  ;;  %1150 = vmatpush.bf16.msra.mxu3 %v3307_v17  ;;  %v430_v20 = vsel %vm429_vm1, %v414_v19, %v4441_v30  ;;  %v434_v21 = vsel %vm429_vm1, %v4441_v30, %v414_v19  ;;  %v4493_v24 = vpop.permute.xlu2 %675 }
  0xc8   : > { %v445_v22 = vmul.f32 %v441_v52, %v434_v21  ;;  %v446_v23 = vmul.f32 %v442_v53, %v430_v20 }
  0xca   : > { %v453_v25 = vpack.c.bf16 %v446_v23, %v445_v22 }
  0xcb   : > { %v3294_v26 = vld [vmem:[#allocation2 + $0x50] sm:$0xf]  ;;  %v3815_v27 = vld [vmem:[#allocation2 + $0x54] sm:$0xf] }
  0xcc   : > { %457 = vst [vmem:[#allocation2 + $0x40] sm:$0xff] %v453_v25  ;;  %529 = vrot.lane.b32.xlu1 %v4306_v0, %s4155_s9  ;;  %523 = vrot.lane.b32.xlu0 %v4324_v4, %s4155_s9  ;;  %v3816_v28 = vld [vmem:[#allocation2 + $0x54] sm:$0xf0]  ;;  %v3296_v29 = vld [vmem:[#allocation2 + $0x58] sm:$0xf0] }
  0xcd   : > { %v3295_v30 = vor.u32 %v3816_v28, %v3294_v26  ;;  %v3299_v31 = vor.u32 %v3815_v27, %v3296_v29  ;;  %531 = vrot.lane.b32.xlu2 %v4321_v3, %s4155_s9 }
  0xce   : > { %v370_v32 = vpop.permute.xlu1 %369  ;;  %v424_v33 = vpop.permute.xlu0 %423 }
  0xcf   : > { %v431_v34 = vsel %vm429_vm1, %v416_v18, %v424_v33  ;;  %v435_v35 = vsel %vm429_vm1, %v424_v33, %v416_v18  ;;  %1064 = vmatpush.bf16.msra.mxu0 %v3295_v30  ;;  %1151 = vmatpush.bf16.msra.mxu3 %v3299_v31  ;;  %v4505_v38 = vpop.permute.xlu2 %373 }
  0xd0   : > { %v447_v36 = vmul.f32 %v441_v52, %v435_v35  ;;  %v448_v37 = vmul.f32 %v442_v53, %v431_v34 }
  0xd2   : > { %v454_v40 = vpack.c.bf16 %v448_v37, %v447_v36 }
  0xd3   : > { %v3286_v57 = vld [vmem:[#allocation2 + $0x40] sm:$0xf]  ;;  %v3813_v59 = vld [vmem:[#allocation2 + $0x44] sm:$0xf] }
  0xd4   : > { %458 = vst [vmem:[#allocation2 + $0x48] sm:$0xff] %v454_v40  ;;  %517 = vrot.lane.b32.xlu0 %v4316_v2, %s4155_s9  ;;  %519 = vrot.lane.b32.xlu1 %v4327_v5, %s4155_s9 }
  0xd5   : > { %525 = vrot.lane.b32.xlu2 %v4339_v7, %s4155_s9 }
  0xd6   : > { %v380_v44 = vpop.permute.xlu1 %379  ;;  %v378_v45 = vpop.permute.xlu0 %377 }
  0xd7   : > { %v385_v46 = vsel %vm381_vm2, %v4457_v42, %v380_v44  ;;  %v389_v47 = vsel %vm381_vm2, %v380_v44, %v4457_v42  ;;  %v384_v48 = vsel %vm381_vm2, %v370_v32, %v378_v45  ;;  %v388_v49 = vsel %vm381_vm2, %v378_v45, %v370_v32  ;;  %v4535_v54 = vpop.permute.xlu2 %663  ;;  %v3203_v42 = vld [vmem:[%s6049_s1 + $0x10] sm:$0x3] }
  0xd8   : > { %v403_v50 = vmul.f32 %v4513_v41, %v389_v47  ;;  %v404_v51 = vmul.f32 %v4515_v43, %v385_v46  ;;  %v401_v52 = vmul.f32 %v4513_v41, %v388_v49  ;;  %v402_v53 = vmul.f32 %v4515_v43, %v384_v48 }
  0xd9   : > { %v689_v61 = vperm.slane %v3203_v42, 0  ;;  %v690_v62 = vperm.slane %v3203_v42, 1 }
  0xda   : > { %v408_v55 = vpack.c.bf16 %v404_v51, %v403_v50  ;;  %v407_v56 = vpack.c.bf16 %v402_v53, %v401_v52 }
  0xdb   : > { %v3814_v58 = vld [vmem:[#allocation2 + $0x44] sm:$0xf0]  ;;  %v3288_v60 = vld [vmem:[#allocation2 + $0x48] sm:$0xf0] }
  0xdc   : > { %412 = vst [vmem:[#allocation2 + $0x38] sm:$0xff] %v408_v55  ;;  %527 = vrot.lane.b32.xlu0 %v4336_v6, %s4155_s9  ;;  %v3287_v63 = vor.u32 %v3814_v58, %v3286_v57  ;;  %v3291_v9 = vor.u32 %v3813_v59, %v3288_v60  ;;  %v343_v59 = vld [vmem:[%s6049_s1] sm:$0x3] }
  0xdd   : > { %411 = vst [vmem:[#allocation2 + $0x30] sm:$0xff] %v407_v56 }
  0xde   : > { %v674_v10 = vpop.permute.xlu1 %673  ;;  %v668_v13 = vpop.permute.xlu0 %667  ;;  %1065 = vmatpush.bf16.msra.mxu0 %v3287_v63  ;;  %1152 = vmatpush.bf16.msra.mxu3 %v3291_v9 }
  0xdf   : > { %v680_v14 = vsel %vm677_vm3, %v4479_v8, %v674_v10  ;;  %v684_v12 = vsel %vm677_vm3, %v674_v10, %v4479_v8  ;;  %v681_v15 = vsel %vm677_vm3, %v668_v13, %v4493_v24  ;;  %v685_v16 = vsel %vm677_vm3, %v4493_v24, %v668_v13  ;;  %v4555_v21 = vpop.permute.xlu2 %320 }
  0xe0   : > { %v697_v17 = vmul.f32 %v689_v61, %v680_v14  ;;  %v698_v18 = vmul.f32 %v690_v62, %v684_v12  ;;  %v699_v19 = vmul.f32 %v689_v61, %v681_v15  ;;  %v700_v20 = vmul.f32 %v690_v62, %v685_v16 }
  0xe1   : > { %v345_v14 = vperm.slane %v343_v59, 0  ;;  %v346_v12 = vperm.slane %v343_v59, 1 }
  0xe2   : > { %v703_v22 = vpack.c.bf16 %v698_v18, %v697_v17  ;;  %v704_v23 = vpack.c.bf16 %v700_v20, %v699_v19 }
  0xe3   : > { %v3812_v25 = vld [vmem:[#allocation2 + $0x34] sm:$0xf0]  ;;  %v3280_v26 = vld [vmem:[#allocation2 + $0x38] sm:$0xf0] }
  0xe4   : > { %707 = vst [vmem:[#allocation2 + $0x110] sm:$0xff] %v703_v22  ;;  %v3278_v8 = vld [vmem:[#allocation2 + $0x30] sm:$0xf]  ;;  %v3811_v27 = vld [vmem:[#allocation2 + $0x34] sm:$0xf] }
  0xe5   : > { %708 = vst [vmem:[#allocation2 + $0x118] sm:$0xff] %v704_v23  ;;  %v3279_v28 = vor.u32 %v3812_v25, %v3278_v8  ;;  %v3283_v29 = vor.u32 %v3811_v27, %v3280_v26 }
  0xe6   : > { %v368_v30 = vpop.permute.xlu1 %367  ;;  %v366_v31 = vpop.permute.xlu0 %365 }
  0xe7   : > { %1066 = vmatpush.bf16.msra.mxu0 %v3279_v28  ;;  %1153 = vmatpush.bf16.msra.mxu3 %v3283_v29  ;;  %v382_v24 = vsel %vm381_vm2, %v366_v31, %v4505_v38  ;;  %v386_v32 = vsel %vm381_vm2, %v4505_v38, %v366_v31  ;;  %v331_v35 = vpop.permute.xlu2 %330 }
  0xe8   : > { %v397_v33 = vmul.f32 %v4513_v41, %v386_v32  ;;  %v398_v34 = vmul.f32 %v4515_v43, %v382_v24 }
  0xea   : > { %v405_v36 = vpack.c.bf16 %v398_v34, %v397_v33 }
  0xeb   : > { %v3390_v37 = vld [vmem:[#allocation2 + $0x110] sm:$0xf] }
  0xec   : > { %409 = vst [vmem:[#allocation2 + $0x20] sm:$0xff] %v405_v36  ;;  %v3840_v39 = vld [vmem:[#allocation2 + $0x114] sm:$0xf0]  ;;  %v3795_v36 = vld [vmem:[%s6050_s2 + $0x10] sm:$0xf0] }
  0xed   : > { %v3391_v40 = vor.u32 %v3840_v39, %v3390_v37 }
  0xee   : > { %v662_v44 = vpop.permute.xlu1 %661  ;;  %v376_v45 = vpop.permute.xlu0 %375 }
  0xef   : > { %v383_v46 = vsel %vm381_vm2, %v368_v30, %v376_v45  ;;  %v387_v47 = vsel %vm381_vm2, %v376_v45, %v368_v30  ;;  %1126 = vmatpush.bf16.msra.mxu2 %v3391_v40  ;;  %v325_v50 = vpop.permute.xlu2 %324 }
  0xf0   : > { %v399_v38 = vmul.f32 %v4513_v41, %v387_v47  ;;  %v400_v48 = vmul.f32 %v4515_v43, %v383_v46 }
  0xf2   : > { %v406_v49 = vpack.c.bf16 %v400_v48, %v399_v38 }
  0xf3   : > { %v3270_v9 = vld [vmem:[#allocation2 + $0x20] sm:$0xf]  ;;  %v3809_v10 = vld [vmem:[#allocation2 + $0x24] sm:$0xf] }
  0xf4   : > { %410 = vst [vmem:[#allocation2 + $0x28] sm:$0xff] %v406_v49 }
  0xf6   : > { %v672_v51 = vpop.permute.xlu1 %671  ;;  %v670_v52 = vpop.permute.xlu0 %669 }
  0xf7   : > { %v679_v53 = vsel %vm677_vm3, %v4535_v54, %v672_v51  ;;  %v683_v42 = vsel %vm677_vm3, %v672_v51, %v4535_v54  ;;  %v678_v55 = vsel %vm677_vm3, %v662_v44, %v670_v52  ;;  %v682_v41 = vsel %vm677_vm3, %v670_v52, %v662_v44 }
  0xf8   : > { %v695_v43 = vmul.f32 %v689_v61, %v679_v53  ;;  %v696_v56 = vmul.f32 %v690_v62, %v683_v42  ;;  %v693_v57 = vmul.f32 %v689_v61, %v678_v55  ;;  %v694_v58 = vmul.f32 %v690_v62, %v682_v41  ;;  %v620_v61 = vpop.permute.xlu2 %619  ;;  %v3202_v41 = vld [vmem:[%s6049_s1 + $0xe] sm:$0x3] }
  0xfa   : > { %v702_v60 = vpack.c.bf16 %v696_v56, %v695_v43  ;;  %v701_v63 = vpack.c.bf16 %v694_v58, %v693_v57  ;;  %v641_v57 = vperm.slane %v3202_v41, 0  ;;  %v642_v58 = vperm.slane %v3202_v41, 1 }
  0xfb   : > { %v3810_v54 = vld [vmem:[#allocation2 + $0x24] sm:$0xf0]  ;;  %v3272_v13 = vld [vmem:[#allocation2 + $0x28] sm:$0xf0] }
  0xfc   : > { %706 = vst [vmem:[#allocation2 + $0x108] sm:$0xff] %v702_v60  ;;  %v3271_v15 = vor.u32 %v3810_v54, %v3270_v9  ;;  %v3275_v16 = vor.u32 %v3809_v10, %v3272_v13  ;;  %v3226_v13 = vld [vmem:[%s6050_s2 + $0x20] sm:$0xf] }
  0xfd   : > { %705 = vst [vmem:[#allocation2 + $0x100] sm:$0xff] %v701_v63 }
  0xfe   : > { %v329_v62 = vpop.permute.xlu1 %328  ;;  %v323_v17 = vpop.permute.xlu0 %322  ;;  %1067 = vmatpush.bf16.msra.mxu0 %v3271_v15  ;;  %1154 = vmatpush.bf16.msra.mxu3 %v3275_v16 }
  0xff   : > { %v337_v18 = vsel %vm334_vm4, %v4555_v21, %v329_v62  ;;  %v341_v19 = vsel %vm334_vm4, %v329_v62, %v4555_v21  ;;  %v338_v20 = vsel %vm334_vm4, %v323_v17, %v331_v35  ;;  %v342_v22 = vsel %vm334_vm4, %v331_v35, %v323_v17  ;;  %v3214_v35 = vld [vmem:[%s6050_s2 + $0x8] sm:$0xf]  ;;  %v3839_v17 = vld [vmem:[#allocation2 + $0x114] sm:$0xf] }
 0x100   : > { %v353_v23 = vmul.f32 %v345_v14, %v341_v19  ;;  %v354_v25 = vmul.f32 %v346_v12, %v337_v18  ;;  %v355_v26 = vmul.f32 %v345_v14, %v342_v22  ;;  %v356_v8 = vmul.f32 %v346_v12, %v338_v20  ;;  %v4599_v34 = vpop.permute.xlu2 %613 }
 0x101   : > { %v4607_v40 = vor.u32 %v3795_v36, %v3214_v35 }
 0x102   : > { %v359_v27 = vpack.c.bf16 %v354_v25, %v353_v23  ;;  %v360_v28 = vpack.c.bf16 %v356_v8, %v355_v26  ;;  %v3206_v23 = vld [vmem:[%s6050_s2] sm:$0xf]  ;;  %v3794_v25 = vld [vmem:[%s6050_s2 + $0x8] sm:$0xf0] }
 0x103   : > { %v3838_v29 = vld [vmem:[#allocation2 + $0x104] sm:$0xf0]  ;;  %v3384_v35 = vld [vmem:[#allocation2 + $0x108] sm:$0xf0] }
 0x104   : > { %363 = vst [vmem:[#allocation2 + $0x10] sm:$0xff] %v359_v27  ;;  %v3382_v30 = vld [vmem:[#allocation2 + $0x100] sm:$0xf] }
 0x105   : > { %364 = vst [vmem:[#allocation2 + $0x18] sm:$0xff] %v360_v28  ;;  %v3383_v31 = vor.u32 %v3838_v29, %v3382_v30 }
 0x106   : > { %v319_v24 = vpop.permute.xlu1 %318  ;;  %v317_v32 = vpop.permute.xlu0 %316 }
 0x107   : > { %1127 = vmatpush.bf16.msra.mxu2 %v3383_v31  ;;  %v335_v21 = vsel %vm334_vm4, %v317_v32, %v325_v50  ;;  %v339_v33 = vsel %vm334_vm4, %v325_v50, %v317_v32 }
 0x108   : > { %v349_v37 = vmul.f32 %v345_v14, %v339_v33  ;;  %v350_v39 = vmul.f32 %v346_v12, %v335_v21  ;;  %v624_v43 = vpop.permute.xlu2 %623  ;;  %v3837_v33 = vld [vmem:[#allocation2 + $0x104] sm:$0xf] }
 0x10a   : > { %v357_v44 = vpack.c.bf16 %v350_v39, %v349_v37  ;;  %3396 = vmatmul.msk.bf16.vlgmr.msra.gmra.mxu2 %vm1049_vm5, %v4607_v40 }
 0x10b   : > { %v3262_v45 = vld [vmem:[#allocation2 + $0x10] sm:$0xf]  ;;  %v3807_v46 = vld [vmem:[#allocation2 + $0x14] sm:$0xf] }
 0x10c   : > { %361 = vst [vmem:[#allocation2] sm:$0xff] %v357_v44  ;;  %v3808_v47 = vld [vmem:[#allocation2 + $0x14] sm:$0xf0]  ;;  %v3264_v38 = vld [vmem:[#allocation2 + $0x18] sm:$0xf0] }
 0x10d   : > { %v3263_v48 = vor.u32 %v3808_v47, %v3262_v45  ;;  %v3267_v49 = vor.u32 %v3807_v46, %v3264_v38 }
 0x10e   : > { %v618_v50 = vpop.permute.xlu1 %617  ;;  %v327_v51 = vpop.permute.xlu0 %326 }
 0x10f   : > { %v336_v52 = vsel %vm334_vm4, %v319_v24, %v327_v51  ;;  %v340_v53 = vsel %vm334_vm4, %v327_v51, %v319_v24  ;;  %1068 = vmatpush.bf16.msra.mxu0 %v3263_v48  ;;  %1155 = vmatpush.bf16.msra.mxu3 %v3267_v49  ;;  %v3207_v24 = vor.u32 %v3794_v25, %v3206_v23  ;;  %v3201_v48 = vld [vmem:[%s6049_s1 + $0xc] sm:$0x3] }
 0x110   : > { %v351_v42 = vmul.f32 %v345_v14, %v340_v53  ;;  %v352_v55 = vmul.f32 %v346_v12, %v336_v52  ;;  %v3798_v14 = vld [vmem:[%s6050_s2 + $0x28] sm:$0xf0]  ;;  %v578_v28 = vpop.permute.xlu2 %577  ;;  %v3387_v49 = vor.u32 %v3837_v33, %v3384_v35  ;;  %v593_v53 = vperm.slane %v3201_v48, 0 }
 0x111   : > { %v4633_v18 = vor.u32 %v3798_v14, %v3226_v13  ;;  %v594_v41 = vperm.slane %v3201_v48, 1  ;;  %v3200_v48 = vld [vmem:[%s6049_s1 + $0xa] sm:$0x3] }
 0x112   : > { %v358_v56 = vpack.c.bf16 %v352_v55, %v351_v42 }
 0x113   : > { %v3254_v22 = vld [vmem:[#allocation2] sm:$0xf]  ;;  %v3805_v8 = vld [vmem:[#allocation2 + $0x4] sm:$0xf] }
 0x114   : > { %362 = vst [vmem:[#allocation2 + $0x8] sm:$0xff] %v358_v56 }
 0x116   : > { %v628_v59 = vpop.permute.xlu1 %627  ;;  %v626_v60 = vpop.permute.xlu0 %625 }
 0x117   : > { %v633_v63 = vsel %vm629_vm6, %v620_v61, %v628_v59  ;;  %v637_v9 = vsel %vm629_vm6, %v628_v59, %v620_v61  ;;  %v632_v54 = vsel %vm629_vm6, %v618_v50, %v626_v60  ;;  %v636_v10 = vsel %vm629_vm6, %v626_v60, %v618_v50  ;;  %v3392_v61 = vld [vmem:[#allocation2 + $0x118] sm:$0xf0] }
 0x118   : > { %v651_v12 = vmul.f32 %v641_v57, %v633_v63  ;;  %v652_v15 = vmul.f32 %v642_v58, %v637_v9  ;;  %v649_v16 = vmul.f32 %v641_v57, %v632_v54  ;;  %v650_v62 = vmul.f32 %v642_v58, %v636_v10  ;;  %v3238_v9 = vld [vmem:[%s6050_s2 + $0x38] sm:$0xf]  ;;  %v3801_v54 = vld [vmem:[%s6050_s2 + $0x40] sm:$0xf0] }
 0x119   : > { %v3395_v31 = vor.u32 %v3839_v17, %v3392_v61  ;;  %v4667_v14 = vor.u32 %v3801_v54, %v3238_v9  ;;  %v761_v9 = vld [vmem:[%s6051_s3] sm:$0xff]  ;;  %v509_v54 = vpack.c.bf16 %v4339_v7, %v4316_v2 }
 0x11a   : > { %v656_v19 = vpack.c.bf16 %v652_v15, %v651_v12  ;;  %v655_v20 = vpack.c.bf16 %v650_v62, %v649_v16  ;;  %3397 = vmatmul.msk.bf16.gmra.mxu2 %vm1049_vm5, %v4633_v18  ;;  %v3218_v15 = vld [vmem:[%s6050_s2 + $0x18] sm:$0xf]  ;;  %v3797_v16 = vld [vmem:[%s6050_s2 + $0x20] sm:$0xf0] }
 0x11b   : > { %v3806_v26 = vld [vmem:[#allocation2 + $0x4] sm:$0xf0]  ;;  %v3256_v27 = vld [vmem:[#allocation2 + $0x8] sm:$0xf0]  ;;  %v3219_v23 = vor.u32 %v3797_v16, %v3218_v15  ;;  %v4156_v15 = vmov 0   ;;  %513 = vst [vmem:[#allocation2 + $0x80] sm:$0xff] %v509_v54 }
 0x11c   : > { %660 = vst [vmem:[#allocation2 + $0xf8] sm:$0xff] %v656_v19  ;;  %v3255_v29 = vor.u32 %v3806_v26, %v3254_v22  ;;  %v3259_v30 = vor.u32 %v3805_v8, %v3256_v27  ;;  %4007 = vset.pattern.permute.xlu1 %v4156_v15  ;;  %4009 = vset.pattern.permute.xlu0 %v4156_v15 }
 0x11d   : > { %659 = vst [vmem:[#allocation2 + $0xf0] sm:$0xff] %v655_v20  ;;  %771 = vperm.xlu1 %4007, %v761_v9   ;;  %4008 = vset.pattern.permute.xlu2 %v4156_v15  ;;  %v762_v15 = vld [vmem:[%s6051_s3 + $0x8] sm:$0xff] }
 0x11e   : > { %v622_v32 = vpop.permute.xlu1 %621  ;;  %v616_v21 = vpop.permute.xlu0 %615  ;;  %1069 = vmatpush.bf16.msra.mxu0 %v3255_v29  ;;  %1156 = vmatpush.bf16.msra.mxu3 %v3259_v30 }
 0x11f   : > { %v630_v36 = vsel %vm629_vm6, %v4599_v34, %v622_v32  ;;  %v634_v37 = vsel %vm629_vm6, %v622_v32, %v4599_v34  ;;  %v631_v39 = vsel %vm629_vm6, %v616_v21, %v624_v43  ;;  %v635_v44 = vsel %vm629_vm6, %v624_v43, %v616_v21  ;;  %v3804_v32 = vld [vmem:[%s6050_s2 + $0x58] sm:$0xf0]  ;;  %776 = vperm.xlu2 %4008, %v762_v15  }
 0x120   : > { %v645_v45 = vmul.f32 %v641_v57, %v630_v36  ;;  %v646_v46 = vmul.f32 %v642_v58, %v634_v37  ;;  %v647_v47 = vmul.f32 %v641_v57, %v631_v39  ;;  %v648_v38 = vmul.f32 %v642_v58, %v635_v44  ;;  %v568_v57 = vpop.permute.xlu2 %567 }
 0x121   : > { %1070 = vmatmul.bf16.vlgmr.msra.gmra.mxu0 %v3207_v24  ;;  %1157 = vmatmul.bf16.vlgmr.msra.gmra.mxu3 %v3207_v24  ;;  %v3250_v24 = vld [vmem:[%s6050_s2 + $0x50] sm:$0xf] }
 0x122   : > { %1213 = vmatpush.bf16.msrb.mxu0 %v3395_v31  ;;  %v653_v50 = vpack.c.bf16 %v646_v46, %v645_v45  ;;  %v654_v34 = vpack.c.bf16 %v648_v38, %v647_v47  ;;  %v4687_v35 = vor.u32 %v3804_v32, %v3250_v24  ;;  %v3242_v24 = vld [vmem:[%s6050_s2 + $0x48] sm:$0xf]  ;;  %v3803_v32 = vld [vmem:[%s6050_s2 + $0x50] sm:$0xf0]  ;;  %v3821_v9 = vld [vmem:[#allocation2 + $0x84] sm:$0xf] }
 0x123   : > { %v3836_v51 = vld [vmem:[#allocation2 + $0xf4] sm:$0xf0]  ;;  %v3376_v52 = vld [vmem:[#allocation2 + $0xf8] sm:$0xf0] }
 0x124   : > { %657 = vst [vmem:[#allocation2 + $0xe0] sm:$0xff] %v653_v50  ;;  %v3374_v42 = vld [vmem:[#allocation2 + $0xf0] sm:$0xf]  ;;  %v3835_v55 = vld [vmem:[#allocation2 + $0xf4] sm:$0xf]  ;;  %v511_v50 = vpack.c.bf16 %v4306_v0, %v4309_v1  ;;  %v4713_v0 = vperm.slane %v3200_v48, 1 }
 0x125   : > { %658 = vst [vmem:[#allocation2 + $0xe8] sm:$0xff] %v654_v34  ;;  %v3375_v43 = vor.u32 %v3836_v51, %v3374_v42  ;;  %v3379_v56 = vor.u32 %v3835_v55, %v3376_v52 }
 0x126   : > { %1214 = vmatpush.bf16.msrb.mxu0 %v3387_v49  ;;  %v572_v58 = vpop.permute.xlu1 %571  ;;  %v570_v59 = vpop.permute.xlu0 %569  ;;  %v3230_v49 = vld [vmem:[%s6050_s2 + $0x30] sm:$0xf]  ;;  %515 = vst [vmem:[#allocation2 + $0x90] sm:$0xff] %v511_v50 }
 0x127   : > { %1091 = vmatpush.bf16.msra.mxu1 %v3375_v43  ;;  %1178 = vmatpush.bf16.msrb.mxu2 %v3379_v56  ;;  %v584_v60 = vsel %vm581_vm7, %v570_v59, %v578_v28  ;;  %v588_v63 = vsel %vm581_vm7, %v578_v28, %v570_v59  ;;  %v4711_v56 = vperm.slane %v3200_v48, 0  ;;  %v512_v59 = vpack.c.bf16 %v4321_v3, %v4324_v4 }
 0x128   : > { %v601_v10 = vmul.f32 %v593_v53, %v584_v60  ;;  %v602_v13 = vmul.f32 %v594_v41, %v588_v63  ;;  %v522_v30 = vpop.permute.xlu2 %521 }
 0x129   : > { %516 = vst [vmem:[#allocation2 + $0x98] sm:$0xff] %v512_v59 }
 0x12a   : > { %v607_v12 = vpack.c.bf16 %v602_v13, %v601_v10  ;;  %3398 = vmatmul.msk.bf16.gmra.mxu2 %vm1049_vm5, %v4667_v14  ;;  %v510_v10 = vpack.c.bf16 %v4336_v6, %v4327_v5 }
 0x12b   : > { %v3366_v62 = vld [vmem:[#allocation2 + $0xe0] sm:$0xf]  ;;  %v3833_v17 = vld [vmem:[#allocation2 + $0xe4] sm:$0xf] }
 0x12c   : > { %611 = vst [vmem:[#allocation2 + $0xd0] sm:$0xff] %v607_v12  ;;  %v3834_v61 = vld [vmem:[#allocation2 + $0xe4] sm:$0xf0]  ;;  %v3368_v19 = vld [vmem:[#allocation2 + $0xe8] sm:$0xf0] }
 0x12d   : > { %v3367_v20 = vor.u32 %v3834_v61, %v3366_v62  ;;  %v3371_v22 = vor.u32 %v3833_v17, %v3368_v19  ;;  %514 = vst [vmem:[#allocation2 + $0x88] sm:$0xff] %v510_v10 }
 0x12e   : > { %v566_v25 = vpop.permute.xlu1 %565  ;;  %v580_v26 = vpop.permute.xlu0 %579 }
 0x12f   : > { %v585_v8 = vsel %vm581_vm7, %v572_v58, %v580_v26  ;;  %v589_v27 = vsel %vm581_vm7, %v580_v26, %v572_v58  ;;  %1092 = vmatpush.bf16.msra.mxu1 %v3367_v20  ;;  %1179 = vmatpush.bf16.msrb.mxu2 %v3371_v22 }
 0x130   : > { %v603_v28 = vmul.f32 %v593_v53, %v585_v8  ;;  %v604_v29 = vmul.f32 %v594_v41, %v589_v27  ;;  %v532_v55 = vpop.permute.xlu2 %531 }
 0x131   : > { %1075 = vmatmul.bf16.gmra.mxu0 %v3219_v23  ;;  %1162 = vmatmul.bf16.gmra.mxu3 %v3219_v23 }
 0x132   : > { %v608_v31 = vpack.c.bf16 %v604_v29, %v603_v28 }
 0x133   : > { %v3358_v52 = vld [vmem:[#allocation2 + $0xd0] sm:$0xf]  ;;  %v3831_v42 = vld [vmem:[#allocation2 + $0xd4] sm:$0xf] }
 0x134   : > { %612 = vst [vmem:[#allocation2 + $0xd8] sm:$0xff] %v608_v31  ;;  %v3320_v54 = vld [vmem:[#allocation2 + $0x88] sm:$0xf0] }
 0x136   : > { %v576_v21 = vpop.permute.xlu1 %575  ;;  %v574_v33 = vpop.permute.xlu0 %573 }
 0x137   : > { %v583_v36 = vsel %vm581_vm7, %v568_v57, %v576_v21  ;;  %v587_v37 = vsel %vm581_vm7, %v576_v21, %v568_v57  ;;  %v582_v39 = vsel %vm581_vm7, %v566_v25, %v574_v33  ;;  %v586_v44 = vsel %vm581_vm7, %v574_v33, %v566_v25 }
 0x138   : > { %v599_v45 = vmul.f32 %v593_v53, %v583_v36  ;;  %v600_v46 = vmul.f32 %v594_v41, %v587_v37  ;;  %v597_v47 = vmul.f32 %v593_v53, %v582_v39  ;;  %v598_v38 = vmul.f32 %v594_v41, %v586_v44  ;;  %v3800_v53 = vld [vmem:[%s6050_s2 + $0x38] sm:$0xf0]  ;;  %v526_v22 = vpop.permute.xlu2 %525 }
 0x139   : > { %v3231_v58 = vor.u32 %v3800_v53, %v3230_v49  ;;  %v767_v49 = vld [vmem:[%s6051_s3 + $0x30] sm:$0xff]  ;;  %v3824_v53 = vld [vmem:[#allocation2 + $0x94] sm:$0xf0] }
 0x13a   : > { %v606_v34 = vpack.c.bf16 %v600_v46, %v599_v45  ;;  %v605_v51 = vpack.c.bf16 %v598_v38, %v597_v47  ;;  %3399 = vmatmul.msk.bf16.gmra.mxu2 %vm1049_vm5, %v4687_v35  ;;  %v3243_v46 = vor.u32 %v3803_v32, %v3242_v24 }
 0x13b   : > { %v3832_v41 = vld [vmem:[#allocation2 + $0xd4] sm:$0xf0]  ;;  %v3360_v43 = vld [vmem:[#allocation2 + $0xd8] sm:$0xf0] }
 0x13c   : > { %610 = vst [vmem:[#allocation2 + $0xc8] sm:$0xff] %v606_v34  ;;  %v3359_v1 = vor.u32 %v3832_v41, %v3358_v52  ;;  %v3363_v57 = vor.u32 %v3831_v42, %v3360_v43  ;;  %v3326_v52 = vld [vmem:[#allocation2 + $0x90] sm:$0xf]  ;;  %v3823_v42 = vld [vmem:[#allocation2 + $0x94] sm:$0xf] }
 0x13d   : > { %609 = vst [vmem:[#allocation2 + $0xc0] sm:$0xff] %v605_v51  ;;  %v3328_v41 = vld [vmem:[#allocation2 + $0x98] sm:$0xf0] }
 0x13e   : > { %v530_v60 = vpop.permute.xlu1 %529  ;;  %v524_v63 = vpop.permute.xlu0 %523  ;;  %1093 = vmatpush.bf16.msra.mxu1 %v3359_v1  ;;  %1180 = vmatpush.bf16.msrb.mxu2 %v3363_v57 }
 0x13f   : > { %v536_v13 = vsel %vm533_vm8, %v522_v30, %v530_v60  ;;  %v540_v3 = vsel %vm533_vm8, %v530_v60, %v522_v30  ;;  %v537_v4 = vsel %vm533_vm8, %v524_v63, %v532_v55  ;;  %v541_v12 = vsel %vm533_vm8, %v532_v55, %v524_v63  ;;  %v764_v30 = vld [vmem:[%s6051_s3 + $0x18] sm:$0xff]  ;;  %v3822_v63 = vld [vmem:[#allocation2 + $0x84] sm:$0xf0] }
 0x140   : > { %v553_v16 = vmul.f32 %v4711_v56, %v536_v13  ;;  %v554_v2 = vmul.f32 %v4713_v0, %v540_v3  ;;  %v555_v5 = vmul.f32 %v4711_v56, %v537_v4  ;;  %v556_v6 = vmul.f32 %v4713_v0, %v541_v12  ;;  %786 = vperm.xlu1 %4007, %v764_v30   ;;  %v3793_v3 = vld [vmem:[%s6050_s2 + $0x4] sm:$0xf]  ;;  %v3208_v4 = vld [vmem:[%s6050_s2 + $0xc] sm:$0xf0] }
 0x141   : > { %1080 = vmatmul.bf16.gmra.mxu0 %v3231_v58  ;;  %1167 = vmatmul.bf16.gmra.mxu3 %v3231_v58  ;;  %v3331_v60 = vor.u32 %v3823_v42, %v3328_v41  ;;  %v3323_v13 = vor.u32 %v3821_v9, %v3320_v54  ;;  %v3211_v12 = vor.u32 %v3793_v3, %v3208_v4 }
 0x142   : > { %v559_v7 = vpack.c.bf16 %v554_v2, %v553_v16  ;;  %v560_v62 = vpack.c.bf16 %v556_v6, %v555_v5  ;;  %v766_v16 = vld [vmem:[%s6051_s3 + $0x28] sm:$0xff]  ;;  %v765_v2 = vld [vmem:[%s6051_s3 + $0x20] sm:$0xff]  ;;  %v3796_v5 = vld [vmem:[%s6050_s2 + $0x1c] sm:$0xf] }
 0x143   : > { %v3830_v17 = vld [vmem:[#allocation2 + $0xc4] sm:$0xf0]  ;;  %v3352_v61 = vld [vmem:[#allocation2 + $0xc8] sm:$0xf0]  ;;  %791 = vperm.xlu2 %4008, %v765_v2  }
 0x144   : > { %563 = vst [vmem:[#allocation2 + $0xb0] sm:$0xff] %v559_v7  ;;  %v3350_v19 = vld [vmem:[#allocation2 + $0xc0] sm:$0xf]  ;;  %v3829_v20 = vld [vmem:[#allocation2 + $0xc4] sm:$0xf] }
 0x145   : > { %564 = vst [vmem:[#allocation2 + $0xb8] sm:$0xff] %v560_v62  ;;  %v3351_v23 = vor.u32 %v3830_v17, %v3350_v19  ;;  %v3355_v25 = vor.u32 %v3829_v20, %v3352_v61  ;;  %v3220_v6 = vld [vmem:[%s6050_s2 + $0x24] sm:$0xf0]  ;;  %v768_v62 = vld [vmem:[%s6051_s3 + $0x38] sm:$0xff]  ;;  %v3232_v17 = vld [vmem:[%s6050_s2 + $0x3c] sm:$0xf0] }
 0x146   : > { %v518_v26 = vpop.permute.xlu0 %517  ;;  %v520_v36 = vpop.permute.xlu1 %519  ;;  %v3223_v7 = vor.u32 %v3796_v5, %v3220_v6  ;;  %v3802_v19 = vld [vmem:[%s6050_s2 + $0x4c] sm:$0xf] }
 0x147   : > { %1094 = vmatpush.bf16.msra.mxu1 %v3351_v23  ;;  %1181 = vmatpush.bf16.msrb.mxu2 %v3355_v25  ;;  %v534_v8 = vsel %vm533_vm8, %v518_v26, %v526_v22  ;;  %v538_v27 = vsel %vm533_vm8, %v526_v22, %v518_v26 }
 0x148   : > { %v549_v28 = vmul.f32 %v4711_v56, %v534_v8  ;;  %v550_v29 = vmul.f32 %v4713_v0, %v538_v27  ;;  %801 = vperm.xlu1 %4007, %v767_v49  }
 0x14a   : > { %v557_v31 = vpack.c.bf16 %v550_v29, %v549_v28 }
 0x14b   : > { %v3342_v21 = vld [vmem:[#allocation2 + $0xb0] sm:$0xf]  ;;  %v3827_v33 = vld [vmem:[#allocation2 + $0xb4] sm:$0xf]  ;;  %806 = vperm.xlu2 %4008, %v768_v62  }
 0x14c   : > { %561 = vst [vmem:[#allocation2 + $0xa0] sm:$0xff] %v557_v31  ;;  %v3828_v37 = vld [vmem:[#allocation2 + $0xb4] sm:$0xf0]  ;;  %v3344_v39 = vld [vmem:[#allocation2 + $0xb8] sm:$0xf0] }
 0x14d   : > { %v3343_v44 = vor.u32 %v3828_v37, %v3342_v21  ;;  %v3347_v45 = vor.u32 %v3827_v33, %v3344_v39 }
 0x14e   : > { %v528_v47 = vpop.permute.xlu0 %527 }
 0x14f   : > { %v535_v38 = vsel %vm533_vm8, %v520_v36, %v528_v47  ;;  %v539_v48 = vsel %vm533_vm8, %v528_v47, %v520_v36  ;;  %1095 = vmatpush.bf16.msra.mxu1 %v3343_v44  ;;  %1182 = vmatpush.bf16.msrb.mxu2 %v3347_v45 }
 0x150   : > { %v551_v50 = vmul.f32 %v4711_v56, %v535_v38  ;;  %v552_v34 = vmul.f32 %v4713_v0, %v539_v48  ;;  %v3327_v56 = vor.u32 %v3824_v53, %v3326_v52  ;;  %v3318_v0 = vld [vmem:[#allocation2 + $0x80] sm:$0xf] }
 0x151   : > { %1085 = vmatmul.bf16.gmra.mxu0 %v3243_v46  ;;  %1172 = vmatmul.bf16.gmra.mxu3 %v3243_v46  ;;  %v3319_v10 = vor.u32 %v3822_v63, %v3318_v0 }
 0x152   : > { %v558_v51 = vpack.c.bf16 %v552_v34, %v551_v50 }
 0x153   : > { %v3334_v55 = vld [vmem:[#allocation2 + $0xa0] sm:$0xf]  ;;  %v3825_v1 = vld [vmem:[#allocation2 + $0xa4] sm:$0xf] }
 0x154   : > { %562 = vst [vmem:[#allocation2 + $0xa8] sm:$0xff] %v558_v51 }
 0x15b   : > { %v3826_v43 = vld [vmem:[#allocation2 + $0xa4] sm:$0xf0]  ;;  %v3336_v57 = vld [vmem:[#allocation2 + $0xa8] sm:$0xf0] }
 0x15c   : > { %v3335_v58 = vor.u32 %v3826_v43, %v3334_v55  ;;  %v3339_v59 = vor.u32 %v3825_v1, %v3336_v57 }
 0x15e   : > { %1096 = vmatpush.bf16.msra.mxu1 %v3335_v58  ;;  %1183 = vmatpush.bf16.msrb.mxu2 %v3339_v59 }
 0x161   : > { %3400 = vmatmul.msk.bf16.vlgmr.msrb.gmra.mxu0 %vm1049_vm5, %v4607_v40  ;;  %v763_v40 = vld [vmem:[%s6051_s3 + $0x10] sm:$0xff] }
 0x162   : > { %1097 = vmatpush.bf16.msra.mxu1 %v3327_v56  ;;  %1184 = vmatpush.bf16.msrb.mxu2 %v3331_v60 }
 0x163   : > { %781 = vperm.xlu0 %4009, %v763_v40  }
 0x166   : > { %1098 = vmatpush.bf16.msra.mxu1 %v3319_v10  ;;  %1185 = vmatpush.bf16.msrb.mxu2 %v3323_v13 }
 0x169   : > { %1099 = vmatmul.bf16.vlgmr.msra.gmra.mxu1 %v3211_v12  ;;  %1186 = vmatmul.bf16.vlgmr.msrb.gmra.mxu2 %v3211_v12 }
 0x16b   : > { %796 = vperm.xlu0 %4009, %v766_v16  }
 0x171   : > { %3401 = vmatmul.msk.bf16.gmra.mxu0 %vm1049_vm5, %v4633_v18  ;;  %v3799_v18 = vld [vmem:[%s6050_s2 + $0x34] sm:$0xf] }
 0x172   : > { %v3235_v61 = vor.u32 %v3799_v18, %v3232_v17 }
 0x179   : > { %1104 = vmatmul.bf16.gmra.mxu1 %v3223_v7  ;;  %1191 = vmatmul.bf16.gmra.mxu2 %v3223_v7  ;;  %v777_v50 = vpop.permute.xlu2 %776 }
 0x181   : > { %3402 = vmatmul.msk.bf16.gmra.mxu0 %vm1049_vm5, %v4667_v14  ;;  %v3244_v14 = vld [vmem:[%s6050_s2 + $0x54] sm:$0xf0] }
 0x182   : > { %v3247_v20 = vor.u32 %v3802_v19, %v3244_v14 }
 0x189   : > { %1109 = vmatmul.bf16.gmra.mxu1 %v3235_v61  ;;  %1196 = vmatmul.bf16.gmra.mxu2 %v3235_v61 }
 0x18d   : > { %v1129_v22 = vpop.f32.mrf.mxu2 }
 0x18f   : > { %v772_v39 = vpop.permute.xlu1 %771 }
 0x191   : > { %3403 = vmatmul.msk.bf16.gmra.mxu0 %vm1049_vm5, %v4687_v35 }
 0x195   : > { %v1131_v25 = vpop.f32.mrf.mxu2 }
 0x199   : > { %1114 = vmatmul.bf16.gmra.mxu1 %v3247_v20  ;;  %1201 = vmatmul.bf16.gmra.mxu2 %v3247_v20 }
 0x19d   : > { %v4807_v27 = vpop.f32.mrf.mxu2 }
 0x19e   : > { %v1071_v23 = vpop.f32.mrf.mxu0 }
 0x19f   : > { %v1072_v45 = vadd.f32 %v1071_v23, %v772_v39 }
 0x1a4   : > { %v1158_v36 = vpop.f32.mrf.mxu3 }
 0x1a5   : > { %v4811_v35 = vpop.f32.mrf.mxu2  ;;  %v1159_v34 = vadd.f32 %v1158_v36, %v772_v39  ;;  %v792_v39 = vpop.permute.xlu2 %791 }
 0x1a6   : > { %v1073_v26 = vpop.f32.mrf.mxu0 }
 0x1a7   : > { %v1074_v42 = vadd.f32 %v1073_v26, %v777_v50 }
 0x1ac   : > { %v1160_v46 = vpop.f32.mrf.mxu3 }
 0x1ad   : > { %v4815_v30 = vpop.f32.mrf.mxu2  ;;  %v1161_v59 = vadd.f32 %v1160_v46, %v777_v50 }
 0x1ae   : > { %v1076_v8 = vpop.f32.mrf.mxu0 }
 0x1b2   : > { %v787_v6 = vpop.permute.xlu1 %786 }
 0x1b4   : > { %v1163_v43 = vpop.f32.mrf.mxu3 }
 0x1b5   : > { %v4819_v24 = vpop.f32.mrf.mxu2 }
 0x1b6   : > { %v4809_v28 = vpop.f32.mrf.mxu0 }
 0x1b7   : > { %v1079_v19 = vadd.f32 %v4809_v28, %v787_v6 }
 0x1bc   : > { %v1165_v16 = vpop.f32.mrf.mxu3 }
 0x1bd   : > { %v4825_v33 = vpop.f32.mrf.mxu2 }
 0x1be   : > { %v4813_v29 = vpop.f32.mrf.mxu0 }
 0x1c5   : > { %v4827_v44 = vpop.f32.mrf.mxu2 }
 0x1c6   : > { %v4817_v31 = vpop.f32.mrf.mxu0 }
 0x1ce   : > { %v4821_v32 = vpop.f32.mrf.mxu0 }
 0x1d5   : > { %v782_v58 = vpop.permute.xlu0 %781 }
 0x1d6   : > { %v4823_v21 = vpop.f32.mrf.mxu0  ;;  %v1077_v54 = vadd.f32 %v1076_v8, %v782_v58  ;;  %v1164_v5 = vadd.f32 %v1163_v43, %v782_v58  ;;  %v1168_v8 = vpop.f32.mrf.mxu3 }
 0x1de   : > { %v1216_v37 = vpop.f32.mrf.mxu0 }
 0x1e6   : > { %v1100_v47 = vpop.f32.mrf.mxu1  ;;  %v1218_v48 = vpop.f32.mrf.mxu0 }
 0x1e7   : > { %v1101_v38 = vadd.f32 %v1100_v47, %v1072_v45  ;;  %v1082_v47 = vadd.f32 %v4813_v29, %v792_v39  ;;  %v797_v29 = vpop.permute.xlu0 %796 }
 0x1e9   : > { %v1130_v49 = vadd.f32 %v1129_v22, %v1101_v38 }
 0x1eb   : > { %vm1236_vm9 = vcmp.ge.f32.partialorder %v1130_v49, 0.0  ;;  %v1252_v51 = vmul.f32 0.1, %v1130_v49 }
 0x1ec   : > { %v1187_v52 = vpop.f32.mrf.mxu2 }
 0x1ed   : > { %v4829_v55 = vsel %vm1236_vm9, %v1130_v49, %v1252_v51  ;;  %v1188_v53 = vadd.f32 %v1187_v52, %v1159_v34  ;;  %v1169_v52 = vadd.f32 %v1168_v8, %v792_v39 }
 0x1ee   : > { %v1102_v41 = vpop.f32.mrf.mxu1  ;;  %1520 = vrot.lane.b32.xlu0 %v4829_v55, %s4149_s27  ;;  %1418 = vrot.lane.b32.xlu2 %v4829_v55, %s4150_s8  ;;  %v1221_v0 = vpop.f32.mrf.mxu0 }
 0x1ef   : > { %v1103_v1 = vadd.f32 %v1102_v41, %v1074_v42  ;;  %v1217_v57 = vadd.f32 %v1216_v37, %v1188_v53  ;;  %1316 = vrot.lane.b32.xlu1 %v4829_v55, %s4152_s10 }
 0x1f1   : > { %v1132_v56 = vadd.f32 %v1131_v25, %v1103_v1  ;;  %vm1237_vm10 = vcmp.ge.f32.partialorder %v1217_v57, 0.0  ;;  %v1253_v60 = vmul.f32 0.1, %v1217_v57 }
 0x1f3   : > { %vm1238_vm11 = vcmp.ge.f32.partialorder %v1132_v56, 0.0  ;;  %v1254_v63 = vmul.f32 0.1, %v1132_v56  ;;  %v4837_v9 = vsel %vm1237_vm10, %v1217_v57, %v1253_v60  ;;  %v1084_v57 = vadd.f32 %v4817_v31, %v797_v29 }
 0x1f4   : > { %v1724_v10 = vpack.c.bf16 %v4837_v9, %v4829_v55  ;;  %v1189_v13 = vpop.f32.mrf.mxu2 }
 0x1f5   : > { %v4841_v3 = vsel %vm1238_vm11, %v1132_v56, %v1254_v63  ;;  %v1190_v4 = vadd.f32 %v1189_v13, %v1161_v59  ;;  %v1170_v59 = vpop.f32.mrf.mxu3 }
 0x1f6   : > { %1732 = vst [vmem:[#allocation4 + $0x100] sm:$0xff] %v1724_v10  ;;  %v1105_v12 = vpop.f32.mrf.mxu1  ;;  %1756 = vrot.lane.b32.xlu0 %v4829_v55, %s4155_s9  ;;  %1318 = vrot.lane.b32.xlu2 %v4841_v3, %s4152_s10  ;;  %v1223_v61 = vpop.f32.mrf.mxu0  ;;  %v1171_v10 = vadd.f32 %v1170_v59, %v797_v29 }
 0x1f7   : > { %v1219_v40 = vadd.f32 %v1218_v48, %v1190_v4  ;;  %1622 = vrot.lane.b32.xlu1 %v4829_v55, %s4148_s4  ;;  %v1106_v15 = vadd.f32 %v1105_v12, %v1077_v54  ;;  %v802_v54 = vpop.permute.xlu1 %801 }
 0x1f9   : > { %vm1239_vm12 = vcmp.ge.f32.partialorder %v1219_v40, 0.0  ;;  %v1255_v2 = vmul.f32 0.1, %v1219_v40  ;;  %v1135_v62 = vadd.f32 %v4807_v27, %v1106_v15  ;;  %v1166_v27 = vadd.f32 %v1165_v16, %v787_v6 }
 0x1fa   : > { %v1087_v16 = vadd.f32 %v4821_v32, %v802_v54  ;;  %v807_v32 = vpop.permute.xlu2 %806 }
 0x1fb   : > { %v4849_v7 = vsel %vm1239_vm12, %v1219_v40, %v1255_v2  ;;  %v1256_v22 = vmul.f32 0.1, %v1135_v62  ;;  %vm1240_vm13 = vcmp.ge.f32.partialorder %v1135_v62, 0.0 }
 0x1fc   : > { %v1725_v18 = vpack.c.bf16 %v4849_v7, %v4841_v3  ;;  %v1192_v17 = vpop.f32.mrf.mxu2 }
 0x1fd   : > { %v1193_v14 = vadd.f32 %v1192_v17, %v1164_v5  ;;  %v4861_v28 = vsel %vm1240_vm13, %v1135_v62, %v1256_v22 }
 0x1fe   : > { %1733 = vst [vmem:[#allocation4 + $0x108] sm:$0xff] %v1725_v18  ;;  %v1107_v20 = vpop.f32.mrf.mxu1  ;;  %1420 = vrot.lane.b32.xlu0 %v4841_v3, %s4150_s8  ;;  %1624 = vrot.lane.b32.xlu2 %v4841_v3, %s4148_s4  ;;  %v1226_v49 = vpop.f32.mrf.mxu0 }
 0x1ff   : > { %v1108_v23 = vadd.f32 %v1107_v20, %v1079_v19  ;;  %v1222_v25 = vadd.f32 %v1221_v0, %v1193_v14  ;;  %1522 = vrot.lane.b32.xlu1 %v4841_v3, %s4149_s27  ;;  %v1173_v18 = vpop.f32.mrf.mxu3 }
 0x200   : > { %v1174_v19 = vadd.f32 %v1173_v18, %v802_v54 }
 0x201   : > { %vm1241_vm14 = vcmp.ge.f32.partialorder %v1222_v25, 0.0  ;;  %v1257_v26 = vmul.f32 0.1, %v1222_v25  ;;  %v1137_v36 = vadd.f32 %v4811_v35, %v1108_v23 }
 0x203   : > { %v4864_v37 = vsel %vm1241_vm14, %v1222_v25, %v1257_v26  ;;  %v1258_v35 = vmul.f32 0.1, %v1137_v36  ;;  %vm1242_vm15 = vcmp.ge.f32.partialorder %v1137_v36, 0.0  ;;  %v1089_v26 = vadd.f32 %v4823_v21, %v807_v32 }
 0x204   : > { %v1726_v45 = vpack.c.bf16 %v4864_v37, %v4861_v28  ;;  %v1194_v46 = vpop.f32.mrf.mxu2 }
 0x205   : > { %v1195_v38 = vadd.f32 %v1194_v46, %v1166_v27  ;;  %v4875_v42 = vsel %vm1242_vm15, %v1137_v36, %v1258_v35 }
 0x206   : > { %1734 = vst [vmem:[#allocation4 + $0x110] sm:$0xff] %v1726_v45  ;;  %v1110_v48 = vpop.f32.mrf.mxu1  ;;  %1320 = vrot.lane.b32.xlu0 %v4861_v28, %s4152_s10  ;;  %1626 = vrot.lane.b32.xlu2 %v4861_v28, %s4148_s4  ;;  %v1228_v63 = vpop.f32.mrf.mxu0 }
 0x207   : > { %v1111_v50 = vadd.f32 %v1110_v48, %v1082_v47  ;;  %v1224_v34 = vadd.f32 %v1223_v61, %v1195_v38  ;;  %1758 = vrot.lane.b32.xlu1 %v4841_v3, %s4155_s9  ;;  %v1175_v45 = vpop.f32.mrf.mxu3 }
 0x208   : > { %v1176_v21 = vadd.f32 %v1175_v45, %v807_v32 }
 0x209   : > { %vm1243_vm5 = vcmp.ge.f32.partialorder %v1224_v34, 0.0  ;;  %v1259_v51 = vmul.f32 0.1, %v1224_v34  ;;  %v1140_v53 = vadd.f32 %v4815_v30, %v1111_v50 }
 0x20b   : > { %v4878_v41 = vsel %vm1243_vm5, %v1224_v34, %v1259_v51  ;;  %v1260_v60 = vmul.f32 0.1, %v1140_v53  ;;  %vm1244_vm9 = vcmp.ge.f32.partialorder %v1140_v53, 0.0 }
 0x20c   : > { %v1727_v43 = vpack.c.bf16 %v4878_v41, %v4875_v42  ;;  %v1197_v1 = vpop.f32.mrf.mxu2 }
 0x20d   : > { %v1198_v58 = vadd.f32 %v1197_v1, %v1169_v52  ;;  %v4889_v13 = vsel %vm1244_vm9, %v1140_v53, %v1260_v60 }
 0x20e   : > { %1735 = vst [vmem:[#allocation4 + $0x118] sm:$0xff] %v1727_v43  ;;  %v1112_v56 = vpop.f32.mrf.mxu1  ;;  %1422 = vrot.lane.b32.xlu0 %v4861_v28, %s4150_s8  ;;  %1762 = vrot.lane.b32.xlu2 %v4875_v42, %s4155_s9  ;;  %v1231_v61 = vpop.f32.mrf.mxu0 }
 0x20f   : > { %v1113_v30 = vadd.f32 %v1112_v56, %v1084_v57  ;;  %v1227_v0 = vadd.f32 %v1226_v49, %v1198_v58  ;;  %1760 = vrot.lane.b32.xlu1 %v4861_v28, %s4155_s9 }
 0x211   : > { %vm1245_vm10 = vcmp.ge.f32.partialorder %v1227_v0, 0.0  ;;  %v1261_v31 = vmul.f32 0.1, %v1227_v0  ;;  %v1142_v4 = vadd.f32 %v4819_v24, %v1113_v30 }
 0x213   : > { %v4892_v12 = vsel %vm1245_vm10, %v1227_v0, %v1261_v31  ;;  %v1262_v6 = vmul.f32 0.1, %v1142_v4  ;;  %vm1246_vm11 = vcmp.ge.f32.partialorder %v1142_v4, 0.0 }
 0x214   : > { %v1728_v40 = vpack.c.bf16 %v4892_v12, %v4889_v13  ;;  %v1199_v15 = vpop.f32.mrf.mxu2 }
 0x215   : > { %v1200_v2 = vadd.f32 %v1199_v15, %v1171_v10  ;;  %v4903_v14 = vsel %vm1246_vm11, %v1142_v4, %v1262_v6 }
 0x216   : > { %1736 = vst [vmem:[#allocation4 + $0x120] sm:$0xff] %v1728_v40  ;;  %v1115_v5 = vpop.f32.mrf.mxu1  ;;  %1524 = vrot.lane.b32.xlu0 %v4861_v28, %s4149_s27  ;;  %1324 = vrot.lane.b32.xlu2 %v4889_v13, %s4152_s10  ;;  %v1233_v50 = vpop.f32.mrf.mxu0 }
 0x217   : > { %v1116_v62 = vadd.f32 %v1115_v5, %v1087_v16  ;;  %v1229_v24 = vadd.f32 %v1228_v63, %v1200_v2  ;;  %1322 = vrot.lane.b32.xlu1 %v4875_v42, %s4152_s10 }
 0x219   : > { %vm1247_vm12 = vcmp.ge.f32.partialorder %v1229_v24, 0.0  ;;  %v1263_v17 = vmul.f32 0.1, %v1229_v24  ;;  %v1145_v20 = vadd.f32 %v4825_v33, %v1116_v62 }
 0x21b   : > { %v4906_v22 = vsel %vm1247_vm12, %v1229_v24, %v1263_v17  ;;  %v1264_v36 = vmul.f32 0.1, %v1145_v20  ;;  %vm1248_vm13 = vcmp.ge.f32.partialorder %v1145_v20, 0.0 }
 0x21c   : > { %v1729_v23 = vpack.c.bf16 %v4906_v22, %v4903_v14  ;;  %v1202_v25 = vpop.f32.mrf.mxu2 }
 0x21d   : > { %v1203_v8 = vadd.f32 %v1202_v25, %v1174_v19  ;;  %v4917_v47 = vsel %vm1248_vm13, %v1145_v20, %v1264_v36 }
 0x21e   : > { %1737 = vst [vmem:[#allocation4 + $0x128] sm:$0xff] %v1729_v23  ;;  %v1117_v27 = vpop.f32.mrf.mxu1  ;;  %1628 = vrot.lane.b32.xlu0 %v4875_v42, %s4148_s4  ;;  %1428 = vrot.lane.b32.xlu2 %v4903_v14, %s4150_s8 }
 0x21f   : > { %v1118_v39 = vadd.f32 %v1117_v27, %v1089_v26  ;;  %v1232_v33 = vadd.f32 %v1231_v61, %v1203_v8  ;;  %1424 = vrot.lane.b32.xlu1 %v4875_v42, %s4150_s8 }
 0x221   : > { %vm1249_vm14 = vcmp.ge.f32.partialorder %v1232_v33, 0.0  ;;  %v1265_v46 = vmul.f32 0.1, %v1232_v33  ;;  %v1147_v38 = vadd.f32 %v4827_v44, %v1118_v39  ;;  %v3405_v39 = vld [vmem:[%s6049_s1 + $0x4] sm:$0x3] }
 0x222   : > { %v5107_v45 = vperm.slane %v3405_v39, 1 }
 0x223   : > { %v4920_v48 = vsel %vm1249_vm14, %v1232_v33, %v1265_v46  ;;  %v1266_v51 = vmul.f32 0.1, %v1147_v38  ;;  %vm1250_vm15 = vcmp.ge.f32.partialorder %v1147_v38, 0.0  ;;  %v5105_v33 = vperm.slane %v3405_v39, 0 }
 0x224   : > { %v1730_v49 = vpack.c.bf16 %v4920_v48, %v4917_v47  ;;  %v1204_v35 = vpop.f32.mrf.mxu2 }
 0x225   : > { %v1205_v34 = vadd.f32 %v1204_v35, %v1176_v21  ;;  %v4930_v52 = vsel %vm1250_vm15, %v1147_v38, %v1266_v51  ;;  %v3407_v51 = vld [vmem:[%s6049_s1 + $0xa] sm:$0x3] }
 0x226   : > { %1738 = vst [vmem:[#allocation4 + $0x130] sm:$0xff] %v1730_v49  ;;  %1630 = vrot.lane.b32.xlu0 %v4889_v13, %s4148_s4  ;;  %1970 = vrot.lane.b32.xlu2 %v4903_v14, %s6083_s26 }
 0x227   : > { %v1234_v29 = vadd.f32 %v1233_v50, %v1205_v34  ;;  %1526 = vrot.lane.b32.xlu1 %v4875_v42, %s4149_s27 }
 0x229   : > { %vm1251_vm5 = vcmp.ge.f32.partialorder %v1234_v29, 0.0  ;;  %v1267_v44 = vmul.f32 0.1, %v1234_v29 }
 0x22b   : > { %v4932_v53 = vsel %vm1251_vm5, %v1234_v29, %v1267_v44  ;;  %v5130_v44 = vperm.slane %v3407_v51, 0 }
 0x22c   : > { %v1731_v43 = vpack.c.bf16 %v4932_v53, %v4930_v52 }
 0x22e   : > { %1739 = vst [vmem:[#allocation4 + $0x138] sm:$0xff] %v1731_v43  ;;  %1528 = vrot.lane.b32.xlu0 %v4889_v13, %s4149_s27  ;;  %1430 = vrot.lane.b32.xlu2 %v4917_v47, %s4150_s8  ;;  %v5132_v43 = vperm.slane %v3407_v51, 1  ;;  %v3404_v51 = vld [vmem:[%s6049_s1 + $0x2] sm:$0x3] }
 0x22f   : > { %1426 = vrot.lane.b32.xlu1 %v4889_v13, %s4150_s8 }
 0x236   : > { %1764 = vrot.lane.b32.xlu0 %v4889_v13, %s4155_s9  ;;  %1768 = vrot.lane.b32.xlu2 %v4917_v47, %s4155_s9 }
 0x237   : > { %1968 = vrot.lane.b32.xlu1 %v4889_v13, %s6083_s26 }
 0x23e   : > { %1326 = vrot.lane.b32.xlu0 %v4903_v14, %s4152_s10  ;;  %1972 = vrot.lane.b32.xlu2 %v4917_v47, %s6083_s26 }
 0x23f   : > { %1632 = vrot.lane.b32.xlu1 %v4903_v14, %s4148_s4 }
 0x246   : > { %1532 = vrot.lane.b32.xlu0 %v4917_v47, %s4149_s27  ;;  %1330 = vrot.lane.b32.xlu2 %v4930_v52, %s4152_s10 }
 0x247   : > { %1530 = vrot.lane.b32.xlu1 %v4903_v14, %s4149_s27 }
 0x248   : > { %v4960_v1 = vpop.permute.xlu2 %1418 }
 0x24e   : > { %1432 = vrot.lane.b32.xlu0 %v4930_v52, %s4150_s8  ;;  %1636 = vrot.lane.b32.xlu2 %v4930_v52, %s4148_s4 }
 0x24f   : > { %1766 = vrot.lane.b32.xlu1 %v4903_v14, %s4155_s9 }
 0x250   : > { %v4968_v57 = vpop.permute.xlu2 %1318 }
 0x256   : > { %1770 = vrot.lane.b32.xlu0 %v4930_v52, %s4155_s9  ;;  %1536 = vrot.lane.b32.xlu2 %v4837_v9, %s4149_s27 }
 0x257   : > { %1328 = vrot.lane.b32.xlu1 %v4917_v47, %s4152_s10 }
 0x258   : > { %v4976_v58 = vpop.permute.xlu2 %1624 }
 0x25e   : > { %1974 = vrot.lane.b32.xlu0 %v4930_v52, %s6083_s26  ;;  %1772 = vrot.lane.b32.xlu2 %v4837_v9, %s4155_s9 }
 0x25f   : > { %1634 = vrot.lane.b32.xlu1 %v4917_v47, %s4148_s4 }
 0x260   : > { %v4984_v59 = vpop.permute.xlu0 %1520  ;;  %v4986_v56 = vpop.permute.xlu2 %1626 }
 0x261   : > { %v4988_v60 = vpop.permute.xlu1 %1316 }
 0x266   : > { %1436 = vrot.lane.b32.xlu2 %v4849_v7, %s4150_s8  ;;  %1332 = vrot.lane.b32.xlu0 %v4837_v9, %s4152_s10 }
 0x267   : > { %1534 = vrot.lane.b32.xlu1 %v4930_v52, %s4149_s27 }
 0x268   : > { %v4996_v30 = vpop.permute.xlu0 %1756  ;;  %v4998_v0 = vpop.permute.xlu2 %1762 }
 0x269   : > { %v5000_v63 = vpop.permute.xlu1 %1622 }
 0x26e   : > { %1438 = vrot.lane.b32.xlu2 %v4864_v37, %s4150_s8  ;;  %1638 = vrot.lane.b32.xlu0 %v4837_v9, %s4148_s4 }
 0x26f   : > { %1434 = vrot.lane.b32.xlu1 %v4837_v9, %s4150_s8 }
 0x270   : > { %v5008_v31 = vpop.permute.xlu0 %1420  ;;  %v5010_v54 = vpop.permute.xlu2 %1324 }
 0x271   : > { %v5012_v10 = vpop.permute.xlu1 %1522 }
 0x276   : > { %1540 = vrot.lane.b32.xlu2 %v4864_v37, %s4149_s27  ;;  %1538 = vrot.lane.b32.xlu0 %v4849_v7, %s4149_s27 }
 0x277   : > { %1640 = vrot.lane.b32.xlu1 %v4849_v7, %s4148_s4 }
 0x278   : > { %v5020_v4 = vpop.permute.xlu0 %1320  ;;  %v5022_v40 = vpop.permute.xlu2 %1428 }
 0x279   : > { %6084 = vst [vmem:[#allocation14_spill] sm:$0xff] %v5022_v40  ;;  %v5024_v15 = vpop.permute.xlu1 %1758 }
 0x27e   : > { %1644 = vrot.lane.b32.xlu2 %v4878_v41, %s4148_s4  ;;  %1774 = vrot.lane.b32.xlu0 %v4849_v7, %s4155_s9 }
 0x27f   : > { %1334 = vrot.lane.b32.xlu1 %v4849_v7, %s4152_s10 }
 0x280   : > { %v5032_v16 = vpop.permute.xlu0 %1422  ;;  %v5034_v2 = vpop.permute.xlu2 %1970 }
 0x281   : > { %6085 = vst [vmem:[#allocation15_spill] sm:$0xff] %v5034_v2  ;;  %v5036_v5 = vpop.permute.xlu1 %1760  ;;  %v5155_v2 = vperm.slane %v3404_v51, 0 }
 0x286   : > { %1338 = vrot.lane.b32.xlu2 %v4878_v41, %s4152_s10  ;;  %1776 = vrot.lane.b32.xlu0 %v4864_v37, %s4155_s9 }
 0x287   : > { %1642 = vrot.lane.b32.xlu1 %v4864_v37, %s4148_s4 }
 0x288   : > { %v5044_v6 = vpop.permute.xlu0 %1524  ;;  %v5046_v62 = vpop.permute.xlu2 %1430 }
 0x289   : > { %6086 = vst [vmem:[#allocation16_spill] sm:$0xff] %v5046_v62  ;;  %v5048_v24 = vpop.permute.xlu1 %1322 }
 0x28e   : > { %1646 = vrot.lane.b32.xlu2 %v4892_v12, %s4148_s4  ;;  %1440 = vrot.lane.b32.xlu0 %v4878_v41, %s4150_s8 }
 0x28f   : > { %1336 = vrot.lane.b32.xlu1 %v4864_v37, %s4152_s10 }
 0x290   : > { %v5056_v18 = vpop.permute.xlu0 %1628  ;;  %v5058_v17 = vpop.permute.xlu2 %1768 }
 0x291   : > { %6087 = vst [vmem:[#allocation17_spill] sm:$0xff] %v5058_v17  ;;  %v5060_v32 = vpop.permute.xlu1 %1424 }
 0x296   : > { %1544 = vrot.lane.b32.xlu2 %v4892_v12, %s4149_s27  ;;  %1542 = vrot.lane.b32.xlu0 %v4878_v41, %s4149_s27 }
 0x297   : > { %1778 = vrot.lane.b32.xlu1 %v4878_v41, %s4155_s9 }
 0x298   : > { %v5068_v61 = vpop.permute.xlu0 %1630  ;;  %v5070_v19 = vpop.permute.xlu2 %1972 }
 0x299   : > { %6088 = vst [vmem:[#allocation18_spill] sm:$0xff] %v5070_v19  ;;  %v5072_v20 = vpop.permute.xlu1 %1526 }
 0x29e   : > { %1780 = vrot.lane.b32.xlu2 %v4892_v12, %s4155_s9  ;;  %1442 = vrot.lane.b32.xlu0 %v4892_v12, %s4150_s8 }
 0x29f   : > { %1340 = vrot.lane.b32.xlu1 %v4892_v12, %s4152_s10 }
 0x2a0   : > { %v5080_v23 = vpop.permute.xlu0 %1528  ;;  %v5082_v25 = vpop.permute.xlu2 %1330 }
 0x2a1   : > { %v5084_v26 = vpop.permute.xlu1 %1426 }
 0x2a6   : > { %1342 = vrot.lane.b32.xlu2 %v4906_v22, %s4152_s10  ;;  %1648 = vrot.lane.b32.xlu0 %v4906_v22, %s4148_s4 }
 0x2a7   : > { %1444 = vrot.lane.b32.xlu1 %v4906_v22, %s4150_s8 }
 0x2a8   : > { %v5092_v8 = vpop.permute.xlu0 %1764  ;;  %v5094_v27 = vpop.permute.xlu2 %1636 }
 0x2a9   : > { %6089 = vst [vmem:[#allocation19_spill] sm:$0xff] %v5094_v27  ;;  %v5096_v36 = vpop.permute.xlu1 %1968  ;;  %v5157_v27 = vperm.slane %v3404_v51, 1 }
 0x2aa   : > { %6090 = vst [vmem:[#allocation20_spill] sm:$0xff] %v5096_v36 }
 0x2ae   : > { %1548 = vrot.lane.b32.xlu2 %v4920_v48, %s4149_s27  ;;  %1546 = vrot.lane.b32.xlu0 %v4906_v22, %s4149_s27 }
 0x2af   : > { %1446 = vrot.lane.b32.xlu1 %v4920_v48, %s4150_s8 }
 0x2b0   : > { %v5111_v46 = vpop.permute.xlu0 %1326  ;;  %v1537_v21 = vpop.permute.xlu2 %1536 }
 0x2b1   : > { %v5113_v38 = vpop.permute.xlu1 %1632  ;;  %v1552_v49 = vsel %vm429_vm1, %v4984_v59, %v1537_v21  ;;  %v1560_v35 = vsel %vm429_vm1, %v1537_v21, %v4984_v59 }
 0x2b2   : > { %v1574_v50 = vmul.f32 %v5105_v33, %v1560_v35  ;;  %v1575_v34 = vmul.f32 %v5107_v45, %v1552_v49 }
 0x2b4   : > { %v1590_v29 = vpack.c.bf16 %v1575_v34, %v1574_v50 }
 0x2b6   : > { %1598 = vst [vmem:[#allocation4 + $0x80] sm:$0xff] %v1590_v29  ;;  %1448 = vrot.lane.b32.xlu2 %v4932_v53, %s4150_s8  ;;  %1782 = vrot.lane.b32.xlu0 %v4906_v22, %s4155_s9 }
 0x2b7   : > { %1344 = vrot.lane.b32.xlu1 %v4920_v48, %s4152_s10 }
 0x2b8   : > { %v5136_v59 = vpop.permute.xlu0 %1532  ;;  %v1773_v39 = vpop.permute.xlu2 %1772 }
 0x2b9   : > { %v5138_v21 = vpop.permute.xlu1 %1530  ;;  %v1788_v49 = vsel %vm533_vm8, %v4996_v30, %v1773_v39  ;;  %v1796_v35 = vsel %vm533_vm8, %v1773_v39, %v4996_v30 }
 0x2ba   : > { %6091 = vst [vmem:[#allocation21_spill] sm:$0xff] %v5138_v21  ;;  %v1810_v50 = vmul.f32 %v5130_v44, %v1788_v49  ;;  %v1811_v34 = vmul.f32 %v5132_v43, %v1796_v35 }
 0x2bc   : > { %v1826_v29 = vpack.c.bf16 %v1811_v34, %v1810_v50 }
 0x2be   : > { %1834 = vst [vmem:[#allocation4 + $0x140] sm:$0xff] %v1826_v29  ;;  %1346 = vrot.lane.b32.xlu2 %v4932_v53, %s4152_s10  ;;  %1650 = vrot.lane.b32.xlu0 %v4920_v48, %s4148_s4 }
 0x2bf   : > { %1784 = vrot.lane.b32.xlu1 %v4920_v48, %s4155_s9 }
 0x2c0   : > { %v5161_v30 = vpop.permute.xlu0 %1432  ;;  %v1437_v39 = vpop.permute.xlu2 %1436 }
 0x2c1   : > { %v5163_v49 = vpop.permute.xlu1 %1766  ;;  %v1451_v35 = vsel %vm381_vm2, %v5008_v31, %v1437_v39  ;;  %v1459_v50 = vsel %vm381_vm2, %v1437_v39, %v5008_v31 }
 0x2c2   : > { %6092 = vst [vmem:[#allocation22_spill] sm:$0xff] %v5163_v49  ;;  %v1474_v34 = vmul.f32 %v5155_v2, %v1459_v50  ;;  %v1475_v51 = vmul.f32 %v5157_v27, %v1451_v35 }
 0x2c4   : > { %v1489_v29 = vpack.c.bf16 %v1475_v51, %v1474_v34 }
 0x2c6   : > { %1497 = vst [vmem:[#allocation4 + $0x48] sm:$0xff] %v1489_v29  ;;  %1786 = vrot.lane.b32.xlu2 %v4932_v53, %s4155_s9  ;;  %1550 = vrot.lane.b32.xlu0 %v4932_v53, %s4149_s27  ;;  %s4090_s27 = scalar_lea.hbm %s6054_s6, 256 }
 0x2c7   : > { %1988 = vrot.lane.b32.xlu1 %v4920_v48, %s6083_s26 }
 0x2c8   : > { %v5179_v36 = vpop.permute.xlu0 %1770  ;;  %v1439_v19 = vpop.permute.xlu2 %1438 }
 0x2c9   : > { %6093 = vst [vmem:[#allocation23_spill] sm:$0xff] %v5179_v36  ;;  %v5181_v17 = vpop.permute.xlu1 %1328  ;;  %v1452_v31 = vsel %vm381_vm2, %v5032_v16, %v1439_v19  ;;  %v1460_v39 = vsel %vm381_vm2, %v1439_v19, %v5032_v16 }
 0x2ca   : > { %6094 = vst [vmem:[#allocation24_spill] sm:$0xff] %v5181_v17  ;;  %v1476_v35 = vmul.f32 %v5155_v2, %v1460_v39  ;;  %v1477_v50 = vmul.f32 %v5157_v27, %v1452_v31 }
 0x2cc   : > { %v1490_v34 = vpack.c.bf16 %v1477_v50, %v1476_v35  ;;  %v3406_v35 = vld [vmem:[%s6049_s1 + $0x6] sm:$0x3]  ;;  %v1364_v50 = vld [vmem:[%s6049_s1] sm:$0x3] }
 0x2ce   : > { %1498 = vst [vmem:[#allocation4 + $0x50] sm:$0xff] %v1490_v34  ;;  %1990 = vrot.lane.b32.xlu2 %v4932_v53, %s6083_s26  ;;  %1984 = vrot.lane.b32.xlu0 %v4892_v12, %s6083_s26 }
 0x2cf   : > { %1652 = vrot.lane.b32.xlu1 %v4932_v53, %s4148_s4  ;;  %s6114_s4 = sshll.u32 %s4289_s19, 7 }
 0x2d0   : > { %v5197_v51 = vpop.permute.xlu0 %1974  ;;  %v1541_v29 = vpop.permute.xlu2 %1540  ;;  %s5936_s9 = scalar_lea.vmem [#allocation10], %s6114_s4 }
 0x2d1   : > { %6095 = vst [vmem:[#allocation25_spill] sm:$0xff] %v5197_v51  ;;  %v5199_v17 = vpop.permute.xlu1 %1634  ;;  %v1554_v16 = vsel %vm429_vm1, %v5044_v6, %v1541_v29  ;;  %v1562_v19 = vsel %vm429_vm1, %v1541_v29, %v5044_v6  ;;  %v5219_v6 = vperm.slane %v3406_v35, 0  ;;  %v5221_v29 = vperm.slane %v3406_v35, 1  ;;  %s3100_s12 = sshll.u32 %s5936_s9, 4  ;;  %s3101_s12 = int_to_ptr.vmem [resolvable:$true] %s3100_s12 }
 0x2d2   : > { %6096 = vst [vmem:[#allocation26_spill] sm:$0xff] %v5199_v17  ;;  %v1578_v31 = vmul.f32 %v5105_v33, %v1562_v19  ;;  %v1579_v39 = vmul.f32 %v5107_v45, %v1554_v16  ;;  %v5223_v16 = vperm.slane %v1364_v50, 0  ;;  %v5225_v19 = vperm.slane %v1364_v50, 1 }
 0x2d4   : > { %v1592_v34 = vpack.c.bf16 %v1579_v39, %v1578_v31 }
 0x2d6   : > { %1600 = vst [vmem:[#allocation4 + $0x90] sm:$0xff] %v1592_v34  ;;  %1964 = vrot.lane.b32.xlu2 %v4861_v28, %s6083_s26  ;;  %1966 = vrot.lane.b32.xlu0 %v4875_v42, %s6083_s26 }
 0x2d7   : > { %1986 = vrot.lane.b32.xlu1 %v4906_v22, %s6083_s26 }
 0x2d8   : > { %v1645_v17 = vpop.permute.xlu2 %1644  ;;  %v1333_v31 = vpop.permute.xlu0 %1332 }
 0x2d9   : > { %v5229_v39 = vpop.permute.xlu1 %1534  ;;  %v1657_v34 = vsel %vm477_vm0, %v5056_v18, %v1645_v17  ;;  %v1665_v35 = vsel %vm477_vm0, %v1645_v17, %v5056_v18  ;;  %v1348_v50 = vsel %vm334_vm4, %v4988_v60, %v1333_v31  ;;  %v1356_v49 = vsel %vm334_vm4, %v1333_v31, %v4988_v60 }
 0x2da   : > { %6097 = vst [vmem:[#allocation27_spill] sm:$0xff] %v5229_v39  ;;  %v1682_v51 = vmul.f32 %v5219_v6, %v1665_v35  ;;  %v1683_v39 = vmul.f32 %v5221_v29, %v1657_v34  ;;  %v1370_v62 = vmul.f32 %v5223_v16, %v1356_v49  ;;  %v1371_v21 = vmul.f32 %v5225_v19, %v1348_v50 }
 0x2dc   : > { %v1695_v36 = vpack.c.bf16 %v1683_v39, %v1682_v51  ;;  %v1386_v40 = vpack.c.bf16 %v1371_v21, %v1370_v62 }
 0x2de   : > { %1703 = vst [vmem:[#allocation4 + $0xd8] sm:$0xff] %v1695_v36  ;;  %1982 = vrot.lane.b32.xlu2 %v4878_v41, %s6083_s26  ;;  %1960 = vrot.lane.b32.xlu0 %v4829_v55, %s6083_s26 }
 0x2df   : > { %1394 = vst [vmem:[#allocation4] sm:$0xff] %v1386_v40  ;;  %1980 = vrot.lane.b32.xlu1 %v4864_v37, %s6083_s26 }
 0x2e0   : > { %v1339_v60 = vpop.permute.xlu2 %1338  ;;  %v1639_v18 = vpop.permute.xlu0 %1638 }
 0x2e1   : > { %v1351_v17 = vsel %vm334_vm4, %v5048_v24, %v1339_v60  ;;  %v1359_v62 = vsel %vm334_vm4, %v1339_v60, %v5048_v24  ;;  %v1435_v36 = vpop.permute.xlu1 %1434  ;;  %v1654_v21 = vsel %vm477_vm0, %v5000_v63, %v1639_v18  ;;  %v1662_v40 = vsel %vm477_vm0, %v1639_v18, %v5000_v63 }
 0x2e2   : > { %v1376_v49 = vmul.f32 %v5223_v16, %v1359_v62  ;;  %v1377_v51 = vmul.f32 %v5225_v19, %v1351_v17  ;;  %v1450_v31 = vsel %vm381_vm2, %v4960_v1, %v1435_v36  ;;  %v1458_v24 = vsel %vm381_vm2, %v1435_v36, %v4960_v1 }
 0x2e3   : > { %v1472_v39 = vmul.f32 %v5155_v2, %v1458_v24  ;;  %v1473_v34 = vmul.f32 %v5157_v27, %v1450_v31  ;;  %v1676_v35 = vmul.f32 %v5219_v6, %v1662_v40  ;;  %v1677_v63 = vmul.f32 %v5221_v29, %v1654_v21 }
 0x2e4   : > { %v1389_v50 = vpack.c.bf16 %v1377_v51, %v1376_v49 }
 0x2e5   : > { %v1488_v60 = vpack.c.bf16 %v1473_v34, %v1472_v39  ;;  %v1692_v18 = vpack.c.bf16 %v1677_v63, %v1676_v35 }
 0x2e6   : > { %1397 = vst [vmem:[#allocation4 + $0x18] sm:$0xff] %v1389_v50  ;;  %1976 = vrot.lane.b32.xlu2 %v4837_v9, %s6083_s26  ;;  %1978 = vrot.lane.b32.xlu0 %v4849_v7, %s6083_s26 }
 0x2e7   : > { %1496 = vst [vmem:[#allocation4 + $0x40] sm:$0xff] %v1488_v60  ;;  %1962 = vrot.lane.b32.xlu1 %v4841_v3, %s6083_s26 }
 0x2e8   : > { %1700 = vst [vmem:[#allocation4 + $0xc0] sm:$0xff] %v1692_v18  ;;  %v1647_v1 = vpop.permute.xlu2 %1646  ;;  %v1539_v17 = vpop.permute.xlu0 %1538 }
 0x2e9   : > { %v1658_v62 = vsel %vm477_vm0, %v5068_v61, %v1647_v1  ;;  %v1666_v36 = vsel %vm477_vm0, %v1647_v1, %v5068_v61  ;;  %v1641_v21 = vpop.permute.xlu1 %1640  ;;  %v1553_v40 = vsel %vm429_vm1, %v5012_v10, %v1539_v17  ;;  %v1561_v49 = vsel %vm429_vm1, %v1539_v17, %v5012_v10 }
 0x2ea   : > { %v1684_v51 = vmul.f32 %v5219_v6, %v1666_v36  ;;  %v1685_v31 = vmul.f32 %v5221_v29, %v1658_v62  ;;  %v1655_v24 = vsel %vm477_vm0, %v4976_v58, %v1641_v21  ;;  %v1663_v61 = vsel %vm477_vm0, %v1641_v21, %v4976_v58 }
 0x2eb   : > { %v1678_v39 = vmul.f32 %v5219_v6, %v1663_v61  ;;  %v1679_v34 = vmul.f32 %v5221_v29, %v1655_v24  ;;  %v1576_v35 = vmul.f32 %v5105_v33, %v1561_v49  ;;  %v1577_v10 = vmul.f32 %v5107_v45, %v1553_v40 }
 0x2ec   : > { %v1696_v63 = vpack.c.bf16 %v1685_v31, %v1684_v51 }
 0x2ed   : > { %v1693_v50 = vpack.c.bf16 %v1679_v34, %v1678_v39  ;;  %v1591_v60 = vpack.c.bf16 %v1577_v10, %v1576_v35 }
 0x2ee   : > { %1704 = vst [vmem:[#allocation4 + $0xe0] sm:$0xff] %v1696_v63  ;;  %1872 = vrot.lane.b32.xlu2 %v4930_v52, %s6098_s15  ;;  %1886 = vrot.lane.b32.xlu0 %v4920_v48, %s6098_s15 }
 0x2ef   : > { %1701 = vst [vmem:[#allocation4 + $0xc8] sm:$0xff] %v1693_v50  ;;  %1870 = vrot.lane.b32.xlu1 %v4917_v47, %s6098_s15 }
 0x2f0   : > { %1599 = vst [vmem:[#allocation4 + $0x88] sm:$0xff] %v1591_v60  ;;  %v1545_v58 = vpop.permute.xlu2 %1544  ;;  %v1775_v18 = vpop.permute.xlu0 %1774 }
 0x2f1   : > { %v1556_v1 = vsel %vm429_vm1, %v5080_v23, %v1545_v58  ;;  %v1564_v17 = vsel %vm429_vm1, %v1545_v58, %v5080_v23  ;;  %v1335_v62 = vpop.permute.xlu1 %1334  ;;  %v1789_v36 = vsel %vm533_vm8, %v5024_v15, %v1775_v18  ;;  %v1797_v21 = vsel %vm533_vm8, %v1775_v18, %v5024_v15 }
 0x2f2   : > { %v1582_v40 = vmul.f32 %v5105_v33, %v1564_v17  ;;  %v1583_v49 = vmul.f32 %v5107_v45, %v1556_v1  ;;  %v1349_v51 = vsel %vm334_vm4, %v4968_v57, %v1335_v62  ;;  %v1357_v23 = vsel %vm334_vm4, %v1335_v62, %v4968_v57 }
 0x2f3   : > { %v1372_v31 = vmul.f32 %v5223_v16, %v1357_v23  ;;  %v1373_v24 = vmul.f32 %v5225_v19, %v1349_v51  ;;  %v1812_v61 = vmul.f32 %v5130_v44, %v1789_v36  ;;  %v1813_v15 = vmul.f32 %v5132_v43, %v1797_v21 }
 0x2f4   : > { %v1594_v39 = vpack.c.bf16 %v1583_v49, %v1582_v40 }
 0x2f5   : > { %v1387_v34 = vpack.c.bf16 %v1373_v24, %v1372_v31  ;;  %v1827_v35 = vpack.c.bf16 %v1813_v15, %v1812_v61 }
 0x2f6   : > { %1602 = vst [vmem:[#allocation4 + $0xa0] sm:$0xff] %v1594_v39  ;;  %2074 = vrot.lane.b32.xlu2 %v4917_v47, %s6099_s13  ;;  %2076 = vrot.lane.b32.xlu0 %v4930_v52, %s6099_s13 }
 0x2f7   : > { %1395 = vst [vmem:[#allocation4 + $0x8] sm:$0xff] %v1387_v34  ;;  %1888 = vrot.lane.b32.xlu1 %v4932_v53, %s6098_s15 }
 0x2f8   : > { %1835 = vst [vmem:[#allocation4 + $0x148] sm:$0xff] %v1827_v35  ;;  %v1781_v57 = vpop.permute.xlu2 %1780  ;;  %v1777_v10 = vpop.permute.xlu0 %1776 }
 0x2f9   : > { %v1792_v63 = vsel %vm533_vm8, %v5092_v8, %v1781_v57  ;;  %v1800_v50 = vsel %vm533_vm8, %v1781_v57, %v5092_v8  ;;  %v1643_v60 = vpop.permute.xlu1 %1642  ;;  %v1790_v47 = vsel %vm533_vm8, %v5036_v5, %v1777_v10  ;;  %v1798_v52 = vsel %vm533_vm8, %v1777_v10, %v5036_v5 }
 0x2fa   : > { %v1818_v58 = vmul.f32 %v5130_v44, %v1792_v63  ;;  %v1819_v18 = vmul.f32 %v5132_v43, %v1800_v50  ;;  %v1656_v1 = vsel %vm477_vm0, %v4986_v56, %v1643_v60  ;;  %v1664_v8 = vsel %vm477_vm0, %v1643_v60, %v4986_v56 }
 0x2fb   : > { %v1680_v17 = vmul.f32 %v5219_v6, %v1664_v8  ;;  %v1681_v62 = vmul.f32 %v5221_v29, %v1656_v1  ;;  %v1814_v36 = vmul.f32 %v5130_v44, %v1790_v47  ;;  %v1815_v5 = vmul.f32 %v5132_v43, %v1798_v52 }
 0x2fc   : > { %v1830_v21 = vpack.c.bf16 %v1819_v18, %v1818_v58 }
 0x2fd   : > { %v1694_v40 = vpack.c.bf16 %v1681_v62, %v1680_v17  ;;  %v1828_v49 = vpack.c.bf16 %v1815_v5, %v1814_v36 }
 0x2fe   : > { %1838 = vst [vmem:[#allocation4 + $0x160] sm:$0xff] %v1830_v21  ;;  %2092 = vrot.lane.b32.xlu2 %v4932_v53, %s6099_s13  ;;  %1866 = vrot.lane.b32.xlu0 %v4889_v13, %s6098_s15 }
 0x2ff   : > { %1702 = vst [vmem:[#allocation4 + $0xd0] sm:$0xff] %v1694_v40  ;;  %2090 = vrot.lane.b32.xlu1 %v4920_v48, %s6099_s13 }
 0x300   : > { %1836 = vst [vmem:[#allocation4 + $0x150] sm:$0xff] %v1828_v49  ;;  %v1343_v56 = vpop.permute.xlu2 %1342  ;;  %v1441_v51 = vpop.permute.xlu0 %1440 }
 0x301   : > { %v1353_v23 = vsel %vm334_vm4, %v5111_v46, %v1343_v56  ;;  %v1361_v31 = vsel %vm334_vm4, %v1343_v56, %v5111_v46  ;;  %v1337_v24 = vpop.permute.xlu1 %1336  ;;  %v1453_v53 = vsel %vm381_vm2, %v5060_v32, %v1441_v51  ;;  %v1461_v48 = vsel %vm381_vm2, %v1441_v51, %v5060_v32 }
 0x302   : > { %v1380_v61 = vmul.f32 %v5223_v16, %v1361_v31  ;;  %v1381_v15 = vmul.f32 %v5225_v19, %v1353_v23  ;;  %v1350_v39 = vsel %vm334_vm4, %v5020_v4, %v1337_v24  ;;  %v1358_v46 = vsel %vm334_vm4, %v1337_v24, %v5020_v4 }
 0x303   : > { %v1374_v34 = vmul.f32 %v5223_v16, %v1358_v46  ;;  %v1375_v35 = vmul.f32 %v5225_v19, %v1350_v39  ;;  %v1478_v57 = vmul.f32 %v5155_v2, %v1461_v48  ;;  %v1479_v32 = vmul.f32 %v5157_v27, %v1453_v53 }
 0x304   : > { %v1391_v10 = vpack.c.bf16 %v1381_v15, %v1380_v61 }
 0x305   : > { %v1388_v63 = vpack.c.bf16 %v1375_v35, %v1374_v34  ;;  %v1491_v50 = vpack.c.bf16 %v1479_v32, %v1478_v57 }
 0x306   : > { %1399 = vst [vmem:[#allocation4 + $0x28] sm:$0xff] %v1391_v10  ;;  %1882 = vrot.lane.b32.xlu2 %v4892_v12, %s6098_s15  ;;  %1884 = vrot.lane.b32.xlu0 %v4906_v22, %s6098_s15 }
 0x307   : > { %1396 = vst [vmem:[#allocation4 + $0x10] sm:$0xff] %v1388_v63  ;;  %1868 = vrot.lane.b32.xlu1 %v4903_v14, %s6098_s15 }
 0x308   : > { %1499 = vst [vmem:[#allocation4 + $0x58] sm:$0xff] %v1491_v50  ;;  %v1549_v4 = vpop.permute.xlu2 %1548  ;;  %v1543_v60 = vpop.permute.xlu0 %1542 }
 0x309   : > { %v1558_v47 = vsel %vm429_vm1, %v5136_v59, %v1549_v4  ;;  %v1566_v52 = vsel %vm429_vm1, %v1549_v4, %v5136_v59  ;;  %v1779_v58 = vpop.permute.xlu1 %1778  ;;  %v1555_v18 = vsel %vm429_vm1, %v5072_v20, %v1543_v60  ;;  %v1563_v1 = vsel %vm429_vm1, %v1543_v60, %v5072_v20 }
 0x30a   : > { %v1586_v8 = vmul.f32 %v5105_v33, %v1566_v52  ;;  %v1587_v17 = vmul.f32 %v5107_v45, %v1558_v47  ;;  %v1791_v62 = vsel %vm533_vm8, %v4998_v0, %v1779_v58  ;;  %v1799_v59 = vsel %vm533_vm8, %v1779_v58, %v4998_v0  ;;  %v6100_v47 = vld [vmem:[#allocation14_spill] sm:$0xff] }
 0x30b   : > { %v1816_v36 = vmul.f32 %v5130_v44, %v1791_v62  ;;  %v1817_v5 = vmul.f32 %v5132_v43, %v1799_v59  ;;  %v1580_v21 = vmul.f32 %v5105_v33, %v1563_v1  ;;  %v1581_v20 = vmul.f32 %v5107_v45, %v1555_v18 }
 0x30c   : > { %v1596_v40 = vpack.c.bf16 %v1587_v17, %v1586_v8 }
 0x30d   : > { %v1829_v49 = vpack.c.bf16 %v1817_v5, %v1816_v36  ;;  %v1593_v56 = vpack.c.bf16 %v1581_v20, %v1580_v21  ;;  %v6101_v5 = vld [vmem:[#allocation23_spill] sm:$0xff] }
 0x30e   : > { %1604 = vst [vmem:[#allocation4 + $0xb0] sm:$0xff] %v1596_v40  ;;  %2072 = vrot.lane.b32.xlu2 %v4903_v14, %s6099_s13  ;;  %2086 = vrot.lane.b32.xlu0 %v4892_v12, %s6099_s13 }
 0x30f   : > { %1837 = vst [vmem:[#allocation4 + $0x158] sm:$0xff] %v1829_v49  ;;  %2070 = vrot.lane.b32.xlu1 %v4889_v13, %s6099_s13  ;;  %v6102_v49 = vld [vmem:[#allocation21_spill] sm:$0xff] }
 0x310   : > { %1601 = vst [vmem:[#allocation4 + $0x98] sm:$0xff] %v1593_v56  ;;  %v1449_v0 = vpop.permute.xlu2 %1448  ;;  %v1443_v51 = vpop.permute.xlu0 %1442 }
 0x311   : > { %v1457_v23 = vsel %vm381_vm2, %v5161_v30, %v1449_v0  ;;  %v1465_v31 = vsel %vm381_vm2, %v1449_v0, %v5161_v30  ;;  %v1341_v24 = vpop.permute.xlu1 %1340  ;;  %v1454_v12 = vsel %vm381_vm2, %v5084_v26, %v1443_v51  ;;  %v1462_v13 = vsel %vm381_vm2, %v1443_v51, %v5084_v26 }
 0x312   : > { %v1486_v14 = vmul.f32 %v5155_v2, %v1465_v31  ;;  %v1487_v53 = vmul.f32 %v5157_v27, %v1457_v23  ;;  %v1352_v48 = vsel %vm334_vm4, %v5010_v54, %v1341_v24  ;;  %v1360_v30 = vsel %vm334_vm4, %v1341_v24, %v5010_v54  ;;  %v6103_v23 = vld [vmem:[#allocation16_spill] sm:$0xff] }
 0x313   : > { %v1378_v61 = vmul.f32 %v5223_v16, %v1360_v30  ;;  %v1379_v15 = vmul.f32 %v5225_v19, %v1352_v48  ;;  %v1480_v39 = vmul.f32 %v5155_v2, %v1462_v13  ;;  %v1481_v26 = vmul.f32 %v5157_v27, %v1454_v12  ;;  %v3409_v48 = vld [vmem:[%s6049_s1 + $0xe] sm:$0x3] }
 0x314   : > { %v1495_v46 = vpack.c.bf16 %v1487_v53, %v1486_v14 }
 0x315   : > { %v1390_v34 = vpack.c.bf16 %v1379_v15, %v1378_v61  ;;  %v1492_v35 = vpack.c.bf16 %v1481_v26, %v1480_v39 }
 0x316   : > { %1503 = vst [vmem:[#allocation4 + $0x78] sm:$0xff] %v1495_v46  ;;  %1862 = vrot.lane.b32.xlu2 %v4861_v28, %s6098_s15  ;;  %1864 = vrot.lane.b32.xlu0 %v4875_v42, %s6098_s15  ;;  %v6104_v46 = vld [vmem:[#allocation25_spill] sm:$0xff] }
 0x317   : > { %1398 = vst [vmem:[#allocation4 + $0x20] sm:$0xff] %v1390_v34  ;;  %2088 = vrot.lane.b32.xlu1 %v4906_v22, %s6099_s13 }
 0x318   : > { %1500 = vst [vmem:[#allocation4 + $0x60] sm:$0xff] %v1492_v35  ;;  %v1347_v54 = vpop.permute.xlu2 %1346  ;;  %v1649_v57 = vpop.permute.xlu0 %1648  ;;  %v6105_v35 = vld [vmem:[#allocation22_spill] sm:$0xff] }
 0x319   : > { %v1355_v32 = vsel %vm334_vm4, %v5082_v25, %v1347_v54  ;;  %v1363_v10 = vsel %vm334_vm4, %v1347_v54, %v5082_v25  ;;  %v1445_v63 = vpop.permute.xlu1 %1444  ;;  %v1659_v50 = vsel %vm477_vm0, %v5113_v38, %v1649_v57  ;;  %v1667_v22 = vsel %vm477_vm0, %v1649_v57, %v5113_v38 }
 0x31a   : > { %v1384_v4 = vmul.f32 %v5223_v16, %v1363_v10  ;;  %v1385_v60 = vmul.f32 %v5225_v19, %v1355_v32  ;;  %v1455_v52 = vsel %vm381_vm2, %v6100_v47, %v1445_v63  ;;  %v1463_v25 = vsel %vm381_vm2, %v1445_v63, %v6100_v47  ;;  %v6106_v10 = vld [vmem:[#allocation24_spill] sm:$0xff] }
 0x31b   : > { %v1482_v58 = vmul.f32 %v5155_v2, %v1463_v25  ;;  %v1483_v18 = vmul.f32 %v5157_v27, %v1455_v52  ;;  %v1686_v1 = vmul.f32 %v5219_v6, %v1667_v22  ;;  %v1687_v38 = vmul.f32 %v5221_v29, %v1659_v50 }
 0x31c   : > { %v1393_v8 = vpack.c.bf16 %v1385_v60, %v1384_v4 }
 0x31d   : > { %v1493_v17 = vpack.c.bf16 %v1483_v18, %v1482_v58  ;;  %v1697_v62 = vpack.c.bf16 %v1687_v38, %v1686_v1  ;;  %v3876_v1 = vld [vmem:[#allocation4 + $0x74] sm:$0xf0] }
 0x31e   : > { %1401 = vst [vmem:[#allocation4 + $0x38] sm:$0xff] %v1393_v8  ;;  %1880 = vrot.lane.b32.xlu2 %v4878_v41, %s6098_s15  ;;  %2066 = vrot.lane.b32.xlu0 %v4861_v28, %s6099_s13 }
 0x31f   : > { %1501 = vst [vmem:[#allocation4 + $0x68] sm:$0xff] %v1493_v17  ;;  %1878 = vrot.lane.b32.xlu1 %v4864_v37, %s6098_s15 }
 0x320   : > { %1705 = vst [vmem:[#allocation4 + $0xe8] sm:$0xff] %v1697_v62  ;;  %v1787_v59 = vpop.permute.xlu2 %1786  ;;  %v1547_v36 = vpop.permute.xlu0 %1546  ;;  %v6107_v62 = vld [vmem:[#allocation26_spill] sm:$0xff] }
 0x321   : > { %v1795_v21 = vsel %vm533_vm8, %v6101_v5, %v1787_v59  ;;  %v1803_v20 = vsel %vm533_vm8, %v1787_v59, %v6101_v5  ;;  %v1447_v40 = vpop.permute.xlu1 %1446  ;;  %v1557_v28 = vsel %vm429_vm1, %v6102_v49, %v1547_v36  ;;  %v1565_v56 = vsel %vm429_vm1, %v1547_v36, %v6102_v49  ;;  %v6108_v5 = vld [vmem:[#allocation17_spill] sm:$0xff] }
 0x322   : > { %v1824_v0 = vmul.f32 %v5130_v44, %v1795_v21  ;;  %v1825_v51 = vmul.f32 %v5132_v43, %v1803_v20  ;;  %v1456_v31 = vsel %vm381_vm2, %v6103_v23, %v1447_v40  ;;  %v1464_v24 = vsel %vm381_vm2, %v1447_v40, %v6103_v23 }
 0x323   : > { %v1484_v12 = vmul.f32 %v5155_v2, %v1464_v24  ;;  %v1485_v13 = vmul.f32 %v5157_v27, %v1456_v31  ;;  %v1584_v14 = vmul.f32 %v5105_v33, %v1565_v56  ;;  %v1585_v53 = vmul.f32 %v5107_v45, %v1557_v28  ;;  %v3541_v28 = vld [vmem:[#allocation4 + $0x60] sm:$0xf]  ;;  %v3872_v31 = vld [vmem:[#allocation4 + $0x54] sm:$0xf0] }
 0x324   : > { %v1833_v30 = vpack.c.bf16 %v1825_v51, %v1824_v0  ;;  %v5524_v2 = vperm.slane %v3409_v48, 0  ;;  %v5526_v27 = vperm.slane %v3409_v48, 1  ;;  %v6109_v48 = vld [vmem:[#allocation27_spill] sm:$0xff] }
 0x325   : > { %v1494_v61 = vpack.c.bf16 %v1485_v13, %v1484_v12  ;;  %v1595_v15 = vpack.c.bf16 %v1585_v53, %v1584_v14  ;;  %v3533_v12 = vld [vmem:[#allocation4 + $0x50] sm:$0xf]  ;;  %v3525_v14 = vld [vmem:[#allocation4 + $0x40] sm:$0xf] }
 0x326   : > { %1841 = vst [vmem:[#allocation4 + $0x178] sm:$0xff] %v1833_v30  ;;  %2082 = vrot.lane.b32.xlu2 %v4864_v37, %s6099_s13  ;;  %2084 = vrot.lane.b32.xlu0 %v4878_v41, %s6099_s13  ;;  %v3874_v8 = vld [vmem:[#allocation4 + $0x64] sm:$0xf0] }
 0x327   : > { %1502 = vst [vmem:[#allocation4 + $0x70] sm:$0xff] %v1494_v61  ;;  %2068 = vrot.lane.b32.xlu1 %v4875_v42, %s6099_s13  ;;  %v3542_v51 = vor.u32 %v3874_v8, %v3541_v28  ;;  %v3669_v8 = vld [vmem:[#allocation4 + $0x160] sm:$0xf] }
 0x328   : > { %1603 = vst [vmem:[#allocation4 + $0xa8] sm:$0xff] %v1595_v15  ;;  %v1991_v39 = vpop.permute.xlu2 %1990  ;;  %v1783_v26 = vpop.permute.xlu0 %1782 }
 0x329   : > { %v1999_v34 = vsel %vm629_vm6, %v6104_v46, %v1991_v39  ;;  %v2007_v37 = vsel %vm629_vm6, %v1991_v39, %v6104_v46  ;;  %v1345_v41 = vpop.permute.xlu1 %1344  ;;  %v1793_v54 = vsel %vm533_vm8, %v6105_v35, %v1783_v26  ;;  %v1801_v42 = vsel %vm533_vm8, %v1783_v26, %v6105_v35  ;;  %v3870_v46 = vld [vmem:[#allocation4 + $0x44] sm:$0xf0]  ;;  %v2244_v35 = vld [vmem:[%s6053_s5] sm:$0xff] }
 0x32a   : > { %v2028_v57 = vmul.f32 %v5524_v2, %v1999_v34  ;;  %v2029_v32 = vmul.f32 %v5526_v27, %v2007_v37  ;;  %v1354_v63 = vsel %vm334_vm4, %v6106_v10, %v1345_v41  ;;  %v1362_v50 = vsel %vm334_vm4, %v1345_v41, %v6106_v10 }
 0x32b   : > { %v1382_v22 = vmul.f32 %v5223_v16, %v1362_v50  ;;  %v1383_v4 = vmul.f32 %v5225_v19, %v1354_v63  ;;  %v1820_v60 = vmul.f32 %v5130_v44, %v1793_v54  ;;  %v1821_v47 = vmul.f32 %v5132_v43, %v1801_v42 }
 0x32c   : > { %v2037_v52 = vpack.c.bf16 %v2029_v32, %v2028_v57  ;;  %v3526_v41 = vor.u32 %v3870_v46, %v3525_v14  ;;  %v3868_v32 = vld [vmem:[#allocation4 + $0x34] sm:$0xf0] }
 0x32d   : > { %v1392_v25 = vpack.c.bf16 %v1383_v4, %v1382_v22  ;;  %v1831_v58 = vpack.c.bf16 %v1821_v47, %v1820_v60  ;;  %v3509_v4 = vld [vmem:[#allocation4 + $0x20] sm:$0xf] }
 0x32e   : > { %2045 = vst [vmem:[#allocation4 + $0x1f8] sm:$0xff] %v2037_v52  ;;  %1860 = vrot.lane.b32.xlu2 %v4841_v3, %s6098_s15  ;;  %1874 = vrot.lane.b32.xlu0 %v4837_v9, %s6098_s15  ;;  %v3549_v18 = vld [vmem:[#allocation4 + $0x70] sm:$0xf] }
 0x32f   : > { %1400 = vst [vmem:[#allocation4 + $0x30] sm:$0xff] %v1392_v25  ;;  %1858 = vrot.lane.b32.xlu1 %v4829_v55, %s6098_s15  ;;  %v3550_v16 = vor.u32 %v3876_v1, %v3549_v18  ;;  %v6111_v52 = vld [vmem:[#allocation20_spill] sm:$0xff] }
 0x330   : > { %1839 = vst [vmem:[#allocation4 + $0x168] sm:$0xff] %v1831_v58  ;;  %v5560_v19 = vpop.permute.xlu2 %1964  ;;  %v1651_v38 = vpop.permute.xlu0 %1650  ;;  %v6112_v58 = vld [vmem:[#allocation19_spill] sm:$0xff] }
 0x331   : > { %2765 = vmatpush.bf16.msrb.mxu1 %v3550_v16  ;;  %v1785_v17 = vpop.permute.xlu1 %1784  ;;  %v1660_v59 = vsel %vm477_vm0, %v6107_v62, %v1651_v38  ;;  %v1668_v36 = vsel %vm477_vm0, %v1651_v38, %v6107_v62  ;;  %v3866_v38 = vld [vmem:[#allocation4 + $0x24] sm:$0xf0] }
 0x332   : > { %v1794_v21 = vsel %vm533_vm8, %v6108_v5, %v1785_v17  ;;  %v1802_v20 = vsel %vm533_vm8, %v1785_v17, %v6108_v5  ;;  %v1688_v40 = vmul.f32 %v5219_v6, %v1668_v36  ;;  %v1689_v49 = vmul.f32 %v5221_v29, %v1660_v59  ;;  %v2246_v5 = vld [vmem:[%s6053_s5 + $0x10] sm:$0xff] }
 0x333   : > { %v1822_v56 = vmul.f32 %v5130_v44, %v1794_v21  ;;  %v1823_v0 = vmul.f32 %v5132_v43, %v1802_v20  ;;  %v3534_v44 = vor.u32 %v3872_v31, %v3533_v12  ;;  %v3510_v59 = vor.u32 %v3866_v38, %v3509_v4  ;;  %v2247_v21 = vld [vmem:[%s6053_s5 + $0x18] sm:$0xff]  ;;  %v3661_v31 = vld [vmem:[#allocation4 + $0x150] sm:$0xf] }
 0x334   : > { %v1698_v23 = vpack.c.bf16 %v1689_v49, %v1688_v40  ;;  %v2245_v40 = vld [vmem:[%s6053_s5 + $0x8] sm:$0xff]  ;;  %v3501_v49 = vld [vmem:[#allocation4 + $0x10] sm:$0xf] }
 0x335   : > { %v1832_v24 = vpack.c.bf16 %v1823_v0, %v1822_v56  ;;  %2766 = vmatpush.bf16.msrb.mxu1 %v3542_v51  ;;  %v3924_v0 = vld [vmem:[#allocation4 + $0x1f4] sm:$0xf0] }
 0x336   : > { %1706 = vst [vmem:[#allocation4 + $0xf0] sm:$0xff] %v1698_v23  ;;  %2062 = vrot.lane.b32.xlu2 %v4829_v55, %s6099_s13  ;;  %2064 = vrot.lane.b32.xlu0 %v4841_v3, %s6099_s13  ;;  %v6110_v3 = vld [vmem:[#allocation18_spill] sm:$0xff]  ;;  %v3517_v42 = vld [vmem:[#allocation4 + $0x30] sm:$0xf] }
 0x337   : > { %1840 = vst [vmem:[#allocation4 + $0x170] sm:$0xff] %v1832_v24  ;;  %1876 = vrot.lane.b32.xlu1 %v4849_v7, %s6098_s15  ;;  %v3518_v63 = vor.u32 %v3868_v32, %v3517_v42  ;;  %v3906_v60 = vld [vmem:[#allocation4 + $0x164] sm:$0xf0]  ;;  %v2248_v32 = vld [vmem:[%s6053_s5 + $0x20] sm:$0xff]  ;;  %v3671_v11 = vld [vmem:[#allocation4 + $0x168] sm:$0xf0] }
 0x338   : > { %v5584_v13 = vpop.permute.xlu2 %1982  ;;  %v1551_v43 = vpop.permute.xlu0 %1550  ;;  %v3670_v36 = vor.u32 %v3906_v60, %v3669_v8  ;;  %s3933_s15 = sshll.u32 %s4215_s25, 4  ;;  %s3088_s25 = scalar_lea.sflag [#allocation7], %s4289_s19 }
 0x339   : > { %v1989_v53 = vpop.permute.xlu1 %1988  ;;  %2767 = vmatpush.bf16.msrb.mxu1 %v3534_v44  ;;  %v1559_v30 = vsel %vm429_vm1, %v6109_v48, %v1551_v43  ;;  %v1567_v55 = vsel %vm429_vm1, %v1551_v43, %v6109_v48  ;;  %v3862_v43 = vld [vmem:[#allocation4 + $0x4] sm:$0xf0]  ;;  %s3099_s30 = scalar_lea.hbm %s6054_s6, %s3933_s15 }
 0x33a   : > { %v1998_v61 = vsel %vm629_vm6, %v6110_v3, %v1989_v53  ;;  %v2006_v15 = vsel %vm629_vm6, %v1989_v53, %v6110_v3  ;;  %v1588_v39 = vmul.f32 %v5105_v33, %v1567_v55  ;;  %v1589_v26 = vmul.f32 %v5107_v45, %v1559_v30  ;;  %v3908_v45 = vld [vmem:[#allocation4 + $0x174] sm:$0xf0]  ;;  %v3902_v30 = vld [vmem:[#allocation4 + $0x144] sm:$0xf0]  ;;  %v3413_v55 = vld [vmem:[#allocation8] sm:$0xf] }
 0x33b   : > { %v2026_v34 = vmul.f32 %v5524_v2, %v1998_v61  ;;  %v2027_v37 = vmul.f32 %v5526_v27, %v2006_v15  ;;  %v3843_v3 = vld [vmem:[#allocation8 + $0x10] sm:$0xf0]  ;;  %v6113_v61 = vld [vmem:[#allocation15_spill] sm:$0xff]  ;;  %s3102_s14 = sshll.u32 %s3099_s30, 4  ;;  %s3103_s14 = int_to_ptr.hbm [resolvable:$true] %s3102_s14 }
 0x33c   : > { %v1597_v54 = vpack.c.bf16 %v1589_v26, %v1588_v39  ;;  %s4084_s18 = sshra.s32 %s3103_s14, 4  ;;  %s4085_s18 = int_to_ptr.hbm [resolvable:$true] %s4084_s18 }
 0x33d   : > { %v2036_v57 = vpack.c.bf16 %v2027_v37, %v2026_v34  ;;  %2768 = vmatpush.bf16.msrb.mxu1 %v3526_v41  ;;  %v3493_v34 = vld [vmem:[#allocation4] sm:$0xf]  ;;  %s4086_s7 = scalar_lea.hbm %s4085_s18, 128  ;;  %p4091_p11 = scmp.lt.s32.totalorder %s4085_s18, %s6054_s6 }
 0x33e   : > { %1605 = vst [vmem:[#allocation4 + $0xb8] sm:$0xff] %v1597_v54  ;;  %2080 = vrot.lane.b32.xlu2 %v4849_v7, %s6099_s13  ;;  %2254 = vperm.xlu0 %4009, %v2244_v35   ;;  %v3677_v33 = vld [vmem:[#allocation4 + $0x170] sm:$0xf]  ;;  %v3494_v41 = vor.u32 %v3862_v43, %v3493_v34  ;;  %v3653_v35 = vld [vmem:[#allocation4 + $0x140] sm:$0xf]  ;;  %v2249_v54 = vld [vmem:[%s6053_s5 + $0x28] sm:$0xff]  ;;  %p4087_p1 = scmp.ne.s32.totalorder %s4085_s18, %s4086_s7  ;;  %p4092_p9 = scmp.lt.s32.totalorder %s4090_s27, %s4086_s7 }
 0x33f   : > { %2044 = vst [vmem:[#allocation4 + $0x1f0] sm:$0xff] %v2036_v57  ;;  %2078 = vrot.lane.b32.xlu1 %v4837_v9, %s6099_s13  ;;  %v3678_v10 = vor.u32 %v3908_v45, %v3677_v33  ;;  %v3654_v57 = vor.u32 %v3902_v30, %v3653_v35  ;;  %v2250_v33 = vld [vmem:[%s6053_s5 + $0x30] sm:$0xff]  ;;  %v5663_v45 = vor.u32 %v3843_v3, %v3413_v55  ;;  %v3433_v30 = vld [vmem:[#allocation8 + $0x28] sm:$0xf]  ;;  %v3848_v55 = vld [vmem:[#allocation8 + $0x38] sm:$0xf0] }
 0x340   : > { %v5609_v50 = vpop.permute.xlu2 %1976  ;;  %v1985_v22 = vpop.permute.xlu0 %1984  ;;  %p4088_p4 = pnand %p4087_p1, %p4261_p7  ;;  %p4093_p2 = por %p4092_p9, %p4091_p11 }
 0x341   : > { %2823 = vmatpush.bf16.msra.mxu2 %v3678_v10  ;;  %v1653_v47 = vpop.permute.xlu1 %1652  ;;  %2769 = vmatpush.bf16.msrb.mxu1 %v3518_v63  ;;  %v1996_v7 = vsel %vm629_vm6, %v6111_v52, %v1985_v22  ;;  %v2004_v25 = vsel %vm629_vm6, %v1985_v22, %v6111_v52  ;;  %v3900_v63 = vld [vmem:[#allocation4 + $0x134] sm:$0xf0]  ;;  %v3613_v22 = vld [vmem:[#allocation4 + $0xf0] sm:$0xf] }
 0x342   : > { %v1661_v9 = vsel %vm477_vm0, %v6112_v58, %v1653_v47  ;;  %v1669_v18 = vsel %vm477_vm0, %v1653_v47, %v6112_v58  ;;  %v2022_v1 = vmul.f32 %v5524_v2, %v1996_v7  ;;  %v2023_v16 = vmul.f32 %v5526_v27, %v2004_v25  ;;  %v3645_v47 = vld [vmem:[#allocation4 + $0x130] sm:$0xf]  ;;  %v3890_v58 = vld [vmem:[#allocation4 + $0xe4] sm:$0xf0]  ;;  %p4089_p8 = pneg %p4088_p4 }
 0x343   : > { %v1690_v17 = vmul.f32 %v5219_v6, %v1669_v18  ;;  %v1691_v62 = vmul.f32 %v5221_v29, %v1661_v9  ;;  %v3864_v6 = vld [vmem:[#allocation4 + $0x14] sm:$0xf0]  ;;  %v3646_v7 = vor.u32 %v3900_v63, %v3645_v47  ;;  %v3581_v63 = vld [vmem:[#allocation4 + $0xb0] sm:$0xf]  ;;  %vm2752_vm0 = vcmask 523264  }
 0x344   : > { %v2034_v20 = vpack.c.bf16 %v2023_v16, %v2022_v1  ;;  %v3904_v29 = vld [vmem:[#allocation4 + $0x154] sm:$0xf0]  ;;  %v3502_v23 = vor.u32 %v3864_v6, %v3501_v49  ;;  %v3898_v16 = vld [vmem:[#allocation4 + $0x124] sm:$0xf0]  ;;  %p4094_p10 = pnand %p4093_p2, %p4089_p8 }
 0x345   : > { %v1699_v28 = vpack.c.bf16 %v1691_v62, %v1690_v17  ;;  %2770 = vmatpush.bf16.msrb.mxu1 %v3510_v59  ;;  %2824 = vmatpush.bf16.msra.mxu2 %v3670_v36  ;;  %v3662_v12 = vor.u32 %v3904_v29, %v3661_v31  ;;  %v3605_v59 = vld [vmem:[#allocation4 + $0xe0] sm:$0xf]  ;;  %v2251_v49 = vld [vmem:[%s6053_s5 + $0x38] sm:$0xff]  ;;  %v3629_v29 = vld [vmem:[#allocation4 + $0x110] sm:$0xf] }
 0x346   : > { %2042 = vst [vmem:[#allocation4 + $0x1e0] sm:$0xff] %v2034_v20  ;;  %2264 = vperm.xlu2 %4008, %v2246_v5   ;;  %2269 = vperm.xlu0 %4009, %v2247_v21   ;;  %v3741_v56 = vld [vmem:[#allocation4 + $0x1f0] sm:$0xf]  ;;  %v3637_v21 = vld [vmem:[#allocation4 + $0x120] sm:$0xf] }
 0x347   : > { %1707 = vst [vmem:[#allocation4 + $0xf8] sm:$0xff] %v1699_v28  ;;  %2259 = vperm.xlu1 %4007, %v2245_v40   ;;  %v3742_v51 = vor.u32 %v3924_v0, %v3741_v56  ;;  %v3638_v40 = vor.u32 %v3898_v16, %v3637_v21  ;;  %v3597_v28 = vld [vmem:[#allocation4 + $0xd0] sm:$0xf]  ;;  %v3888_v6 = vld [vmem:[#allocation4 + $0xd4] sm:$0xf0] }
 0x348   : > { %v5636_v24 = vpop.permute.xlu2 %1872  ;;  %v1967_v44 = vpop.permute.xlu0 %1966  ;;  %v3896_v56 = vld [vmem:[#allocation4 + $0x114] sm:$0xf0]  ;;  %v3410_v21 = vld [vmem:[%s6049_s1 + $0x10] sm:$0x3] }
 0x349   : > { %2852 = vmatpush.bf16.msra.mxu0 %v3742_v51  ;;  %v1987_v14 = vpop.permute.xlu1 %1986  ;;  %2771 = vmatpush.bf16.msrb.mxu1 %v3502_v23  ;;  %v1995_v53 = vsel %vm629_vm6, %v1967_v44, %v5584_v13  ;;  %v2003_v48 = vsel %vm629_vm6, %v5584_v13, %v1967_v44  ;;  %v3598_v23 = vor.u32 %v3888_v6, %v3597_v28  ;;  %v3591_v6 = vld [vmem:[#allocation4 + $0xc8] sm:$0xf0] }
 0x34a   : > { %v1997_v15 = vsel %vm629_vm6, %v6113_v61, %v1987_v14  ;;  %v2005_v39 = vsel %vm629_vm6, %v1987_v14, %v6113_v61  ;;  %2825 = vmatpush.bf16.msra.mxu2 %v3662_v12  ;;  %v2020_v26 = vmul.f32 %v5524_v2, %v1995_v53  ;;  %v2021_v46 = vmul.f32 %v5526_v27, %v2003_v48  ;;  %v3886_v14 = vld [vmem:[#allocation4 + $0xc4] sm:$0xf0] }
 0x34b   : > { %v2024_v37 = vmul.f32 %v5524_v2, %v1997_v15  ;;  %v2025_v13 = vmul.f32 %v5526_v27, %v2005_v39  ;;  %v3630_v44 = vor.u32 %v3896_v56, %v3629_v29  ;;  %v3894_v48 = vld [vmem:[#allocation4 + $0x104] sm:$0xf0]  ;;  %v3589_v15 = vld [vmem:[#allocation4 + $0xc0] sm:$0xf] }
 0x34c   : > { %v2033_v42 = vpack.c.bf16 %v2021_v46, %v2020_v26  ;;  %v3590_v34 = vor.u32 %v3886_v14, %v3589_v15  ;;  %v3878_v14 = vld [vmem:[#allocation4 + $0x84] sm:$0xf0]  ;;  %v3853_v15 = vld [vmem:[#allocation8 + $0x60] sm:$0xf0] }
 0x34d   : > { %v2035_v10 = vpack.c.bf16 %v2025_v13, %v2024_v37  ;;  %2772 = vmatpush.bf16.msrb.mxu1 %v3494_v41  ;;  %v3733_v0 = vld [vmem:[#allocation4 + $0x1e0] sm:$0xf]  ;;  %v3421_v13 = vld [vmem:[#allocation8 + $0x8] sm:$0xf]  ;;  %v3844_v41 = vld [vmem:[#allocation8 + $0x18] sm:$0xf0] }
 0x34e   : > { %2041 = vst [vmem:[#allocation4 + $0x1d8] sm:$0xff] %v2033_v42  ;;  %2826 = vmatpush.bf16.msra.mxu2 %v3654_v57  ;;  %2279 = vperm.xlu2 %4008, %v2249_v54   ;;  %v3892_v4 = vld [vmem:[#allocation4 + $0xf4] sm:$0xf0]  ;;  %v3615_v39 = vld [vmem:[#allocation4 + $0xf8] sm:$0xf0]  ;;  %v5695_v42 = vor.u32 %v3848_v55, %v3433_v30 }
 0x34f   : > { %2043 = vst [vmem:[#allocation4 + $0x1e8] sm:$0xff] %v2035_v10  ;;  %2274 = vperm.xlu1 %4007, %v2248_v32   ;;  %2284 = vperm.xlu0 %4009, %v2250_v33   ;;  %v3614_v60 = vor.u32 %v3892_v4, %v3613_v22  ;;  %v3621_v37 = vld [vmem:[#allocation4 + $0x100] sm:$0xf]  ;;  %v3891_v54 = vld [vmem:[#allocation4 + $0xf4] sm:$0xf]  ;;  %v5700_v4 = vor.u32 %v3844_v41, %v3421_v13 }
 0x350   : > { %2773 = vmatmul.bf16.vlgmr.msrb.gmra.mxu1 %v5663_v45  ;;  %v5666_v52 = vpop.permute.xlu2 %2074  ;;  %v1961_v25 = vpop.permute.xlu0 %1960  ;;  %v3622_v35 = vor.u32 %v3894_v48, %v3621_v37  ;;  %v3884_v57 = vld [vmem:[#allocation4 + $0xb4] sm:$0xf0]  ;;  %v3408_v32 = vld [vmem:[%s6049_s1 + $0xc] sm:$0x3]  ;;  %v3618_v10 = vor.u32 %v3891_v54, %v3615_v39  ;;  %v3453_v48 = vld [vmem:[#allocation8 + $0x50] sm:$0xf] }
 0x351   : > { %v1981_v9 = vpop.permute.xlu1 %1980  ;;  %2794 = vmatpush.bf16.msrb.mxu3 %v3614_v60  ;;  %v1992_v18 = vsel %vm629_vm6, %v1961_v25, %v5609_v50  ;;  %v2000_v1 = vsel %vm629_vm6, %v5609_v50, %v1961_v25  ;;  %v3606_v50 = vor.u32 %v3890_v58, %v3605_v59  ;;  %v3607_v22 = vld [vmem:[#allocation4 + $0xe8] sm:$0xf0]  ;;  %v3582_v60 = vor.u32 %v3884_v57, %v3581_v63  ;;  %v3887_v59 = vld [vmem:[#allocation4 + $0xd4] sm:$0xf]  ;;  %v3841_v39 = vld [vmem:[#allocation8 + $0x4] sm:$0xf] }
 0x352   : > { %v1994_v38 = vsel %vm629_vm6, %v5560_v19, %v1981_v9  ;;  %v2002_v8 = vsel %vm629_vm6, %v1981_v9, %v5560_v19  ;;  %2827 = vmatpush.bf16.msra.mxu2 %v3646_v7  ;;  %v2014_v17 = vmul.f32 %v5524_v2, %v1992_v18  ;;  %v2015_v62 = vmul.f32 %v5526_v27, %v2000_v1  ;;  %v3889_v9 = vld [vmem:[#allocation4 + $0xe4] sm:$0xf]  ;;  %v3882_v18 = vld [vmem:[#allocation4 + $0xa4] sm:$0xf0]  ;;  %v3557_v41 = vld [vmem:[#allocation4 + $0x80] sm:$0xf] }
 0x353   : > { %v2018_v36 = vmul.f32 %v5524_v2, %v1994_v38  ;;  %v2019_v5 = vmul.f32 %v5526_v27, %v2002_v8  ;;  %v5702_v7 = vperm.slane %v3408_v32, 0  ;;  %v5704_v25 = vperm.slane %v3408_v32, 1  ;;  %v3551_v32 = vld [vmem:[#allocation4 + $0x78] sm:$0xf0] }
 0x354   : > { %v2030_v20 = vpack.c.bf16 %v2015_v62, %v2014_v17  ;;  %v3610_v16 = vor.u32 %v3889_v9, %v3607_v22  ;;  %v3573_v62 = vld [vmem:[#allocation4 + $0xa0] sm:$0xf]  ;;  %v3558_v57 = vor.u32 %v3878_v14, %v3557_v41  ;;  %v3849_v9 = vld [vmem:[#allocation8 + $0x40] sm:$0xf0]  ;;  %v3559_v14 = vld [vmem:[#allocation4 + $0x88] sm:$0xf0] }
 0x355   : > { %v2032_v19 = vpack.c.bf16 %v2019_v5, %v2018_v36  ;;  %2795 = vmatpush.bf16.msrb.mxu3 %v3606_v50  ;;  %v3574_v50 = vor.u32 %v3882_v18, %v3573_v62  ;;  %v3575_v18 = vld [vmem:[#allocation4 + $0xa8] sm:$0xf0] }
 0x356   : > { %2038 = vst [vmem:[#allocation4 + $0x1c0] sm:$0xff] %v2030_v20  ;;  %2828 = vmatpush.bf16.msra.mxu2 %v3638_v40  ;;  %v3922_v51 = vld [vmem:[#allocation4 + $0x1e4] sm:$0xf0]  ;;  %v3599_v20 = vld [vmem:[#allocation4 + $0xd8] sm:$0xf0] }
 0x357   : > { %2040 = vst [vmem:[#allocation4 + $0x1d0] sm:$0xff] %v2032_v19  ;;  %2289 = vperm.xlu1 %4007, %v2251_v49   ;;  %v3734_v31 = vor.u32 %v3922_v51, %v3733_v0  ;;  %v3880_v40 = vld [vmem:[#allocation4 + $0x94] sm:$0xf0]  ;;  %v3602_v28 = vor.u32 %v3887_v59, %v3599_v20  ;;  %v3565_v19 = vld [vmem:[#allocation4 + $0x90] sm:$0xf]  ;;  %v5719_v0 = vperm.slane %v3410_v21, 0 }
 0x358   : > { %v5687_v12 = vpop.permute.xlu2 %2092  ;;  %v1979_v43 = vpop.permute.xlu0 %1978  ;;  %v5721_v51 = vperm.slane %v3410_v21, 1  ;;  %v3535_v21 = vld [vmem:[#allocation4 + $0x58] sm:$0xf0]  ;;  %v3846_v41 = vld [vmem:[#allocation8 + $0x2c] sm:$0xf] }
 0x359   : > { %v1963_v53 = vpop.permute.xlu1 %1962  ;;  %2796 = vmatpush.bf16.msrb.mxu3 %v3598_v23  ;;  %2853 = vmatpush.bf16.msra.mxu0 %v3734_v31  ;;  %v3566_v23 = vor.u32 %v3880_v40, %v3565_v19  ;;  %v3567_v19 = vld [vmem:[#allocation4 + $0x98] sm:$0xf0] }
 0x35a   : > { %2829 = vmatpush.bf16.msra.mxu2 %v3630_v44  ;;  %v1993_v3 = vsel %vm629_vm6, %v1963_v53, %v1979_v43  ;;  %v2001_v61 = vsel %vm629_vm6, %v1979_v43, %v1963_v53  ;;  %v3885_v44 = vld [vmem:[#allocation4 + $0xc4] sm:$0xf]  ;;  %v3875_v53 = vld [vmem:[#allocation4 + $0x74] sm:$0xf] }
 0x35b   : > { %v2016_v26 = vmul.f32 %v5524_v2, %v1993_v3  ;;  %v2017_v46 = vmul.f32 %v5526_v27, %v2001_v61  ;;  %v3920_v27 = vld [vmem:[#allocation4 + $0x1d4] sm:$0xf0]  ;;  %v3594_v61 = vor.u32 %v3885_v44, %v3591_v6  ;;  %v3554_v63 = vor.u32 %v3875_v53, %v3551_v32 }
 0x35d   : > { %v2031_v33 = vpack.c.bf16 %v2017_v46, %v2016_v26  ;;  %2797 = vmatpush.bf16.msrb.mxu3 %v3590_v34  ;;  %v3717_v29 = vld [vmem:[#allocation4 + $0x1c0] sm:$0xf]  ;;  %v3415_v26 = vld [vmem:[#allocation8 + $0x14] sm:$0xf0] }
 0x35e   : > { %2830 = vmatpush.bf16.msra.mxu2 %v3622_v35  ;;  %v3725_v2 = vld [vmem:[#allocation4 + $0x1d0] sm:$0xf]  ;;  %v3583_v35 = vld [vmem:[#allocation4 + $0xb8] sm:$0xf0] }
 0x35f   : > { %2039 = vst [vmem:[#allocation4 + $0x1c8] sm:$0xff] %v2031_v33  ;;  %v3726_v47 = vor.u32 %v3920_v27, %v3725_v2  ;;  %v3883_v2 = vld [vmem:[#allocation4 + $0xb4] sm:$0xf]  ;;  %v5741_v27 = vor.u32 %v3853_v15, %v3453_v48 }
 0x360   : > { %2778 = vmatmul.bf16.gmra.mxu1 %v5695_v42  ;;  %v1887_v58 = vpop.permute.xlu0 %1886  ;;  %v5707_v38 = vpop.permute.xlu2 %1882 }
 0x361   : > { %v1871_v1 = vpop.permute.xlu1 %1870  ;;  %2798 = vmatpush.bf16.msrb.mxu3 %v3582_v60  ;;  %2854 = vmatpush.bf16.msra.mxu0 %v3726_v47  ;;  %v3586_v60 = vor.u32 %v3883_v2, %v3583_v35  ;;  %v3543_v47 = vld [vmem:[#allocation4 + $0x68] sm:$0xf0]  ;;  %v3435_v35 = vld [vmem:[#allocation8 + $0x3c] sm:$0xf0] }
 0x362   : > { %2939 = vmatpush.bf16.msrb.mxu2 %v3618_v10  ;;  %v1896_v8 = vsel %vm581_vm7, %v1871_v1, %v1887_v58  ;;  %v1904_v17 = vsel %vm581_vm7, %v1887_v58, %v1871_v1  ;;  %v3441_v58 = vld [vmem:[#allocation8 + $0x30] sm:$0xf]  ;;  %v3873_v1 = vld [vmem:[#allocation4 + $0x64] sm:$0xf] }
 0x363   : > { %2831 = vmatmul.bf16.vlgmr.msra.gmra.mxu2 %v5700_v4  ;;  %v1924_v36 = vmul.f32 %v5702_v7, %v1896_v8  ;;  %v1925_v5 = vmul.f32 %v5704_v25, %v1904_v17  ;;  %v3546_v8 = vor.u32 %v3873_v1, %v3543_v47  ;;  %v3881_v17 = vld [vmem:[#allocation4 + $0xa4] sm:$0xf]  ;;  %v5747_v62 = vor.u32 %v3849_v9, %v3441_v58  ;;  %v3461_v58 = vld [vmem:[#allocation8 + $0x58] sm:$0xf]  ;;  %v3854_v9 = vld [vmem:[#allocation8 + $0x68] sm:$0xf0] }
 0x364   : > { %v3865_v47 = vld [vmem:[#allocation4 + $0x24] sm:$0xf] }
 0x365   : > { %v1934_v49 = vpack.c.bf16 %v1925_v5, %v1924_v36  ;;  %2799 = vmatpush.bf16.msrb.mxu3 %v3574_v50  ;;  %v3578_v50 = vor.u32 %v3881_v17, %v3575_v18 }
 0x366   : > { %2940 = vmatpush.bf16.msrb.mxu2 %v3610_v16  ;;  %v3918_v56 = vld [vmem:[#allocation4 + $0x1c4] sm:$0xf0] }
 0x367   : > { %1942 = vst [vmem:[#allocation4 + $0x1b0] sm:$0xff] %v1934_v49  ;;  %v3718_v31 = vor.u32 %v3918_v56, %v3717_v29  ;;  %v3871_v29 = vld [vmem:[#allocation4 + $0x54] sm:$0xf] }
 0x368   : > { %v2077_v43 = vpop.permute.xlu0 %2076  ;;  %v5739_v33 = vpop.permute.xlu2 %2072 }
 0x369   : > { %v1889_v30 = vpop.permute.xlu1 %1888  ;;  %2800 = vmatpush.bf16.msrb.mxu3 %v3566_v23  ;;  %2855 = vmatpush.bf16.msra.mxu0 %v3718_v31  ;;  %v2101_v55 = vsel %vm677_vm3, %v2077_v43, %v5687_v12  ;;  %v2109_v3 = vsel %vm677_vm3, %v5687_v12, %v2077_v43  ;;  %v3538_v23 = vor.u32 %v3871_v29, %v3535_v21  ;;  %v3879_v31 = vld [vmem:[#allocation4 + $0x94] sm:$0xf]  ;;  %v3495_v29 = vld [vmem:[#allocation4 + $0x8] sm:$0xf0] }
 0x36a   : > { %2941 = vmatpush.bf16.msrb.mxu2 %v3602_v28  ;;  %v1897_v46 = vsel %vm581_vm7, %v5636_v24, %v1889_v30  ;;  %v1905_v34 = vsel %vm581_vm7, %v1889_v30, %v5636_v24  ;;  %v2130_v37 = vmul.f32 %v5719_v0, %v2101_v55  ;;  %v2131_v13 = vmul.f32 %v5721_v51, %v2109_v3  ;;  %v3527_v3 = vld [vmem:[#allocation4 + $0x48] sm:$0xf0]  ;;  %v3863_v21 = vld [vmem:[#allocation4 + $0x14] sm:$0xf] }
 0x36b   : > { %v1926_v12 = vmul.f32 %v5702_v7, %v1897_v46  ;;  %v1927_v54 = vmul.f32 %v5704_v25, %v1905_v34  ;;  %v5743_v24 = vor.u32 %v3841_v39, %v3415_v26  ;;  %v3570_v43 = vor.u32 %v3879_v31, %v3567_v19  ;;  %v3877_v39 = vld [vmem:[#allocation4 + $0x84] sm:$0xf]  ;;  %v3867_v26 = vld [vmem:[#allocation4 + $0x34] sm:$0xf]  ;;  %v3473_v46 = vld [vmem:[#allocation8 + $0x78] sm:$0xf] }
 0x36c   : > { %v2139_v10 = vpack.c.bf16 %v2131_v13, %v2130_v37  ;;  %v3562_v37 = vor.u32 %v3877_v39, %v3559_v14  ;;  %v3858_v13 = vld [vmem:[#allocation8 + $0x88] sm:$0xf0]  ;;  %v3503_v19 = vld [vmem:[#allocation4 + $0x18] sm:$0xf0]  ;;  %v3455_v39 = vld [vmem:[#allocation8 + $0x64] sm:$0xf0] }
 0x36d   : > { %v1935_v22 = vpack.c.bf16 %v1927_v54, %v1926_v12  ;;  %2801 = vmatpush.bf16.msrb.mxu3 %v3558_v57  ;;  %v5774_v2 = vor.u32 %v3858_v13, %v3473_v46 }
 0x36e   : > { %2942 = vmatpush.bf16.msrb.mxu2 %v3594_v61  ;;  %2147 = vst [vmem:[#allocation4 + $0x238] sm:$0xff] %v2139_v10  ;;  %v3709_v48 = vld [vmem:[#allocation4 + $0x1b0] sm:$0xf]  ;;  %v3519_v10 = vld [vmem:[#allocation4 + $0x38] sm:$0xf0] }
 0x36f   : > { %1943 = vst [vmem:[#allocation4 + $0x1b8] sm:$0xff] %v1935_v22  ;;  %v5776_v22 = vor.u32 %v3846_v41, %v3435_v35 }
 0x370   : > { %2783 = vmatmul.bf16.gmra.mxu1 %v5741_v27  ;;  %2802 = vmatmul.bf16.vlgmr.msrb.gmra.mxu3 %v5743_v24  ;;  %v1867_v16 = vpop.permute.xlu0 %1866  ;;  %v5766_v53 = vpop.permute.xlu2 %1862 }
 0x371   : > { %2910 = vmatpush.bf16.msra.mxu3 %v3554_v63  ;;  %v2091_v59 = vpop.permute.xlu1 %2090  ;;  %v1894_v36 = vsel %vm581_vm7, %v1867_v16, %v5707_v38  ;;  %v1902_v5 = vsel %vm581_vm7, %v5707_v38, %v1867_v16  ;;  %v3522_v63 = vor.u32 %v3867_v26, %v3519_v10  ;;  %v3859_v10 = vld [vmem:[#allocation8 + $0x90] sm:$0xf0] }
 0x372   : > { %2943 = vmatpush.bf16.msrb.mxu2 %v3586_v60  ;;  %v2100_v20 = vsel %vm677_vm3, %v5666_v52, %v2091_v59  ;;  %v2108_v40 = vsel %vm677_vm3, %v2091_v59, %v5666_v52  ;;  %v1920_v49 = vmul.f32 %v5702_v7, %v1894_v36  ;;  %v1921_v28 = vmul.f32 %v5704_v25, %v1902_v5  ;;  %v3869_v52 = vld [vmem:[#allocation4 + $0x44] sm:$0xf] }
 0x373   : > { %v2128_v6 = vmul.f32 %v5719_v0, %v2100_v20  ;;  %v2129_v38 = vmul.f32 %v5721_v51, %v2108_v40  ;;  %2836 = vmatmul.bf16.gmra.mxu2 %v5747_v62  ;;  %v3530_v15 = vor.u32 %v3869_v52, %v3527_v3  ;;  %v5780_v5 = vor.u32 %v3854_v9, %v3461_v58 }
 0x374   : > { %v1932_v56 = vpack.c.bf16 %v1921_v28, %v1920_v49 }
 0x375   : > { %2911 = vmatpush.bf16.msra.mxu3 %v3546_v8  ;;  %v2138_v44 = vpack.c.bf16 %v2129_v38, %v2128_v6  ;;  %v3932_v1 = vld [vmem:[#allocation4 + $0x234] sm:$0xf0]  ;;  %v3511_v8 = vld [vmem:[#allocation4 + $0x28] sm:$0xf0]  ;;  %v3506_v6 = vor.u32 %v3863_v21, %v3503_v19 }
 0x376   : > { %2944 = vmatpush.bf16.msrb.mxu2 %v3578_v50  ;;  %1940 = vst [vmem:[#allocation4 + $0x1a0] sm:$0xff] %v1932_v56  ;;  %v3916_v30 = vld [vmem:[#allocation4 + $0x1b4] sm:$0xf0]  ;;  %v3514_v36 = vor.u32 %v3865_v47, %v3511_v8 }
 0x377   : > { %2146 = vst [vmem:[#allocation4 + $0x230] sm:$0xff] %v2138_v44  ;;  %v3710_v55 = vor.u32 %v3916_v30, %v3709_v48  ;;  %v3775_v48 = vld [vmem:[#allocation4 + $0x238] sm:$0xf0] }
 0x378   : > { %v1885_v61 = vpop.permute.xlu0 %1884  ;;  %v1881_v17 = vpop.permute.xlu2 %1880 }
 0x379   : > { %2912 = vmatpush.bf16.msra.mxu3 %v3538_v23  ;;  %v1869_v34 = vpop.permute.xlu1 %1868  ;;  %2856 = vmatpush.bf16.msra.mxu0 %v3710_v55 }
 0x37a   : > { %2945 = vmatpush.bf16.msrb.mxu2 %v3570_v43  ;;  %v1895_v12 = vsel %vm581_vm7, %v1869_v34, %v1885_v61  ;;  %v1903_v54 = vsel %vm581_vm7, %v1885_v61, %v1869_v34  ;;  %v3861_v43 = vld [vmem:[#allocation4 + $0x4] sm:$0xf] }
 0x37b   : > { %v1922_v57 = vmul.f32 %v5702_v7, %v1895_v12  ;;  %v1923_v32 = vmul.f32 %v5704_v25, %v1903_v54  ;;  %v3498_v14 = vor.u32 %v3861_v43, %v3495_v29  ;;  %v3475_v29 = vld [vmem:[#allocation8 + $0x8c] sm:$0xf0] }
 0x37d   : > { %2913 = vmatpush.bf16.msra.mxu3 %v3530_v15  ;;  %v1933_v60 = vpack.c.bf16 %v1923_v32, %v1922_v57  ;;  %v3701_v56 = vld [vmem:[#allocation4 + $0x1a0] sm:$0xf]  ;;  %v3851_v15 = vld [vmem:[#allocation8 + $0x54] sm:$0xf] }
 0x37e   : > { %2946 = vmatpush.bf16.msrb.mxu2 %v3562_v37  ;;  %v3773_v18 = vld [vmem:[#allocation4 + $0x230] sm:$0xf]  ;;  %v3931_v31 = vld [vmem:[#allocation4 + $0x234] sm:$0xf]  ;;  %v5803_v54 = vor.u32 %v3851_v15, %v3455_v39  ;;  %v3481_v32 = vld [vmem:[#allocation8 + $0x80] sm:$0xf] }
 0x37f   : > { %1941 = vst [vmem:[#allocation4 + $0x1a8] sm:$0xff] %v1933_v60  ;;  %v3774_v16 = vor.u32 %v3932_v1, %v3773_v18  ;;  %v3778_v61 = vor.u32 %v3931_v31, %v3775_v48 }
 0x380   : > { %2788 = vmatmul.bf16.gmra.mxu1 %v5774_v2  ;;  %2807 = vmatmul.bf16.gmra.mxu3 %v5776_v22  ;;  %v2087_v59 = vpop.permute.xlu0 %2086  ;;  %v2083_v26 = vpop.permute.xlu2 %2082 }
 0x381   : > { %2914 = vmatpush.bf16.msra.mxu3 %v3522_v63  ;;  %v2071_v50 = vpop.permute.xlu1 %2070  ;;  %2885 = vmatpush.bf16.msra.mxu1 %v3774_v16  ;;  %v5806_v63 = vor.u32 %v3859_v10, %v3481_v32 }
 0x382   : > { %v2098_v20 = vsel %vm677_vm3, %v2071_v50, %v2087_v59  ;;  %v2106_v40 = vsel %vm677_vm3, %v2087_v59, %v2071_v50 }
 0x383   : > { %v2124_v49 = vmul.f32 %v5719_v0, %v2098_v20  ;;  %v2125_v28 = vmul.f32 %v5721_v51, %v2106_v40  ;;  %2841 = vmatmul.bf16.gmra.mxu2 %v5780_v5 }
 0x385   : > { %2915 = vmatpush.bf16.msra.mxu3 %v3514_v36  ;;  %v2136_v38 = vpack.c.bf16 %v2125_v28, %v2124_v49 }
 0x386   : > { %v3914_v23 = vld [vmem:[#allocation4 + $0x1a4] sm:$0xf0] }
 0x387   : > { %2144 = vst [vmem:[#allocation4 + $0x220] sm:$0xff] %v2136_v38  ;;  %v3702_v44 = vor.u32 %v3914_v23, %v3701_v56  ;;  %v3856_v38 = vld [vmem:[#allocation8 + $0x7c] sm:$0xf] }
 0x388   : > { %v1865_v52 = vpop.permute.xlu0 %1864  ;;  %v1861_v59 = vpop.permute.xlu2 %1860  ;;  %v5829_v43 = vor.u32 %v3856_v38, %v3475_v29  ;;  %v3923_v29 = vld [vmem:[#allocation4 + $0x1f4] sm:$0xf] }
 0x389   : > { %2916 = vmatpush.bf16.msra.mxu3 %v3506_v6  ;;  %v2089_v30 = vpop.permute.xlu1 %2088  ;;  %2857 = vmatpush.bf16.msra.mxu0 %v3702_v44  ;;  %v1893_v55 = vsel %vm581_vm7, %v1865_v52, %v1881_v17  ;;  %v1901_v3 = vsel %vm581_vm7, %v1881_v17, %v1865_v52 }
 0x38a   : > { %v2099_v46 = vsel %vm677_vm3, %v5739_v33, %v2089_v30  ;;  %v2107_v34 = vsel %vm677_vm3, %v2089_v30, %v5739_v33  ;;  %v1918_v37 = vmul.f32 %v5702_v7, %v1893_v55  ;;  %v1919_v13 = vmul.f32 %v5704_v25, %v1901_v3 }
 0x38b   : > { %v2126_v41 = vmul.f32 %v5719_v0, %v2099_v46  ;;  %v2127_v35 = vmul.f32 %v5721_v51, %v2107_v34 }
 0x38c   : > { %v1931_v12 = vpack.c.bf16 %v1919_v13, %v1918_v37 }
 0x38d   : > { %2917 = vmatpush.bf16.msra.mxu3 %v3498_v14  ;;  %v2137_v57 = vpack.c.bf16 %v2127_v35, %v2126_v41 }
 0x38e   : > { %1939 = vst [vmem:[#allocation4 + $0x198] sm:$0xff] %v1931_v12  ;;  %v3765_v21 = vld [vmem:[#allocation4 + $0x220] sm:$0xf]  ;;  %v3929_v20 = vld [vmem:[#allocation4 + $0x224] sm:$0xf] }
 0x38f   : > { %2145 = vst [vmem:[#allocation4 + $0x228] sm:$0xff] %v2137_v57 }
 0x390   : > { %2812 = vmatmul.bf16.gmra.mxu3 %v5803_v54  ;;  %v2067_v33 = vpop.permute.xlu0 %2066  ;;  %v2063_v14 = vpop.permute.xlu2 %2062 }
 0x391   : > { %3030 = vmatpush.bf16.msrb.mxu3 %v3778_v61  ;;  %v1879_v60 = vpop.permute.xlu1 %1878  ;;  %v2096_v47 = vsel %vm677_vm3, %v2067_v33, %v2083_v26  ;;  %v2104_v58 = vsel %vm677_vm3, %v2083_v26, %v2067_v33 }
 0x392   : > { %v1892_v9 = vsel %vm581_vm7, %v5766_v53, %v1879_v60  ;;  %v1900_v18 = vsel %vm581_vm7, %v1879_v60, %v5766_v53  ;;  %v2120_v1 = vmul.f32 %v5719_v0, %v2096_v47  ;;  %v2121_v16 = vmul.f32 %v5721_v51, %v2104_v58 }
 0x393   : > { %v1916_v8 = vmul.f32 %v5702_v7, %v1892_v9  ;;  %v1917_v17 = vmul.f32 %v5704_v25, %v1900_v18  ;;  %2846 = vmatmul.bf16.gmra.mxu2 %v5806_v63 }
 0x394   : > { %v2134_v36 = vpack.c.bf16 %v2121_v16, %v2120_v1 }
 0x395   : > { %v1930_v50 = vpack.c.bf16 %v1917_v17, %v1916_v8  ;;  %v3912_v30 = vld [vmem:[#allocation4 + $0x194] sm:$0xf0] }
 0x396   : > { %2142 = vst [vmem:[#allocation4 + $0x210] sm:$0xff] %v2134_v36  ;;  %v3930_v40 = vld [vmem:[#allocation4 + $0x224] sm:$0xf0]  ;;  %v3767_v49 = vld [vmem:[#allocation4 + $0x228] sm:$0xf0] }
 0x397   : > { %1938 = vst [vmem:[#allocation4 + $0x190] sm:$0xff] %v1930_v50  ;;  %v3766_v53 = vor.u32 %v3930_v40, %v3765_v21  ;;  %v3770_v28 = vor.u32 %v3929_v20, %v3767_v49  ;;  %v3842_v40 = vld [vmem:[#allocation8 + $0xc] sm:$0xf]  ;;  %v3423_v49 = vld [vmem:[#allocation8 + $0x1c] sm:$0xf0] }
 0x398   : > { %v2085_v19 = vpop.permute.xlu0 %2084  ;;  %v2081_v32 = vpop.permute.xlu2 %2080  ;;  %v5859_v38 = vor.u32 %v3842_v40, %v3423_v49  ;;  %v3703_v40 = vld [vmem:[#allocation4 + $0x1a8] sm:$0xf0]  ;;  %v3893_v49 = vld [vmem:[#allocation4 + $0x104] sm:$0xf] }
 0x399   : > { %v2069_v6 = vpop.permute.xlu1 %2068  ;;  %2886 = vmatpush.bf16.msra.mxu1 %v3766_v53  ;;  %3031 = vmatpush.bf16.msrb.mxu3 %v3770_v28 }
 0x39a   : > { %v2097_v56 = vsel %vm677_vm3, %v2069_v6, %v2085_v19  ;;  %v2105_v23 = vsel %vm677_vm3, %v2085_v19, %v2069_v6  ;;  %v3679_v19 = vld [vmem:[#allocation4 + $0x178] sm:$0xf0] }
 0x39b   : > { %v2122_v31 = vmul.f32 %v5719_v0, %v2097_v56  ;;  %v2123_v44 = vmul.f32 %v5721_v51, %v2105_v23  ;;  %v3429_v23 = vld [vmem:[#allocation8 + $0x10] sm:$0xf] }
 0x39d   : > { %v2135_v52 = vpack.c.bf16 %v2123_v44, %v2122_v31  ;;  %v3757_v37 = vld [vmem:[#allocation4 + $0x210] sm:$0xf]  ;;  %v3927_v41 = vld [vmem:[#allocation4 + $0x214] sm:$0xf]  ;;  %v3845_v31 = vld [vmem:[#allocation8 + $0x20] sm:$0xf0] }
 0x39e   : > { %v3693_v48 = vld [vmem:[#allocation4 + $0x190] sm:$0xf] }
 0x39f   : > { %2143 = vst [vmem:[#allocation4 + $0x218] sm:$0xff] %v2135_v52  ;;  %v3694_v55 = vor.u32 %v3912_v30, %v3693_v48 }
 0x3a0   : > { %2817 = vmatmul.bf16.gmra.mxu3 %v5829_v43  ;;  %v1875_v3 = vpop.permute.xlu0 %1874 }
 0x3a1   : > { %v1859_v61 = vpop.permute.xlu1 %1858  ;;  %2858 = vmatpush.bf16.msra.mxu0 %v3694_v55  ;;  %v3903_v55 = vld [vmem:[#allocation4 + $0x154] sm:$0xf] }
 0x3a2   : > { %v1890_v15 = vsel %vm581_vm7, %v1859_v61, %v1875_v3  ;;  %v1898_v39 = vsel %vm581_vm7, %v1875_v3, %v1859_v61  ;;  %v3743_v3 = vld [vmem:[#allocation4 + $0x1f8] sm:$0xf0] }
 0x3a3   : > { %v1912_v26 = vmul.f32 %v5702_v7, %v1890_v15  ;;  %v1913_v46 = vmul.f32 %v5704_v25, %v1898_v39  ;;  %2947 = vmatmul.bf16.vlgmr.msrb.gmra.mxu2 %v5743_v24  ;;  %v3746_v15 = vor.u32 %v3923_v29, %v3743_v3  ;;  %v5863_v39 = vor.u32 %v3845_v31, %v3429_v23  ;;  %v3469_v23 = vld [vmem:[#allocation8 + $0x60] sm:$0xf]  ;;  %v3855_v31 = vld [vmem:[#allocation8 + $0x70] sm:$0xf0] }
 0x3a5   : > { %v1928_v34 = vpack.c.bf16 %v1913_v46, %v1912_v26  ;;  %v3655_v26 = vld [vmem:[#allocation4 + $0x148] sm:$0xf0] }
 0x3a6   : > { %v3928_v13 = vld [vmem:[#allocation4 + $0x214] sm:$0xf0]  ;;  %v3759_v35 = vld [vmem:[#allocation4 + $0x218] sm:$0xf0]  ;;  %v3735_v46 = vld [vmem:[#allocation4 + $0x1e8] sm:$0xf0] }
 0x3a7   : > { %1936 = vst [vmem:[#allocation4 + $0x180] sm:$0xff] %v1928_v34  ;;  %v3758_v12 = vor.u32 %v3928_v13, %v3757_v37  ;;  %v3762_v57 = vor.u32 %v3927_v41, %v3759_v35  ;;  %v3901_v34 = vld [vmem:[#allocation4 + $0x144] sm:$0xf]  ;;  %v3647_v35 = vld [vmem:[#allocation4 + $0x138] sm:$0xf0] }
 0x3a8   : > { %v2065_v10 = vpop.permute.xlu0 %2064  ;;  %v3921_v37 = vld [vmem:[#allocation4 + $0x1e4] sm:$0xf]  ;;  %v3658_v13 = vor.u32 %v3901_v34, %v3655_v26 }
 0x3a9   : > { %v1877_v33 = vpop.permute.xlu1 %1876  ;;  %2887 = vmatpush.bf16.msra.mxu1 %v3758_v12  ;;  %3032 = vmatpush.bf16.msrb.mxu3 %v3762_v57  ;;  %v2095_v60 = vsel %vm677_vm3, %v2065_v10, %v2081_v32  ;;  %v2103_v47 = vsel %vm677_vm3, %v2081_v32, %v2065_v10  ;;  %v3738_v41 = vor.u32 %v3921_v37, %v3735_v46  ;;  %v3847_v12 = vld [vmem:[#allocation8 + $0x34] sm:$0xf]  ;;  %v3443_v57 = vld [vmem:[#allocation8 + $0x44] sm:$0xf0]  ;;  %v3727_v10 = vld [vmem:[#allocation4 + $0x1d8] sm:$0xf0] }
 0x3aa   : > { %v1891_v24 = vsel %vm581_vm7, %v1861_v59, %v1877_v33  ;;  %v1899_v58 = vsel %vm581_vm7, %v1877_v33, %v1861_v59  ;;  %v2118_v9 = vmul.f32 %v5719_v0, %v2095_v60  ;;  %v2119_v18 = vmul.f32 %v5721_v51, %v2103_v47  ;;  %v3899_v32 = vld [vmem:[#allocation4 + $0x134] sm:$0xf] }
 0x3ab   : > { %v1914_v1 = vmul.f32 %v5702_v7, %v1891_v24  ;;  %v1915_v16 = vmul.f32 %v5704_v25, %v1899_v58  ;;  %v3907_v25 = vld [vmem:[#allocation4 + $0x174] sm:$0xf]  ;;  %v3650_v33 = vor.u32 %v3899_v32, %v3647_v35  ;;  %v5868_v47 = vor.u32 %v3847_v12, %v3443_v57  ;;  %v3639_v24 = vld [vmem:[#allocation4 + $0x128] sm:$0xf0] }
 0x3ac   : > { %v2133_v8 = vpack.c.bf16 %v2119_v18, %v2118_v9  ;;  %v3682_v6 = vor.u32 %v3907_v25, %v3679_v19  ;;  %v3719_v58 = vld [vmem:[#allocation4 + $0x1c8] sm:$0xf0]  ;;  %v3897_v9 = vld [vmem:[#allocation4 + $0x124] sm:$0xf]  ;;  %v3911_v19 = vld [vmem:[#allocation4 + $0x194] sm:$0xf] }
 0x3ad   : > { %v1929_v17 = vpack.c.bf16 %v1915_v16, %v1914_v1  ;;  %v3917_v18 = vld [vmem:[#allocation4 + $0x1c4] sm:$0xf]  ;;  %v3895_v16 = vld [vmem:[#allocation4 + $0x114] sm:$0xf]  ;;  %v3623_v25 = vld [vmem:[#allocation4 + $0x108] sm:$0xf0] }
 0x3ae   : > { %2141 = vst [vmem:[#allocation4 + $0x208] sm:$0xff] %v2133_v8  ;;  %v3685_v53 = vld [vmem:[#allocation4 + $0x180] sm:$0xf]  ;;  %v3722_v1 = vor.u32 %v3917_v18, %v3719_v58  ;;  %v3631_v8 = vld [vmem:[#allocation4 + $0x118] sm:$0xf0] }
 0x3af   : > { %1937 = vst [vmem:[#allocation4 + $0x188] sm:$0xff] %v1929_v17  ;;  %v3711_v17 = vld [vmem:[#allocation4 + $0x1b8] sm:$0xf0]  ;;  %v3909_v29 = vld [vmem:[#allocation4 + $0x184] sm:$0xf] }
 0x3b0   : > { %2918 = vmatmul.bf16.vlgmr.msra.gmra.mxu3 %v5663_v45 }
 0x3b1   : > { %v2079_v36 = vpop.permute.xlu1 %2078 }
 0x3b2   : > { %v2094_v50 = vsel %vm677_vm3, %v2063_v14, %v2079_v36  ;;  %v2102_v59 = vsel %vm677_vm3, %v2079_v36, %v2063_v14  ;;  %v3449_v36 = vld [vmem:[#allocation8 + $0x38] sm:$0xf] }
 0x3b3   : > { %v2116_v21 = vmul.f32 %v5719_v0, %v2094_v50  ;;  %v2117_v20 = vmul.f32 %v5721_v51, %v2102_v59  ;;  %2952 = vmatmul.bf16.gmra.mxu2 %v5776_v22  ;;  %v3905_v0 = vld [vmem:[#allocation4 + $0x164] sm:$0xf]  ;;  %v3663_v22 = vld [vmem:[#allocation4 + $0x158] sm:$0xf0]  ;;  %v3850_v50 = vld [vmem:[#allocation8 + $0x48] sm:$0xf0] }
 0x3b4   : > { %v3674_v51 = vor.u32 %v3905_v0, %v3671_v11  ;;  %v3666_v61 = vor.u32 %v3903_v55, %v3663_v22  ;;  %v3915_v59 = vld [vmem:[#allocation4 + $0x1b4] sm:$0xf]  ;;  %v3463_v11 = vld [vmem:[#allocation8 + $0x6c] sm:$0xf0]  ;;  %v3860_v55 = vld [vmem:[#allocation8 + $0x98] sm:$0xf0] }
 0x3b5   : > { %v2132_v7 = vpack.c.bf16 %v2117_v20, %v2116_v21  ;;  %v3926_v56 = vld [vmem:[#allocation4 + $0x204] sm:$0xf0]  ;;  %v3751_v14 = vld [vmem:[#allocation4 + $0x208] sm:$0xf0]  ;;  %v3634_v21 = vor.u32 %v3895_v16, %v3631_v8  ;;  %v3714_v20 = vor.u32 %v3915_v59, %v3711_v17 }
 0x3b6   : > { %v3910_v28 = vld [vmem:[#allocation4 + $0x184] sm:$0xf0]  ;;  %v3687_v22 = vld [vmem:[#allocation4 + $0x188] sm:$0xf0] }
 0x3b7   : > { %2140 = vst [vmem:[#allocation4 + $0x200] sm:$0xff] %v2132_v7  ;;  %v3686_v45 = vor.u32 %v3910_v28, %v3685_v53  ;;  %v3450_v7 = vor.u32 %v3850_v50, %v3449_v36  ;;  %v3913_v53 = vld [vmem:[#allocation4 + $0x1a4] sm:$0xf]  ;;  %v3626_v28 = vor.u32 %v3893_v49, %v3623_v25 }
 0x3b9   : > { %2859 = vmatpush.bf16.msra.mxu0 %v3686_v45  ;;  %v3706_v45 = vor.u32 %v3913_v53, %v3703_v40  ;;  %v5882_v34 = vpop.permute.xlu1 %2259 }
 0x3bc   : > { %2860 = vmatmul.bf16.vlgmr.msra.gmra.mxu0 %v5859_v38 }
 0x3bd   : > { %2968 = vmatpush.bf16.msrb.mxu0 %v3682_v6  ;;  %v3852_v6 = vld [vmem:[#allocation8 + $0x5c] sm:$0xf] }
 0x3be   : > { %v3749_v44 = vld [vmem:[#allocation4 + $0x200] sm:$0xf]  ;;  %v3925_v52 = vld [vmem:[#allocation4 + $0x204] sm:$0xf] }
 0x3bf   : > { %v3750_v48 = vor.u32 %v3926_v56, %v3749_v44  ;;  %v3754_v30 = vor.u32 %v3925_v52, %v3751_v14  ;;  %v3690_v56 = vor.u32 %v3909_v29, %v3687_v22  ;;  %v3470_v44 = vor.u32 %v3855_v31, %v3469_v23  ;;  %v3483_v52 = vld [vmem:[#allocation8 + $0x94] sm:$0xf0] }
 0x3c0   : > { %2923 = vmatmul.bf16.gmra.mxu3 %v5695_v42  ;;  %v3919_v42 = vld [vmem:[#allocation4 + $0x1d4] sm:$0xf] }
 0x3c1   : > { %2969 = vmatpush.bf16.msrb.mxu0 %v3674_v51  ;;  %2888 = vmatpush.bf16.msra.mxu1 %v3750_v48  ;;  %v3730_v60 = vor.u32 %v3919_v42, %v3727_v10  ;;  %v3466_v51 = vor.u32 %v3852_v6, %v3463_v11 }
 0x3c2   : > { %3033 = vmatpush.bf16.msrb.mxu3 %v3754_v30  ;;  %v3489_v30 = vld [vmem:[#allocation8 + $0x88] sm:$0xf] }
 0x3c3   : > { %2957 = vmatmul.bf16.gmra.mxu2 %v5803_v54  ;;  %v3642_v54 = vor.u32 %v3897_v9, %v3639_v24  ;;  %v3490_v3 = vor.u32 %v3860_v55, %v3489_v30 }
 0x3c4   : > { %3779 = vmatmul.msk.bf16.vlgmr.msra.gmra.mxu1 %vm2752_vm0, %v5863_v39 }
 0x3c5   : > { %2970 = vmatpush.bf16.msrb.mxu0 %v3666_v61  ;;  %2997 = vmatpush.bf16.msrb.mxu1 %v3746_v15  ;;  %v5878_v61 = vpop.permute.xlu0 %2254 }
 0x3c9   : > { %2971 = vmatpush.bf16.msrb.mxu0 %v3658_v13  ;;  %2998 = vmatpush.bf16.msrb.mxu1 %v3738_v41 }
 0x3cc   : > { %2865 = vmatmul.bf16.gmra.mxu0 %v5868_v47 }
 0x3cd   : > { %2972 = vmatpush.bf16.msrb.mxu0 %v3650_v33  ;;  %2999 = vmatpush.bf16.msrb.mxu1 %v3730_v60  ;;  %v2774_v48 = vpop.f32.mrf.mxu1  ;;  %v5895_v10 = vpop.permute.xlu0 %2269 }
 0x3ce   : > { %v2775_v15 = vadd.f32 %v2774_v48, %v5878_v61 }
 0x3d0   : > { %2928 = vmatmul.bf16.gmra.mxu3 %v5741_v27  ;;  %v3695_v27 = vld [vmem:[#allocation4 + $0x198] sm:$0xf0] }
 0x3d1   : > { %2973 = vmatpush.bf16.msrb.mxu0 %v3642_v54  ;;  %3000 = vmatpush.bf16.msrb.mxu1 %v3722_v1  ;;  %v3698_v0 = vor.u32 %v3911_v19, %v3695_v27  ;;  %v5922_v19 = vpop.permute.xlu1 %2274 }
 0x3d3   : > { %2962 = vmatmul.bf16.gmra.mxu2 %v5829_v43  ;;  %v3857_v43 = vld [vmem:[#allocation8 + $0x84] sm:$0xf] }
 0x3d4   : > { %3780 = vmatmul.msk.bf16.gmra.mxu1 %vm2752_vm0, %v3450_v7  ;;  %v3486_v14 = vor.u32 %v3857_v43, %v3483_v52  ;;  %v3055_v43 = vld [vmem:[%s4295_s20] sm:$0xff] }
 0x3d5   : > { %2974 = vmatpush.bf16.msrb.mxu0 %v3634_v21  ;;  %3001 = vmatpush.bf16.msrb.mxu1 %v3714_v20  ;;  %v2776_v26 = vpop.f32.mrf.mxu1 }
 0x3d6   : > { %v2777_v37 = vadd.f32 %v2776_v26, %v5882_v34 }
 0x3d9   : > { %2975 = vmatpush.bf16.msrb.mxu0 %v3626_v28  ;;  %3002 = vmatpush.bf16.msrb.mxu1 %v3706_v45 }
 0x3dc   : > { %2870 = vmatmul.bf16.gmra.mxu0 %v3466_v51 }
 0x3dd   : > { %3003 = vmatpush.bf16.msrb.mxu1 %v3698_v0  ;;  %v2779_v35 = vpop.f32.mrf.mxu1 }
 0x3e0   : > { %2933 = vmatmul.bf16.gmra.mxu3 %v5774_v2 }
 0x3e1   : > { %3004 = vmatpush.bf16.msrb.mxu1 %v3690_v56 }
 0x3e4   : > { %3781 = vmatmul.msk.bf16.gmra.mxu1 %vm2752_vm0, %v3470_v44 }
 0x3e5   : > { %v2781_v32 = vpop.f32.mrf.mxu1 }
 0x3e6   : > { %v2782_v33 = vadd.f32 %v2781_v32, %v5895_v10  ;;  %v2832_v18 = vpop.f32.mrf.mxu2  ;;  %v3057_v32 = vld [vmem:[%s4295_s20 + $0x10] sm:$0xff] }
 0x3ec   : > { %2875 = vmatmul.bf16.gmra.mxu0 %v3486_v14 }
 0x3ed   : > { %v2784_v58 = vpop.f32.mrf.mxu1 }
 0x3ee   : > { %v2834_v1 = vpop.f32.mrf.mxu2  ;;  %v2785_v6 = vadd.f32 %v2784_v58, %v5922_v19 }
 0x3f0   : > { %3783 = vmatmul.msk.bf16.vlgmr.msrb.gmra.mxu3 %vm2752_vm0, %v5863_v39  ;;  %v5889_v39 = vpop.permute.xlu2 %2264 }
 0x3f1   : > { %v2780_v42 = vadd.f32 %v2779_v35, %v5889_v39 }
 0x3f3   : > { %v2803_v2 = vpop.f32.mrf.mxu3 }
 0x3f4   : > { %v2804_v46 = vadd.f32 %v2803_v2, %v2775_v15  ;;  %3782 = vmatmul.msk.bf16.gmra.mxu1 %vm2752_vm0, %v3490_v3 }
 0x3f5   : > { %v2786_v54 = vpop.f32.mrf.mxu1 }
 0x3f6   : > { %v2837_v8 = vpop.f32.mrf.mxu2 }
 0x3fb   : > { %v2805_v13 = vpop.f32.mrf.mxu3 }
 0x3fc   : > { %v5885_v41 = vadd.f32 %v2805_v13, %v2777_v37  ;;  %2976 = vmatmul.bf16.vlgmr.msrb.gmra.mxu0 %v5700_v4 }
 0x3fe   : > { %v5912_v50 = vpop.f32.mrf.mxu2  ;;  %v2835_v55 = vadd.f32 %v2834_v1, %v5885_v41 }
 0x400   : > { %3784 = vmatmul.msk.bf16.gmra.mxu3 %vm2752_vm0, %v3450_v7 }
 0x403   : > { %v2808_v12 = vpop.f32.mrf.mxu3 }
 0x404   : > { %v5892_v57 = vadd.f32 %v2808_v12, %v2780_v42  ;;  %3005 = vmatmul.bf16.vlgmr.msrb.gmra.mxu1 %v5859_v38  ;;  %v5939_v12 = vpop.permute.xlu0 %2284 }
 0x406   : > { %v2842_v7 = vpop.f32.mrf.mxu2  ;;  %v2838_v58 = vadd.f32 %v2837_v8, %v5892_v57 }
 0x40b   : > { %v2810_v60 = vpop.f32.mrf.mxu3 }
 0x40c   : > { %v5898_v24 = vadd.f32 %v2810_v60, %v2782_v33  ;;  %2981 = vmatmul.bf16.gmra.mxu0 %v5747_v62  ;;  %v2789_v62 = vpop.f32.mrf.mxu1 }
 0x40d   : > { %v2790_v41 = vadd.f32 %v2789_v62, %v5939_v12  ;;  %v3059_v62 = vld [vmem:[%s4295_s20 + $0x20] sm:$0xff] }
 0x40e   : > { %v2844_v49 = vpop.f32.mrf.mxu2 }
 0x410   : > { %3785 = vmatmul.msk.bf16.gmra.mxu3 %vm2752_vm0, %v3470_v44  ;;  %v5927_v44 = vpop.permute.xlu2 %2279 }
 0x411   : > { %v2787_v52 = vadd.f32 %v2786_v54, %v5927_v44 }
 0x413   : > { %v2813_v4 = vpop.f32.mrf.mxu3 }
 0x414   : > { %3010 = vmatmul.bf16.gmra.mxu1 %v5868_v47  ;;  %v5910_v47 = vpop.f32.mrf.mxu1  ;;  %v2814_v22 = vadd.f32 %v2813_v4, %v2785_v6 }
 0x416   : > { %v2847_v11 = vpop.f32.mrf.mxu2  ;;  %v2843_v23 = vadd.f32 %v2842_v7, %v2814_v22 }
 0x41b   : > { %v2815_v9 = vpop.f32.mrf.mxu3 }
 0x41c   : > { %2986 = vmatmul.bf16.gmra.mxu0 %v5780_v5 }
 0x41e   : > { %v2849_v15 = vpop.f32.mrf.mxu2 }
 0x420   : > { %3786 = vmatmul.msk.bf16.gmra.mxu3 %vm2752_vm0, %v3490_v3  ;;  %v2816_v3 = vadd.f32 %v2815_v9, %v2787_v52  ;;  %v3061_v52 = vld [vmem:[%s4295_s20 + $0x30] sm:$0xff] }
 0x422   : > { %v2845_v35 = vadd.f32 %v2844_v49, %v2816_v3  ;;  %v5947_v49 = vpop.permute.xlu1 %2289 }
 0x423   : > { %v2818_v38 = vpop.f32.mrf.mxu3  ;;  %v2792_v6 = vadd.f32 %v5910_v47, %v5947_v49 }
 0x424   : > { %3015 = vmatmul.bf16.gmra.mxu1 %v3466_v51  ;;  %v2833_v51 = vadd.f32 %v2832_v18, %v2804_v46  ;;  %v2819_v9 = vadd.f32 %v2818_v38, %v2790_v41 }
 0x426   : > { %v2948_v1 = vpop.f32.mrf.mxu2  ;;  %v2848_v7 = vadd.f32 %v2847_v11, %v2819_v9 }
 0x42b   : > { %v5905_v16 = vpop.f32.mrf.mxu3 }
 0x42c   : > { %2991 = vmatmul.bf16.gmra.mxu0 %v5806_v63 }
 0x433   : > { %v5908_v17 = vpop.f32.mrf.mxu3 }
 0x434   : > { %3020 = vmatmul.bf16.gmra.mxu1 %v3486_v14 }
 0x439   : > { %v2861_v36 = vpop.f32.mrf.mxu0 }
 0x43a   : > { %v2862_v56 = vadd.f32 %v2861_v36, %v2833_v51 }
 0x43b   : > { %v5914_v5 = vpop.f32.mrf.mxu3 }
 0x43c   : > { %v2922_v9 = vadd.f32 %v5914_v5, %v5882_v34  ;;  %v295_v34 = vld [vmem:[%s4295_s20 + $0x58] sm:$0xff] }
 0x43d   : > { %303 = vst [vmem:[%s5936_s9 + $0x58] sm:$0xff] %v295_v34 }
 0x441   : > { %v2863_v59 = vpop.f32.mrf.mxu0  ;;  %v2890_v21 = vpop.f32.mrf.mxu1 }
 0x442   : > { %v2891_v31 = vadd.f32 %v2890_v21, %v2862_v56  ;;  %v2864_v37 = vadd.f32 %v2863_v59, %v2835_v55 }
 0x443   : > { %v5916_v20 = vpop.f32.mrf.mxu3 }
 0x444   : > { %v3063_v26 = vmul.f32 %v3055_v43, %v2891_v31  ;;  %v2950_v31 = vpop.f32.mrf.mxu2 }
 0x449   : > { %v2866_v25 = vpop.f32.mrf.mxu0  ;;  %v2892_v40 = vpop.f32.mrf.mxu1 }
 0x44a   : > { %v2893_v42 = vadd.f32 %v2892_v40, %v2864_v37  ;;  %v2867_v36 = vadd.f32 %v2866_v25, %v2838_v58  ;;  %v2840_v25 = vadd.f32 %v5912_v50, %v5898_v24 }
 0x44b   : > { %v5918_v63 = vpop.f32.mrf.mxu3 }
 0x44c   : > { %v3065_v18 = vmul.f32 %v3057_v32, %v2893_v42  ;;  %v2920_v42 = vadd.f32 %v5908_v17, %v5878_v61 }
 0x44e   : > { %v2949_v41 = vadd.f32 %v2948_v1, %v2920_v42  ;;  %v2951_v1 = vadd.f32 %v2950_v31, %v2922_v9 }
 0x451   : > { %v2868_v53 = vpop.f32.mrf.mxu0  ;;  %v2895_v28 = vpop.f32.mrf.mxu1 }
 0x452   : > { %v2896_v40 = vadd.f32 %v2895_v28, %v2867_v36  ;;  %v2869_v11 = vadd.f32 %v2868_v53, %v2840_v25  ;;  %v297_v25 = vld [vmem:[%s4295_s20 + $0x68] sm:$0xff] }
 0x453   : > { %v5920_v45 = vpop.f32.mrf.mxu3  ;;  %305 = vst [vmem:[%s5936_s9 + $0x68] sm:$0xff] %v297_v25 }
 0x454   : > { %v3067_v51 = vmul.f32 %v3059_v62, %v2896_v40  ;;  %v293_v40 = vld [vmem:[%s4295_s20 + $0x48] sm:$0xff] }
 0x455   : > { %301 = vst [vmem:[%s5936_s9 + $0x48] sm:$0xff] %v293_v40 }
 0x459   : > { %v2871_v27 = vpop.f32.mrf.mxu0  ;;  %v2897_v0 = vpop.f32.mrf.mxu1 }
 0x45a   : > { %v2872_v14 = vadd.f32 %v2871_v27, %v2843_v23  ;;  %v2821_v27 = vadd.f32 %v5905_v16, %v2792_v6  ;;  %v2898_v43 = vadd.f32 %v2897_v0, %v2869_v11  ;;  %v2953_v16 = vpop.f32.mrf.mxu2 }
 0x45b   : > { %v5925_v29 = vpop.f32.mrf.mxu3 }
 0x45c   : > { %v2850_v23 = vadd.f32 %v2849_v15, %v2821_v27  ;;  %v2932_v5 = vadd.f32 %v5925_v29, %v5927_v44  ;;  %v2925_v27 = vadd.f32 %v5916_v20, %v5889_v39  ;;  %v3058_v20 = vld [vmem:[%s4295_s20 + $0x18] sm:$0xff] }
 0x45e   : > { %v2954_v31 = vadd.f32 %v2953_v16, %v2925_v27 }
 0x461   : > { %v2873_v48 = vpop.f32.mrf.mxu0  ;;  %v2900_v30 = vpop.f32.mrf.mxu1 }
 0x462   : > { %v2901_v2 = vadd.f32 %v2900_v30, %v2872_v14  ;;  %v2874_v33 = vadd.f32 %v2873_v48, %v2845_v35  ;;  %v3069_v30 = vmul.f32 %v3061_v52, %v2898_v43  ;;  %v5960_v15 = vpop.f32.mrf.mxu2 }
 0x463   : > { %v5932_v46 = vpop.f32.mrf.mxu3 }
 0x464   : > { %v3071_v13 = vadd.f32 %v3063_v26, %v2901_v2 }
 0x466   : > { %3079 = vst [vmem:[%s5936_s9] sm:$0xff] %v3071_v13 }
 0x469   : > { %v2876_v60 = vpop.f32.mrf.mxu0  ;;  %v2902_v4 = vpop.f32.mrf.mxu1 }
 0x46a   : > { %v2903_v54 = vadd.f32 %v2902_v4, %v2874_v33  ;;  %v2877_v57 = vadd.f32 %v2876_v60, %v2848_v7  ;;  %v2958_v32 = vpop.f32.mrf.mxu2  ;;  %v2930_v4 = vadd.f32 %v5920_v45, %v5922_v19  ;;  %v292_v7 = vld [vmem:[%s4295_s20 + $0x40] sm:$0xff]  ;;  %v294_v45 = vld [vmem:[%s4295_s20 + $0x50] sm:$0xff]  ;;  %v3056_v19 = vld [vmem:[%s4295_s20 + $0x8] sm:$0xff] }
 0x46b   : > { %v5944_v21 = vpop.f32.mrf.mxu3  ;;  %300 = vst [vmem:[%s5936_s9 + $0x40] sm:$0xff] %v292_v7 }
 0x46c   : > { %v3073_v59 = vadd.f32 %v3065_v18, %v2903_v54  ;;  %v2959_v61 = vadd.f32 %v2958_v32, %v2930_v4  ;;  %302 = vst [vmem:[%s5936_s9 + $0x50] sm:$0xff] %v294_v45 }
 0x46e   : > { %3081 = vst [vmem:[%s5936_s9 + $0x10] sm:$0xff] %v3073_v59 }
 0x471   : > { %v2878_v38 = vpop.f32.mrf.mxu0  ;;  %v2905_v8 = vpop.f32.mrf.mxu1 }
 0x472   : > { %v2906_v28 = vadd.f32 %v2905_v8, %v2877_v57  ;;  %v2879_v47 = vadd.f32 %v2878_v38, %v2850_v23  ;;  %v2960_v17 = vpop.f32.mrf.mxu2  ;;  %v296_v8 = vld [vmem:[%s4295_s20 + $0x60] sm:$0xff] }
 0x473   : > { %v3035_v56 = vpop.f32.mrf.mxu3  ;;  %304 = vst [vmem:[%s5936_s9 + $0x60] sm:$0xff] %v296_v8  ;;  %v2961_v29 = vadd.f32 %v2960_v17, %v2932_v5 }
 0x474   : > { %v3075_v22 = vadd.f32 %v3067_v51, %v2906_v28 }
 0x476   : > { %3083 = vst [vmem:[%s5936_s9 + $0x20] sm:$0xff] %v3075_v22  ;;  %v298_v22 = vld [vmem:[%s4295_s20 + $0x70] sm:$0xff] }
 0x477   : > { %306 = vst [vmem:[%s5936_s9 + $0x70] sm:$0xff] %v298_v22 }
 0x479   : > { %v2907_v14 = vpop.f32.mrf.mxu1  ;;  %v2977_v48 = vpop.f32.mrf.mxu0 }
 0x47a   : > { %v2908_v55 = vadd.f32 %v2907_v14, %v2879_v47  ;;  %v2978_v58 = vadd.f32 %v2977_v48, %v2949_v41  ;;  %v2963_v39 = vpop.f32.mrf.mxu2  ;;  %v2935_v14 = vadd.f32 %v5932_v46, %v5939_v12 }
 0x47b   : > { %v3037_v24 = vpop.f32.mrf.mxu3 }
 0x47c   : > { %v3077_v3 = vadd.f32 %v3069_v30, %v2908_v55 }
 0x47e   : > { %3085 = vst [vmem:[%s5936_s9 + $0x30] sm:$0xff] %v3077_v3  ;;  %v2927_v3 = vadd.f32 %v5918_v63, %v5895_v10  ;;  %v2937_v10 = vadd.f32 %v5944_v21, %v5947_v49 }
 0x480   : > { %v2956_v42 = vadd.f32 %v5960_v15, %v2927_v3 }
 0x481   : > { %v2979_v50 = vpop.f32.mrf.mxu0  ;;  %v3006_v26 = vpop.f32.mrf.mxu1 }
 0x482   : > { %v3007_v18 = vadd.f32 %v3006_v26, %v2978_v58  ;;  %v2980_v57 = vadd.f32 %v2979_v50, %v2951_v1  ;;  %v2964_v26 = vadd.f32 %v2963_v39, %v2935_v14 }
 0x483   : > { %v5958_v2 = vpop.f32.mrf.mxu3 }
 0x484   : > { %v3036_v36 = vadd.f32 %v3035_v56, %v3007_v18  ;;  %v299_v56 = vld [vmem:[%s4295_s20 + $0x78] sm:$0xff] }
 0x485   : > { %307 = vst [vmem:[%s5936_s9 + $0x78] sm:$0xff] %v299_v56 }
 0x486   : > { %v3064_v51 = vmul.f32 %v3056_v19, %v3036_v36 }
 0x489   : > { %v2982_v53 = vpop.f32.mrf.mxu0  ;;  %v3008_v37 = vpop.f32.mrf.mxu1 }
 0x48a   : > { %v3009_v28 = vadd.f32 %v3008_v37, %v2980_v57  ;;  %v2983_v48 = vadd.f32 %v2982_v53, %v2954_v31 }
 0x48b   : > { %v5964_v35 = vpop.f32.mrf.mxu3 }
 0x48c   : > { %v3038_v43 = vadd.f32 %v3037_v24, %v3009_v28 }
 0x48e   : > { %v3066_v50 = vmul.f32 %v3058_v20, %v3038_v43 }
 0x491   : > { %v5962_v0 = vpop.f32.mrf.mxu0  ;;  %v3011_v13 = vpop.f32.mrf.mxu1 }
 0x492   : > { %v3012_v16 = vadd.f32 %v3011_v13, %v2983_v48  ;;  %v2985_v63 = vadd.f32 %v5962_v0, %v2956_v42  ;;  %v2965_v13 = vpop.f32.mrf.mxu2  ;;  %v3062_v0 = vld [vmem:[%s4295_s20 + $0x38] sm:$0xff] }
 0x493   : > { %v3045_v54 = vpop.f32.mrf.mxu3  ;;  %v2966_v9 = vadd.f32 %v2965_v13, %v2937_v10 }
 0x494   : > { %v3041_v32 = vadd.f32 %v5958_v2, %v3012_v16 }
 0x499   : > { %v2987_v33 = vpop.f32.mrf.mxu0  ;;  %v5968_v60 = vpop.f32.mrf.mxu1 }
 0x49a   : > { %v2988_v59 = vadd.f32 %v2987_v33, %v2959_v61  ;;  %v3060_v33 = vld [vmem:[%s4295_s20 + $0x28] sm:$0xff]  ;;  %v3014_v15 = vadd.f32 %v5968_v60, %v2985_v63 }
 0x49b   : > { %v3047_v23 = vpop.f32.mrf.mxu3  ;;  %v3068_v4 = vmul.f32 %v3060_v33, %v3041_v32 }
 0x49c   : > { %v3043_v21 = vadd.f32 %v5964_v35, %v3014_v15 }
 0x49e   : > { %v3070_v17 = vmul.f32 %v3062_v0, %v3043_v21 }
 0x4a1   : > { %v2989_v62 = vpop.f32.mrf.mxu0  ;;  %v3016_v6 = vpop.f32.mrf.mxu1 }
 0x4a2   : > { %v3017_v38 = vadd.f32 %v3016_v6, %v2988_v59  ;;  %v2990_v52 = vadd.f32 %v2989_v62, %v2961_v29 }
 0x4a3   : > { %v3050_v12 = vpop.f32.mrf.mxu3 }
 0x4a4   : > { %v3046_v11 = vadd.f32 %v3045_v54, %v3017_v38 }
 0x4a6   : > { %v3072_v44 = vadd.f32 %v3064_v51, %v3046_v11 }
 0x4a8   : > { %3080 = vst [vmem:[%s5936_s9 + $0x8] sm:$0xff] %v3072_v44 }
 0x4a9   : > { %v3018_v47 = vpop.f32.mrf.mxu1  ;;  %v2992_v55 = vpop.f32.mrf.mxu0 }
 0x4aa   : > { %v3019_v30 = vadd.f32 %v3018_v47, %v2990_v52  ;;  %v2993_v41 = vadd.f32 %v2992_v55, %v2964_v26 }
 0x4ab   : > { %v3052_v60 = vpop.f32.mrf.mxu3 }
 0x4ac   : > { %v3048_v24 = vadd.f32 %v3047_v23, %v3019_v30 }
 0x4ae   : > { %v3074_v37 = vadd.f32 %v3066_v50, %v3048_v24 }
 0x4b0   : > { %3082 = vst [vmem:[%s5936_s9 + $0x18] sm:$0xff] %v3074_v37 }
 0x4b1   : > { %v3021_v46 = vpop.f32.mrf.mxu1  ;;  %v2994_v2 = vpop.f32.mrf.mxu0 }
 0x4b2   : > { %v3022_v53 = vadd.f32 %v3021_v46, %v2993_v41  ;;  %v2995_v49 = vadd.f32 %v2994_v2, %v2966_v9 }
 0x4b4   : > { %v3051_v58 = vadd.f32 %v3050_v12, %v3022_v53 }
 0x4b6   : > { %v3076_v18 = vadd.f32 %v3068_v4, %v3051_v58 }
 0x4b8   : > { %3084 = vst [vmem:[%s5936_s9 + $0x28] sm:$0xff] %v3076_v18 }
 0x4b9   : > { %v3023_v54 = vpop.f32.mrf.mxu1 }
 0x4ba   : > { %v3024_v61 = vadd.f32 %v3023_v54, %v2995_v49 }
 0x4bc   : > { %v3053_v1 = vadd.f32 %v3052_v60, %v3024_v61 }
 0x4be   : > { %v3078_v36 = vadd.f32 %v3070_v17, %v3053_v1 }
 0x4c0   : > { %3086 = vst [vmem:[%s5936_s9 + $0x38] sm:$0xff] %v3078_v36 }
 0x4c1   : > { %4097 = shalt.err (!%p4094_p10)
}
 0x4c2   : > { %s4157_s19 = smov 256   ;;  %s4158_s9 = smov 512  }
 0x4c3   : > { %3940 = dma.vmem_to_hbm [thread:$0]  (%p4261_p7), %s3101_s12, 2048, %s3103_s14, %s3088_s25, %s4157_s19, %s4158_s9, %s4150_s8  }
 0x4c4 PF: > { %s3117_s15 = sand.u32 1, %s4128_s21   ;;  %p6115_p12 = scmp.ge.s32.totalorder %s4140_s24, 2 }
 0x4c5   : > { %s3118_s13 = scalar_lea.sflag [#allocation7], %s3117_s15 }
 0x4c6   : > { %p3951_p13 = pnand %p6115_p12, %p4229_p6 }
 0x4c8   : > { %p3952_p0 = pneg %p3951_p13 }
 0x4ca   : > { %4123 = dma.done.wait (%p3952_p0), %s3118_s13, 2048  }
 0x4cb   : > { %4125 = vsyncadd (%p3952_p0), %s3118_s13, 4294965248  ;;  %p20_p3 = scmp.ge.s32.totalorder %s4247_s11, 4   ;;  %s6116_s21 = smov %s4132_s22 }
 0x4cc   : > { %s6117_s22 = smov %s4136_s23  ;;  %s6118_s23 = smov %s4257_s16 }
 0x4cd   : > { %s6119_s24 = smov %s4247_s11  ;;  %22 = sbr.rel (!%p20_p3) target bundleno = 8 (0x8), region = 100 }
 0x4d2   :  { %3124 = vsyncpa [#allocation6], 1 }
 0x4d3   :  { %3126 = vsyncpa [#allocation6 + $0x1], 1 }
 0x4d4   :  { %3127 = vsyncpa [#allocation9], 1 }
 0x4d5   :  { %3128 = vsyncpa [#allocation7], 1 }
 0x4d6   :  { %3130 = vsyncpa [#allocation7 + $0x1], 1 }

</bundles_post_ra>
